<compile_context>
chip_gen: v7x
topology: tpu7x:2x2x1
jax: 0.10.0
libtpu: 0.0.40
codegen_flags: <defaults>
</compile_context>

<pallas_src>
import jax
import jax.numpy as jnp
from jax import lax
from jax.experimental import pallas as pl
from jax.experimental.pallas import tpu as pltpu


def _round_up(v, m):
    return (v + m - 1) // m * m


def _geometry(H, W):
    Wp = W + 2                        # padded row width
    M = H * Wp                        # extended-output rows per image
    A = _round_up(Wp + 1, 8)          # sublane-aligned offset of pixel (0, 0)
    base = A - (Wp + 1)               # zero rows prepended to the flat image
    P = _round_up(base + (H + 2) * Wp + 2, 8)   # flat buffer length (rows)
    return Wp, M, A, base, P


def _make_kernel(H, W, Cp, TM=512):
    Wp, M, A, base, P = _geometry(H, W)

    def kernel(x_ref, w1_ref, w2_ref, b1_ref, b2_ref, mask_ref,
               out_ref, pad2_ref):
        # ---- zero the never-written border rows of the flat conv2 input ----
        # (small fixed ranges; interior is fully rewritten below every step,
        #  so this stays correct when the batch axis is sharded across cores)
        pad2_ref[0:A, :] = jnp.zeros((A, Cp), pad2_ref.dtype)
        pad2_ref[A + M:P, :] = jnp.zeros((P - A - M, Cp), pad2_ref.dtype)

        def conv3x3_chunk(src_ref, w_ref, b_ref, c0, tm):
            # 9 tap matmuls; every tap is a contiguous 2D slice of the flat
            # zero-padded image.  Accumulator starts at the folded BN bias.
            acc = jnp.zeros((tm, Cp), jnp.float32) + b_ref[...]
            for t in range(9):                       # static unroll
                ky, kx = t // 3, t % 3
                s = base + ky * Wp + kx + c0
                acc = acc + jnp.dot(src_ref[s:s + tm, :], w_ref[t],
                                    preferred_element_type=jnp.float32)
            return acc

        # ---- conv1 (BN1 scale folded into w1) + bias + relu, row-chunked ----
        for c0 in range(0, M, TM):
            tm = min(TM, M - c0)
            h = jnp.maximum(conv3x3_chunk(x_ref, w1_ref, b1_ref, c0, tm), 0.0)
            # zero the 2 junk columns of every image row (precomputed (M,1)
            # mask); they become the left/right zero border of the conv2 input
            h = h * mask_ref[c0:c0 + tm, :]
            pad2_ref[A + c0:A + c0 + tm, :] = h.astype(pad2_ref.dtype)

        # ---- conv2 (BN2 scale folded) + bias + residual add + relu ----
        for c0 in range(0, M, TM):
            tm = min(TM, M - c0)
            y = conv3x3_chunk(pad2_ref, w2_ref, b2_ref, c0, tm)
            y = y + x_ref[A + c0:A + c0 + tm, :].astype(jnp.float32)
            out_ref[c0:c0 + tm, :] = jnp.maximum(y, 0.0).astype(out_ref.dtype)

    return kernel


def basic_block(x_nchw, w1, w2, bn1, bn2, eps=1e-5, stride=1, downsample=None,
                out_dtype=jnp.float32):
    """Fused BasicBlock forward. x_nchw: (N, Cin, H, W) float32, NCHW."""
    assert stride == 1 and downsample is None, \
        "only the default BasicBlock path (stride=1, downsample=None) is implemented"
    N, Cin, H, W = x_nchw.shape
    Cout = w1.shape[0]
    assert Cin == Cout, "default path requires in_channel == out_channel"

    Wp, M, A, base, P = _geometry(H, W)
    Cp = _round_up(Cout, 128)                     # lane-dense channel width
    kernel = _make_kernel(H, W, Cp)

    # ---- fold BN (inference mode) into scale/bias ----
    def fold_bn(bn):
        gamma, beta, mean, var = bn
        scale = gamma / jnp.sqrt(var + eps)
        bias = beta - mean * scale
        return scale.astype(jnp.float32), bias.astype(jnp.float32)

    s1, b1 = fold_bn(bn1)
    s2, b2 = fold_bn(bn2)

    # ---- weights: OIHW -> (ky*3+kx, Cin, Cout), BN scale folded in, padded ----
    def pack_w(w, scale, cin, cout):
        wt = jnp.transpose(w, (2, 3, 1, 0)).reshape(9, cin, cout).astype(jnp.float32)
        wt = wt * scale[None, None, :]            # fold BN scale (f32), then cast
        wt = jnp.pad(wt, ((0, 0), (0, Cp - cin), (0, Cp - cout)))
        return wt.astype(jnp.bfloat16)

    w1_t = pack_w(w1, s1, Cin, Cout)
    w2_t = pack_w(w2, s2, Cout, Cout)
    b1_p = jnp.pad(b1, (0, Cp - Cout)).reshape(1, Cp).astype(jnp.float32)
    b2_p = jnp.pad(b2, (0, Cp - Cout)).reshape(1, Cp).astype(jnp.float32)

    # ---- input: NCHW -> NHWC -> pad spatially + channel-pad -> flat + shift ----
    x_nhwc = jnp.transpose(x_nchw, (0, 2, 3, 1)).astype(jnp.float32)
    x_pad = jnp.pad(x_nhwc, ((0, 0), (1, 1), (1, 1), (0, Cp - Cin)))
    x_flat = x_pad.reshape(N, (H + 2) * Wp, Cp)
    x_flat = jnp.pad(x_flat, ((0, 0), (base, P - base - (H + 2) * Wp), (0, 0)))
    x_flat = x_flat.astype(jnp.bfloat16)          # bf16 MXU feed, half the DMA

    # ---- precomputed (M, 1) border mask (1 on real columns, 0 on junk) ----
    mask = (jnp.arange(M, dtype=jnp.int32) % Wp < W)
    mask = mask.astype(jnp.float32).reshape(M, 1)

    out_flat = pl.pallas_call(
        kernel,
        out_shape=jax.ShapeDtypeStruct((N, M, Cp), out_dtype),
        grid_spec=pltpu.PrefetchScalarGridSpec(
            num_scalar_prefetch=0,
            grid=(N,),
            in_specs=[
                pl.BlockSpec((None, P, Cp), lambda n: (n, 0, 0)),   # x (flat, padded)
                pl.BlockSpec((9, Cp, Cp), lambda n: (0, 0, 0)),     # w1 (scale folded)
                pl.BlockSpec((9, Cp, Cp), lambda n: (0, 0, 0)),     # w2 (scale folded)
                pl.BlockSpec((1, Cp), lambda n: (0, 0)),            # bn1 folded bias
                pl.BlockSpec((1, Cp), lambda n: (0, 0)),            # bn2 folded bias
                pl.BlockSpec((M, 1), lambda n: (0, 0)),             # border mask
            ],
            out_specs=pl.BlockSpec((None, M, Cp), lambda n: (n, 0, 0)),
            scratch_shapes=[
                pltpu.VMEM((P, Cp), jnp.bfloat16),   # flat padded conv2 input
            ],
        ),
        compiler_params=pltpu.CompilerParams(
            dimension_semantics=("parallel",),        # megacore batch sharding
            vmem_limit_bytes=32 * 1024 * 1024,        # safe on v5e/v6e/v7x
        ),
    )(x_flat, w1_t, w2_t, b1_p, b2_p, mask)

    # Strip junk columns and padding channels; back to NCHW.
    out_nhwc = out_flat.reshape(N, H, Wp, Cp)[:, :, :W, :Cout]
    return jnp.transpose(out_nhwc, (0, 3, 1, 2)).astype(jnp.float32)


def reference(x_nchw, w1_eff, b1, w2_eff, b2):
    """Plain-JAX reference with BN pre-folded into (w_eff, bias), NCHW."""
    def conv(z, w):
        return lax.conv_general_dilated(
            z, w, window_strides=(1, 1), padding="SAME",
            dimension_numbers=("NCHW", "OIHW", "NCHW"),
            precision=lax.Precision.HIGHEST)

    h = jax.nn.relu(conv(x_nchw, w1_eff) + b1[None, :, None, None])
    y = conv(h, w2_eff) + b2[None, :, None, None] + x_nchw
    return jax.nn.relu(y)


if __name__ == "__main__":
    key = jax.random.PRNGKey(0)
    kx, kw1, kw2, kg1, kb1, km1, kv1, kg2, kb2, km2, kv2 = jax.random.split(key, 11)

    N, C, H, W = 2, 4, 16, 16  # in_channel == out_channel, stride=1, no downsample
    x = jax.random.normal(kx, (N, C, H, W), jnp.float32)

    # conv weights, PyTorch OIHW shape (Cout, Cin, 3, 3), bias=False
    w1 = jax.random.normal(kw1, (C, C, 3, 3), jnp.float32) * 0.1
    w2 = jax.random.normal(kw2, (C, C, 3, 3), jnp.float32) * 0.1

    # BatchNorm params (gamma, beta, running_mean, running_var) — inference mode
    bn1 = (jax.random.normal(kg1, (C,), jnp.float32) * 0.1 + 1.0,
           jax.random.normal(kb1, (C,), jnp.float32) * 0.1,
           jax.random.normal(km1, (C,), jnp.float32) * 0.1,
           jax.random.uniform(kv1, (C,), jnp.float32, 0.5, 1.5))
    bn2 = (jax.random.normal(kg2, (C,), jnp.float32) * 0.1 + 1.0,
           jax.random.normal(kb2, (C,), jnp.float32) * 0.1,
           jax.random.normal(km2, (C,), jnp.float32) * 0.1,
           jax.random.uniform(kv2, (C,), jnp.float32, 0.5, 1.5))

    out = jax.block_until_ready(basic_block(x, w1, w2, bn1, bn2))
    assert out.shape == (N, C, H, W)

    # The kernel feeds the MXU in bf16 with BN scale folded into the weights;
    # compare against an f32 reference that sees the same bf16-rounded,
    # scale-folded inputs so the check isolates structural bugs (tap offsets,
    # padding borders, BN folding, residual path).  The conv2 input is staged
    # in bf16 in the kernel, hence the slightly loose tolerance.
    eps = 1e-5
    def fold(bn):
        g, b, m, v = bn
        s = g / jnp.sqrt(v + eps)
        return s, b - m * s
    s1, b1v = fold(bn1)
    s2, b2v = fold(bn2)
    xq = x.astype(jnp.bfloat16).astype(jnp.float32)
    w1q = (w1 * s1[:, None, None, None]).astype(jnp.bfloat16).astype(jnp.float32)
    w2q = (w2 * s2[:, None, None, None]).astype(jnp.bfloat16).astype(jnp.float32)
    ref = jax.block_until_ready(reference(xq, w1q, b1v, w2q, b2v))

    err = jnp.max(jnp.abs(out - ref))
    assert jnp.allclose(out, ref, rtol=2e-2, atol=2e-2), f"max abs err {err}"

    print("KERNEL_OK")
</pallas_src>

<mosaic_0001>
module attributes {stable_mosaic.version = 11 : i64} {
  func.func @kernel(%arg0: i32, %arg1: memref<1x336x128xbf16, #tpu.memory_space<vmem>>, %arg2: memref<9x128x128xbf16, #tpu.memory_space<vmem>>, %arg3: memref<9x128x128xbf16, #tpu.memory_space<vmem>>, %arg4: memref<1x128xf32, #tpu.memory_space<vmem>>, %arg5: memref<1x128xf32, #tpu.memory_space<vmem>>, %arg6: memref<288x1xf32, #tpu.memory_space<vmem>>, %arg7: memref<1x288x128xf32, #tpu.memory_space<vmem>>, %arg8: memref<336x128xbf16, #tpu.memory_space<vmem>>) attributes {dimension_semantics = [#tpu.dimension_semantics<parallel>], iteration_bounds = array<i64: 2>, scalar_prefetch = 0 : i64, scratch_operands = 1 : i64, tpu.core_type = #tpu.core_type<tc>, window_params = [{transform_indices = @transform_0, window_bounds = array<i64: 1, 336, 128>}, {pipeline_mode = #tpu.pipeline_mode<synchronous>, transform_indices = @transform_1, window_bounds = array<i64: 9, 128, 128>}, {pipeline_mode = #tpu.pipeline_mode<synchronous>, transform_indices = @transform_2, window_bounds = array<i64: 9, 128, 128>}, {pipeline_mode = #tpu.pipeline_mode<synchronous>, transform_indices = @transform_3, window_bounds = array<i64: 1, 128>}, {pipeline_mode = #tpu.pipeline_mode<synchronous>, transform_indices = @transform_4, window_bounds = array<i64: 1, 128>}, {pipeline_mode = #tpu.pipeline_mode<synchronous>, transform_indices = @transform_5, window_bounds = array<i64: 288, 1>}, {transform_indices = @transform_6, window_bounds = array<i64: 1, 288, 128>}]} {
    %cst = arith.constant 0.000000e+00 : bf16
    %0 = vector.broadcast %cst : bf16 to vector<24x128xbf16>
    %c0 = arith.constant 0 : index
    %c0_0 = arith.constant 0 : index
    %1 = vector.load %arg8[%c0, %c0_0] : memref<336x128xbf16, #tpu.memory_space<vmem>>, vector<24x128xbf16>
    tpu.vector_store %arg8[%c0, %c0_0], %0 {strides = array<i32>} : memref<336x128xbf16, #tpu.memory_space<vmem>>, vector<24x128xbf16>,
    %cst_1 = arith.constant 0.000000e+00 : bf16
    %2 = vector.broadcast %cst_1 : bf16 to vector<24x128xbf16>
    %c312 = arith.constant 312 : index
    %c0_2 = arith.constant 0 : index
    %3 = vector.load %arg8[%c312, %c0_2] : memref<336x128xbf16, #tpu.memory_space<vmem>>, vector<24x128xbf16>
    tpu.vector_store %arg8[%c312, %c0_2], %2 {strides = array<i32>} : memref<336x128xbf16, #tpu.memory_space<vmem>>, vector<24x128xbf16>,
    %cst_3 = arith.constant 0.000000e+00 : f32
    %4 = vector.broadcast %cst_3 : f32 to vector<288x128xf32>
    %c0_4 = arith.constant 0 : index
    %c0_5 = arith.constant 0 : index
    %5 = vector.load %arg4[%c0_4, %c0_5] : memref<1x128xf32, #tpu.memory_space<vmem>>, vector<1x128xf32>
    %6 = vector.broadcast %5 : vector<1x128xf32> to vector<288x128xf32>
    %7 = arith.addf %4, %6 : vector<288x128xf32>
    %c0_6 = arith.constant 0 : index
    %c5 = arith.constant 5 : index
    %c0_7 = arith.constant 0 : index
    %8 = vector.load %arg1[%c0_6, %c5, %c0_7] : memref<1x336x128xbf16, #tpu.memory_space<vmem>>, vector<1x288x128xbf16>
    %9 = vector.shape_cast %8 : vector<1x288x128xbf16> to vector<288x128xbf16>
    %c0_8 = arith.constant 0 : index
    %c0_9 = arith.constant 0 : index
    %c0_10 = arith.constant 0 : index
    %10 = vector.load %arg2[%c0_8, %c0_9, %c0_10] : memref<9x128x128xbf16, #tpu.memory_space<vmem>>, vector<1x128x128xbf16>
    %11 = vector.shape_cast %10 : vector<1x128x128xbf16> to vector<128x128xbf16>
    %cst_11 = arith.constant dense<0.000000e+00> : vector<288x128xf32>
    %12 = tpu.matmul %9, %11, %cst_11 {dimension_numbers = #tpu.dot_dimension_numbers<[1], [0], [0], [1], [0, 0, 1, 1], [], []>} : vector<288x128xbf16>, vector<128x128xbf16>, vector<288x128xf32> -> vector<288x128xf32>
    %13 = arith.addf %7, %12 : vector<288x128xf32>
    %c0_12 = arith.constant 0 : index
    %c6 = arith.constant 6 : index
    %c0_13 = arith.constant 0 : index
    %14 = vector.load %arg1[%c0_12, %c6, %c0_13] : memref<1x336x128xbf16, #tpu.memory_space<vmem>>, vector<1x288x128xbf16>
    %15 = vector.shape_cast %14 : vector<1x288x128xbf16> to vector<288x128xbf16>
    %c1 = arith.constant 1 : index
    %c0_14 = arith.constant 0 : index
    %c0_15 = arith.constant 0 : index
    %16 = vector.load %arg2[%c1, %c0_14, %c0_15] : memref<9x128x128xbf16, #tpu.memory_space<vmem>>, vector<1x128x128xbf16>
    %17 = vector.shape_cast %16 : vector<1x128x128xbf16> to vector<128x128xbf16>
    %cst_16 = arith.constant dense<0.000000e+00> : vector<288x128xf32>
    %18 = tpu.matmul %15, %17, %cst_16 {dimension_numbers = #tpu.dot_dimension_numbers<[1], [0], [0], [1], [0, 0, 1, 1], [], []>} : vector<288x128xbf16>, vector<128x128xbf16>, vector<288x128xf32> -> vector<288x128xf32>
    %19 = arith.addf %13, %18 : vector<288x128xf32>
    %c0_17 = arith.constant 0 : index
    %c7 = arith.constant 7 : index
    %c0_18 = arith.constant 0 : index
    %20 = vector.load %arg1[%c0_17, %c7, %c0_18] : memref<1x336x128xbf16, #tpu.memory_space<vmem>>, vector<1x288x128xbf16>
    %21 = vector.shape_cast %20 : vector<1x288x128xbf16> to vector<288x128xbf16>
    %c2 = arith.constant 2 : index
    %c0_19 = arith.constant 0 : index
    %c0_20 = arith.constant 0 : index
    %22 = vector.load %arg2[%c2, %c0_19, %c0_20] : memref<9x128x128xbf16, #tpu.memory_space<vmem>>, vector<1x128x128xbf16>
    %23 = vector.shape_cast %22 : vector<1x128x128xbf16> to vector<128x128xbf16>
    %cst_21 = arith.constant dense<0.000000e+00> : vector<288x128xf32>
    %24 = tpu.matmul %21, %23, %cst_21 {dimension_numbers = #tpu.dot_dimension_numbers<[1], [0], [0], [1], [0, 0, 1, 1], [], []>} : vector<288x128xbf16>, vector<128x128xbf16>, vector<288x128xf32> -> vector<288x128xf32>
    %25 = arith.addf %19, %24 : vector<288x128xf32>
    %c0_22 = arith.constant 0 : index
    %c23 = arith.constant 23 : index
    %c0_23 = arith.constant 0 : index
    %26 = vector.load %arg1[%c0_22, %c23, %c0_23] : memref<1x336x128xbf16, #tpu.memory_space<vmem>>, vector<1x288x128xbf16>
    %27 = vector.shape_cast %26 : vector<1x288x128xbf16> to vector<288x128xbf16>
    %c3 = arith.constant 3 : index
    %c0_24 = arith.constant 0 : index
    %c0_25 = arith.constant 0 : index
    %28 = vector.load %arg2[%c3, %c0_24, %c0_25] : memref<9x128x128xbf16, #tpu.memory_space<vmem>>, vector<1x128x128xbf16>
    %29 = vector.shape_cast %28 : vector<1x128x128xbf16> to vector<128x128xbf16>
    %cst_26 = arith.constant dense<0.000000e+00> : vector<288x128xf32>
    %30 = tpu.matmul %27, %29, %cst_26 {dimension_numbers = #tpu.dot_dimension_numbers<[1], [0], [0], [1], [0, 0, 1, 1], [], []>} : vector<288x128xbf16>, vector<128x128xbf16>, vector<288x128xf32> -> vector<288x128xf32>
    %31 = arith.addf %25, %30 : vector<288x128xf32>
    %c0_27 = arith.constant 0 : index
    %c24 = arith.constant 24 : index
    %c0_28 = arith.constant 0 : index
    %32 = vector.load %arg1[%c0_27, %c24, %c0_28] : memref<1x336x128xbf16, #tpu.memory_space<vmem>>, vector<1x288x128xbf16>
    %33 = vector.shape_cast %32 : vector<1x288x128xbf16> to vector<288x128xbf16>
    %c4 = arith.constant 4 : index
    %c0_29 = arith.constant 0 : index
    %c0_30 = arith.constant 0 : index
    %34 = vector.load %arg2[%c4, %c0_29, %c0_30] : memref<9x128x128xbf16, #tpu.memory_space<vmem>>, vector<1x128x128xbf16>
    %35 = vector.shape_cast %34 : vector<1x128x128xbf16> to vector<128x128xbf16>
    %cst_31 = arith.constant dense<0.000000e+00> : vector<288x128xf32>
    %36 = tpu.matmul %33, %35, %cst_31 {dimension_numbers = #tpu.dot_dimension_numbers<[1], [0], [0], [1], [0, 0, 1, 1], [], []>} : vector<288x128xbf16>, vector<128x128xbf16>, vector<288x128xf32> -> vector<288x128xf32>
    %37 = arith.addf %31, %36 : vector<288x128xf32>
    %c0_32 = arith.constant 0 : index
    %c25 = arith.constant 25 : index
    %c0_33 = arith.constant 0 : index
    %38 = vector.load %arg1[%c0_32, %c25, %c0_33] : memref<1x336x128xbf16, #tpu.memory_space<vmem>>, vector<1x288x128xbf16>
    %39 = vector.shape_cast %38 : vector<1x288x128xbf16> to vector<288x128xbf16>
    %c5_34 = arith.constant 5 : index
    %c0_35 = arith.constant 0 : index
    %c0_36 = arith.constant 0 : index
    %40 = vector.load %arg2[%c5_34, %c0_35, %c0_36] : memref<9x128x128xbf16, #tpu.memory_space<vmem>>, vector<1x128x128xbf16>
    %41 = vector.shape_cast %40 : vector<1x128x128xbf16> to vector<128x128xbf16>
    %cst_37 = arith.constant dense<0.000000e+00> : vector<288x128xf32>
    %42 = tpu.matmul %39, %41, %cst_37 {dimension_numbers = #tpu.dot_dimension_numbers<[1], [0], [0], [1], [0, 0, 1, 1], [], []>} : vector<288x128xbf16>, vector<128x128xbf16>, vector<288x128xf32> -> vector<288x128xf32>
    %43 = arith.addf %37, %42 : vector<288x128xf32>
    %c0_38 = arith.constant 0 : index
    %c41 = arith.constant 41 : index
    %c0_39 = arith.constant 0 : index
    %44 = vector.load %arg1[%c0_38, %c41, %c0_39] : memref<1x336x128xbf16, #tpu.memory_space<vmem>>, vector<1x288x128xbf16>
    %45 = vector.shape_cast %44 : vector<1x288x128xbf16> to vector<288x128xbf16>
    %c6_40 = arith.constant 6 : index
    %c0_41 = arith.constant 0 : index
    %c0_42 = arith.constant 0 : index
    %46 = vector.load %arg2[%c6_40, %c0_41, %c0_42] : memref<9x128x128xbf16, #tpu.memory_space<vmem>>, vector<1x128x128xbf16>
    %47 = vector.shape_cast %46 : vector<1x128x128xbf16> to vector<128x128xbf16>
    %cst_43 = arith.constant dense<0.000000e+00> : vector<288x128xf32>
    %48 = tpu.matmul %45, %47, %cst_43 {dimension_numbers = #tpu.dot_dimension_numbers<[1], [0], [0], [1], [0, 0, 1, 1], [], []>} : vector<288x128xbf16>, vector<128x128xbf16>, vector<288x128xf32> -> vector<288x128xf32>
    %49 = arith.addf %43, %48 : vector<288x128xf32>
    %c0_44 = arith.constant 0 : index
    %c42 = arith.constant 42 : index
    %c0_45 = arith.constant 0 : index
    %50 = vector.load %arg1[%c0_44, %c42, %c0_45] : memref<1x336x128xbf16, #tpu.memory_space<vmem>>, vector<1x288x128xbf16>
    %51 = vector.shape_cast %50 : vector<1x288x128xbf16> to vector<288x128xbf16>
    %c7_46 = arith.constant 7 : index
    %c0_47 = arith.constant 0 : index
    %c0_48 = arith.constant 0 : index
    %52 = vector.load %arg2[%c7_46, %c0_47, %c0_48] : memref<9x128x128xbf16, #tpu.memory_space<vmem>>, vector<1x128x128xbf16>
    %53 = vector.shape_cast %52 : vector<1x128x128xbf16> to vector<128x128xbf16>
    %cst_49 = arith.constant dense<0.000000e+00> : vector<288x128xf32>
    %54 = tpu.matmul %51, %53, %cst_49 {dimension_numbers = #tpu.dot_dimension_numbers<[1], [0], [0], [1], [0, 0, 1, 1], [], []>} : vector<288x128xbf16>, vector<128x128xbf16>, vector<288x128xf32> -> vector<288x128xf32>
    %55 = arith.addf %49, %54 : vector<288x128xf32>
    %c0_50 = arith.constant 0 : index
    %c43 = arith.constant 43 : index
    %c0_51 = arith.constant 0 : index
    %56 = vector.load %arg1[%c0_50, %c43, %c0_51] : memref<1x336x128xbf16, #tpu.memory_space<vmem>>, vector<1x288x128xbf16>
    %57 = vector.shape_cast %56 : vector<1x288x128xbf16> to vector<288x128xbf16>
    %c8 = arith.constant 8 : index
    %c0_52 = arith.constant 0 : index
    %c0_53 = arith.constant 0 : index
    %58 = vector.load %arg2[%c8, %c0_52, %c0_53] : memref<9x128x128xbf16, #tpu.memory_space<vmem>>, vector<1x128x128xbf16>
    %59 = vector.shape_cast %58 : vector<1x128x128xbf16> to vector<128x128xbf16>
    %cst_54 = arith.constant dense<0.000000e+00> : vector<288x128xf32>
    %60 = tpu.matmul %57, %59, %cst_54 {dimension_numbers = #tpu.dot_dimension_numbers<[1], [0], [0], [1], [0, 0, 1, 1], [], []>} : vector<288x128xbf16>, vector<128x128xbf16>, vector<288x128xf32> -> vector<288x128xf32>
    %61 = arith.addf %55, %60 : vector<288x128xf32>
    %cst_55 = arith.constant 0.000000e+00 : f32
    %62 = vector.broadcast %cst_55 : f32 to vector<288x128xf32>
    %63 = arith.maximumf %61, %62 : vector<288x128xf32>
    %c0_56 = arith.constant 0 : index
    %c0_57 = arith.constant 0 : index
    %64 = vector.load %arg6[%c0_56, %c0_57] : memref<288x1xf32, #tpu.memory_space<vmem>>, vector<288x1xf32>
    %65 = vector.broadcast %64 : vector<288x1xf32> to vector<288x128xf32>
    %66 = arith.mulf %63, %65 : vector<288x128xf32>
    %67 = arith.truncf %66 : vector<288x128xf32> to vector<288x128xbf16>
    %c24_58 = arith.constant 24 : index
    %c0_59 = arith.constant 0 : index
    %68 = vector.load %arg8[%c24_58, %c0_59] : memref<336x128xbf16, #tpu.memory_space<vmem>>, vector<288x128xbf16>
    tpu.vector_store %arg8[%c24_58, %c0_59], %67 {strides = array<i32>} : memref<336x128xbf16, #tpu.memory_space<vmem>>, vector<288x128xbf16>,
    %cst_60 = arith.constant 0.000000e+00 : f32
    %69 = vector.broadcast %cst_60 : f32 to vector<288x128xf32>
    %c0_61 = arith.constant 0 : index
    %c0_62 = arith.constant 0 : index
    %70 = vector.load %arg5[%c0_61, %c0_62] : memref<1x128xf32, #tpu.memory_space<vmem>>, vector<1x128xf32>
    %71 = vector.broadcast %70 : vector<1x128xf32> to vector<288x128xf32>
    %72 = arith.addf %69, %71 : vector<288x128xf32>
    %c5_63 = arith.constant 5 : index
    %c0_64 = arith.constant 0 : index
    %73 = vector.load %arg8[%c5_63, %c0_64] : memref<336x128xbf16, #tpu.memory_space<vmem>>, vector<288x128xbf16>
    %c0_65 = arith.constant 0 : index
    %c0_66 = arith.constant 0 : index
    %c0_67 = arith.constant 0 : index
    %74 = vector.load %arg3[%c0_65, %c0_66, %c0_67] : memref<9x128x128xbf16, #tpu.memory_space<vmem>>, vector<1x128x128xbf16>
    %75 = vector.shape_cast %74 : vector<1x128x128xbf16> to vector<128x128xbf16>
    %cst_68 = arith.constant dense<0.000000e+00> : vector<288x128xf32>
    %76 = tpu.matmul %73, %75, %cst_68 {dimension_numbers = #tpu.dot_dimension_numbers<[1], [0], [0], [1], [0, 0, 1, 1], [], []>} : vector<288x128xbf16>, vector<128x128xbf16>, vector<288x128xf32> -> vector<288x128xf32>
    %77 = arith.addf %72, %76 : vector<288x128xf32>
    %c6_69 = arith.constant 6 : index
    %c0_70 = arith.constant 0 : index
    %78 = vector.load %arg8[%c6_69, %c0_70] : memref<336x128xbf16, #tpu.memory_space<vmem>>, vector<288x128xbf16>
    %c1_71 = arith.constant 1 : index
    %c0_72 = arith.constant 0 : index
    %c0_73 = arith.constant 0 : index
    %79 = vector.load %arg3[%c1_71, %c0_72, %c0_73] : memref<9x128x128xbf16, #tpu.memory_space<vmem>>, vector<1x128x128xbf16>
    %80 = vector.shape_cast %79 : vector<1x128x128xbf16> to vector<128x128xbf16>
    %cst_74 = arith.constant dense<0.000000e+00> : vector<288x128xf32>
    %81 = tpu.matmul %78, %80, %cst_74 {dimension_numbers = #tpu.dot_dimension_numbers<[1], [0], [0], [1], [0, 0, 1, 1], [], []>} : vector<288x128xbf16>, vector<128x128xbf16>, vector<288x128xf32> -> vector<288x128xf32>
    %82 = arith.addf %77, %81 : vector<288x128xf32>
    %c7_75 = arith.constant 7 : index
    %c0_76 = arith.constant 0 : index
    %83 = vector.load %arg8[%c7_75, %c0_76] : memref<336x128xbf16, #tpu.memory_space<vmem>>, vector<288x128xbf16>
    %c2_77 = arith.constant 2 : index
    %c0_78 = arith.constant 0 : index
    %c0_79 = arith.constant 0 : index
    %84 = vector.load %arg3[%c2_77, %c0_78, %c0_79] : memref<9x128x128xbf16, #tpu.memory_space<vmem>>, vector<1x128x128xbf16>
    %85 = vector.shape_cast %84 : vector<1x128x128xbf16> to vector<128x128xbf16>
    %cst_80 = arith.constant dense<0.000000e+00> : vector<288x128xf32>
    %86 = tpu.matmul %83, %85, %cst_80 {dimension_numbers = #tpu.dot_dimension_numbers<[1], [0], [0], [1], [0, 0, 1, 1], [], []>} : vector<288x128xbf16>, vector<128x128xbf16>, vector<288x128xf32> -> vector<288x128xf32>
    %87 = arith.addf %82, %86 : vector<288x128xf32>
    %c23_81 = arith.constant 23 : index
    %c0_82 = arith.constant 0 : index
    %88 = vector.load %arg8[%c23_81, %c0_82] : memref<336x128xbf16, #tpu.memory_space<vmem>>, vector<288x128xbf16>
    %c3_83 = arith.constant 3 : index
    %c0_84 = arith.constant 0 : index
    %c0_85 = arith.constant 0 : index
    %89 = vector.load %arg3[%c3_83, %c0_84, %c0_85] : memref<9x128x128xbf16, #tpu.memory_space<vmem>>, vector<1x128x128xbf16>
    %90 = vector.shape_cast %89 : vector<1x128x128xbf16> to vector<128x128xbf16>
    %cst_86 = arith.constant dense<0.000000e+00> : vector<288x128xf32>
    %91 = tpu.matmul %88, %90, %cst_86 {dimension_numbers = #tpu.dot_dimension_numbers<[1], [0], [0], [1], [0, 0, 1, 1], [], []>} : vector<288x128xbf16>, vector<128x128xbf16>, vector<288x128xf32> -> vector<288x128xf32>
    %92 = arith.addf %87, %91 : vector<288x128xf32>
    %c24_87 = arith.constant 24 : index
    %c0_88 = arith.constant 0 : index
    %93 = vector.load %arg8[%c24_87, %c0_88] : memref<336x128xbf16, #tpu.memory_space<vmem>>, vector<288x128xbf16>
    %c4_89 = arith.constant 4 : index
    %c0_90 = arith.constant 0 : index
    %c0_91 = arith.constant 0 : index
    %94 = vector.load %arg3[%c4_89, %c0_90, %c0_91] : memref<9x128x128xbf16, #tpu.memory_space<vmem>>, vector<1x128x128xbf16>
    %95 = vector.shape_cast %94 : vector<1x128x128xbf16> to vector<128x128xbf16>
    %cst_92 = arith.constant dense<0.000000e+00> : vector<288x128xf32>
    %96 = tpu.matmul %93, %95, %cst_92 {dimension_numbers = #tpu.dot_dimension_numbers<[1], [0], [0], [1], [0, 0, 1, 1], [], []>} : vector<288x128xbf16>, vector<128x128xbf16>, vector<288x128xf32> -> vector<288x128xf32>
    %97 = arith.addf %92, %96 : vector<288x128xf32>
    %c25_93 = arith.constant 25 : index
    %c0_94 = arith.constant 0 : index
    %98 = vector.load %arg8[%c25_93, %c0_94] : memref<336x128xbf16, #tpu.memory_space<vmem>>, vector<288x128xbf16>
    %c5_95 = arith.constant 5 : index
    %c0_96 = arith.constant 0 : index
    %c0_97 = arith.constant 0 : index
    %99 = vector.load %arg3[%c5_95, %c0_96, %c0_97] : memref<9x128x128xbf16, #tpu.memory_space<vmem>>, vector<1x128x128xbf16>
    %100 = vector.shape_cast %99 : vector<1x128x128xbf16> to vector<128x128xbf16>
    %cst_98 = arith.constant dense<0.000000e+00> : vector<288x128xf32>
    %101 = tpu.matmul %98, %100, %cst_98 {dimension_numbers = #tpu.dot_dimension_numbers<[1], [0], [0], [1], [0, 0, 1, 1], [], []>} : vector<288x128xbf16>, vector<128x128xbf16>, vector<288x128xf32> -> vector<288x128xf32>
    %102 = arith.addf %97, %101 : vector<288x128xf32>
    %c41_99 = arith.constant 41 : index
    %c0_100 = arith.constant 0 : index
    %103 = vector.load %arg8[%c41_99, %c0_100] : memref<336x128xbf16, #tpu.memory_space<vmem>>, vector<288x128xbf16>
    %c6_101 = arith.constant 6 : index
    %c0_102 = arith.constant 0 : index
    %c0_103 = arith.constant 0 : index
    %104 = vector.load %arg3[%c6_101, %c0_102, %c0_103] : memref<9x128x128xbf16, #tpu.memory_space<vmem>>, vector<1x128x128xbf16>
    %105 = vector.shape_cast %104 : vector<1x128x128xbf16> to vector<128x128xbf16>
    %cst_104 = arith.constant dense<0.000000e+00> : vector<288x128xf32>
    %106 = tpu.matmul %103, %105, %cst_104 {dimension_numbers = #tpu.dot_dimension_numbers<[1], [0], [0], [1], [0, 0, 1, 1], [], []>} : vector<288x128xbf16>, vector<128x128xbf16>, vector<288x128xf32> -> vector<288x128xf32>
    %107 = arith.addf %102, %106 : vector<288x128xf32>
    %c42_105 = arith.constant 42 : index
    %c0_106 = arith.constant 0 : index
    %108 = vector.load %arg8[%c42_105, %c0_106] : memref<336x128xbf16, #tpu.memory_space<vmem>>, vector<288x128xbf16>
    %c7_107 = arith.constant 7 : index
    %c0_108 = arith.constant 0 : index
    %c0_109 = arith.constant 0 : index
    %109 = vector.load %arg3[%c7_107, %c0_108, %c0_109] : memref<9x128x128xbf16, #tpu.memory_space<vmem>>, vector<1x128x128xbf16>
    %110 = vector.shape_cast %109 : vector<1x128x128xbf16> to vector<128x128xbf16>
    %cst_110 = arith.constant dense<0.000000e+00> : vector<288x128xf32>
    %111 = tpu.matmul %108, %110, %cst_110 {dimension_numbers = #tpu.dot_dimension_numbers<[1], [0], [0], [1], [0, 0, 1, 1], [], []>} : vector<288x128xbf16>, vector<128x128xbf16>, vector<288x128xf32> -> vector<288x128xf32>
    %112 = arith.addf %107, %111 : vector<288x128xf32>
    %c43_111 = arith.constant 43 : index
    %c0_112 = arith.constant 0 : index
    %113 = vector.load %arg8[%c43_111, %c0_112] : memref<336x128xbf16, #tpu.memory_space<vmem>>, vector<288x128xbf16>
    %c8_113 = arith.constant 8 : index
    %c0_114 = arith.constant 0 : index
    %c0_115 = arith.constant 0 : index
    %114 = vector.load %arg3[%c8_113, %c0_114, %c0_115] : memref<9x128x128xbf16, #tpu.memory_space<vmem>>, vector<1x128x128xbf16>
    %115 = vector.shape_cast %114 : vector<1x128x128xbf16> to vector<128x128xbf16>
    %cst_116 = arith.constant dense<0.000000e+00> : vector<288x128xf32>
    %116 = tpu.matmul %113, %115, %cst_116 {dimension_numbers = #tpu.dot_dimension_numbers<[1], [0], [0], [1], [0, 0, 1, 1], [], []>} : vector<288x128xbf16>, vector<128x128xbf16>, vector<288x128xf32> -> vector<288x128xf32>
    %117 = arith.addf %112, %116 : vector<288x128xf32>
    %c0_117 = arith.constant 0 : index
    %c24_118 = arith.constant 24 : index
    %c0_119 = arith.constant 0 : index
    %118 = vector.load %arg1[%c0_117, %c24_118, %c0_119] : memref<1x336x128xbf16, #tpu.memory_space<vmem>>, vector<1x288x128xbf16>
    %119 = vector.shape_cast %118 : vector<1x288x128xbf16> to vector<288x128xbf16>
    %120 = arith.extf %119 : vector<288x128xbf16> to vector<288x128xf32>
    %121 = arith.addf %117, %120 : vector<288x128xf32>
    %cst_120 = arith.constant 0.000000e+00 : f32
    %122 = vector.broadcast %cst_120 : f32 to vector<288x128xf32>
    %123 = arith.maximumf %121, %122 : vector<288x128xf32>
    %c0_121 = arith.constant 0 : index
    %c0_122 = arith.constant 0 : index
    %c0_123 = arith.constant 0 : index
    %124 = vector.load %arg7[%c0_121, %c0_122, %c0_123] : memref<1x288x128xf32, #tpu.memory_space<vmem>>, vector<1x288x128xf32>
    %125 = vector.shape_cast %124 : vector<1x288x128xf32> to vector<288x128xf32>
    %126 = vector.shape_cast %123 : vector<288x128xf32> to vector<1x288x128xf32>
    tpu.vector_store %arg7[%c0_121, %c0_122, %c0_123], %126 {strides = array<i32>} : memref<1x288x128xf32, #tpu.memory_space<vmem>>, vector<1x288x128xf32>,
    return
  }
  func.func @transform_0(%arg0: i32) -> (i32, i32, i32) {
    %c0_i32 = arith.constant 0 : i32
    %c0_i32_0 = arith.constant 0 : i32
    %c0_i32_1 = arith.constant 0 : i32
    return %arg0, %c0_i32, %c0_i32_0 : i32, i32, i32
  }
  func.func @transform_1(%arg0: i32) -> (i32, i32, i32) {
    %c0_i32 = arith.constant 0 : i32
    %c0_i32_0 = arith.constant 0 : i32
    %c0_i32_1 = arith.constant 0 : i32
    %c0_i32_2 = arith.constant 0 : i32
    return %c0_i32, %c0_i32_0, %c0_i32_1 : i32, i32, i32
  }
  func.func @transform_2(%arg0: i32) -> (i32, i32, i32) {
    %c0_i32 = arith.constant 0 : i32
    %c0_i32_0 = arith.constant 0 : i32
    %c0_i32_1 = arith.constant 0 : i32
    %c0_i32_2 = arith.constant 0 : i32
    return %c0_i32, %c0_i32_0, %c0_i32_1 : i32, i32, i32
  }
  func.func @transform_3(%arg0: i32) -> (i32, i32) {
    %c0_i32 = arith.constant 0 : i32
    %c0_i32_0 = arith.constant 0 : i32
    %c0_i32_1 = arith.constant 0 : i32
    return %c0_i32, %c0_i32_0 : i32, i32
  }
  func.func @transform_4(%arg0: i32) -> (i32, i32) {
    %c0_i32 = arith.constant 0 : i32
    %c0_i32_0 = arith.constant 0 : i32
    %c0_i32_1 = arith.constant 0 : i32
    return %c0_i32, %c0_i32_0 : i32, i32
  }
  func.func @transform_5(%arg0: i32) -> (i32, i32) {
    %c0_i32 = arith.constant 0 : i32
    %c0_i32_0 = arith.constant 0 : i32
    %c0_i32_1 = arith.constant 0 : i32
    return %c0_i32, %c0_i32_0 : i32, i32
  }
  func.func @transform_6(%arg0: i32) -> (i32, i32, i32) {
    %c0_i32 = arith.constant 0 : i32
    %c0_i32_0 = arith.constant 0 : i32
    %c0_i32_1 = arith.constant 0 : i32
    return %arg0, %c0_i32, %c0_i32_0 : i32, i32, i32
  }
}

</mosaic_0001>

<bundles_post_ra>
// kernel: tpu_custom_call.1
= control target key start
LH: loop header
LB: loop body
LE: loop exit
PB: predicated region body
PF: predicated region fallthrough
CT: control target
= control target key end

     0   :  { %11 = vsyncpa [#allocation4], 0  ;;  %s14368_s0 = inlined_call_operand.hbm [shape: bf16[2,336,128], index: 0, kind: input, shape index: {}]   ;;  %s14369_s1 = inlined_call_operand.hbm [shape: bf16[9,128,128], index: 1, kind: input, shape index: {}]   ;;  %s14370_s2 = inlined_call_operand.hbm [shape: bf16[9,128,128], index: 2, kind: input, shape index: {}]   ;;  %s14371_s3 = inlined_call_operand.vmem [shape: f32[1,128], index: 3, kind: input, shape index: {}]   ;;  %s14372_s4 = inlined_call_operand.vmem [shape: f32[1,128], index: 4, kind: input, shape index: {}]   ;;  %s14373_s5 = inlined_call_operand.vmem [shape: f32[288,1], index: 5, kind: input, shape index: {}]   ;;  %s14374_s6 = inlined_call_operand.hbm [shape: f32[2,288,128], index: 6, kind: output, shape index: {}]  }
   0x1   :  { %13 = vsyncpa [#allocation4 + $0x1], 0 }
   0x2   :  { %14 = vsyncpa [#allocation7], 0 }
   0x3   :  { %15 = vsyncpa [#allocation5], 0 }
   0x4   :  { %17 = vsyncpa [#allocation5 + $0x1], 0  ;;  %s11685_s21 = smov 0   ;;  %s11687_s22 = smov 0  }
   0x5   :  { %s11689_s23 = smov 0   ;;  %s11691_s24 = smov 0  }
   0x6 LB: > { %s11706_s25 = sadd.s32 4294967295, %s11639_s24   ;;  %s8769_s26 = sadd.s32 4294967294, %s11639_s24   ;;  %s11639_s24 = sphi %s11691_s24, %s14666_s24   ;;  %s11635_s23 = sphi %s11689_s23, %s14665_s23   ;;  %s11631_s22 = sphi %s11687_s22, %s14664_s22   ;;  %s11627_s21 = sphi %s11685_s21, %s14663_s21  }
   0x7   : > { %p43_p0 = scmp.ne.s32.totalorder %s11631_s22, %s11627_s21  ;;  %p14375_p1 = scmp.eq.s32.totalorder %s11706_s25, 0 }
   0x8   : > { %p178_p3 = scmp.eq.s32.totalorder %s8769_s26, 1  ;;  %p8770_p5 = scmp.ge.s32.totalorder %s11639_s24, 1 }
   0x9   : > { %p11715_p4 = por %p14375_p1, %p43_p0  ;;  %p185_p7 = scmp.lt.s32.totalorder %s11639_s24, 3 }
   0xa   : > { %p11720_p6 = por %p178_p3, %p43_p0  ;;  %s11641_s30 = smov [#allocation6]  }
   0xb   : > { %s14450_s27 = scalar_select %p11715_p4, 1, 0 }
   0xc   : > { %s14451_s28 = scalar_select %p11720_p6, 1, 0 }
   0xd   : > { %p11725_p8 = pnand %p8770_p5, %p185_p7  ;;  %s197_s7 = sshll.u32 %s11641_s30, 4  ;;  %s11729_s7 = int_to_ptr.vmem [resolvable:$true] %s197_s7 }
   0xe   : > { %s11642_s9 = smov [#allocation8]   ;;  %s11483_s13 = scalar_lea.hbm %s14369_s1, 9216 }
   0xf   : > { %p11179_p9 = pneg %p11725_p8  ;;  %s210_s10 = sshll.u32 %s11642_s9, 4  ;;  %s11740_s10 = int_to_ptr.vmem [resolvable:$true] %s210_s10 }
  0x10   : > { %p11484_p12 = scmp.ne.s32.totalorder %s14369_s1, %s11483_s13  ;;  %p11490_p5 = scmp.lt.u32.totalorder %s11483_s13, %s14369_s1 }
  0x11   : > { %p11736_p11 = pnand %p11179_p9, %p14375_p1 }
  0x13   : > { %p11485_p13 = pneg %p11736_p11 }
  0x15   : > { %p11486_p0 = pnand %p11485_p13, %p11484_p12 }
  0x17   : > { %p11487_p3 = pneg %p11486_p0 }
  0x19   : > { %p11492_p7 = pnand %p11490_p5, %p11487_p3 }
  0x1b   : > { %11495 = shalt.err (!%p11492_p7)
}
  0x1c   : > { %s11496_s18 = scalar_lea.vmem %s11729_s7, 9216  ;;  %p11504_p2 = scmp.lt.s32.totalorder %s11729_s7, %s11729_s7 }
  0x1d   : > { %p11497_p9 = scmp.ne.s32.totalorder %s11729_s7, %s11496_s18  ;;  %p11505_p12 = scmp.lt.s32.totalorder %s11496_s18, %s11496_s18 }
  0x1f   : > { %p11499_p10 = pnand %p11497_p9, %p11485_p13  ;;  %p11506_p0 = por %p11505_p12, %p11504_p2 }
  0x21   : > { %p11500_p1 = pneg %p11499_p10 }
  0x23   : > { %p11507_p6 = pnand %p11506_p0, %p11500_p1 }
  0x25   : > { %11510 = shalt.err (!%p11507_p6)
}
  0x26   : > { %s14376_s19 = smov 64   ;;  %s14377_s20 = smov 4  }
  0x27   : > { %11182 = dma.hbm_to_vmem [thread:$0]  (!%p11736_p11), %s14369_s1, 9216, %s11729_s7, [#allocation7], %s14376_s19, %s14376_s19, %s14377_s20  }
  0x28   : > { %s11511_s12 = scalar_lea.hbm %s14370_s2, 9216 }
  0x29   : > { %p11512_p1 = scmp.ne.s32.totalorder %s14370_s2, %s11511_s12  ;;  %p11518_p10 = scmp.lt.u32.totalorder %s11511_s12, %s14370_s2 }
  0x2b   : > { %p11514_p2 = pnand %p11512_p1, %p11485_p13 }
  0x2d   : > { %p11515_p6 = pneg %p11514_p2 }
  0x2f   : > { %p11520_p3 = pnand %p11518_p10, %p11515_p6 }
  0x31   : > { %11523 = shalt.err (!%p11520_p3)
}
  0x32   : > { %s11524_s7 = scalar_lea.vmem %s11740_s10, 9216  ;;  %p11532_p12 = scmp.lt.s32.totalorder %s11740_s10, %s11740_s10 }
  0x33   : > { %p11525_p5 = scmp.ne.s32.totalorder %s11740_s10, %s11524_s7  ;;  %p11533_p0 = scmp.lt.s32.totalorder %s11524_s7, %s11524_s7 }
  0x35   : > { %p11527_p7 = pnand %p11525_p5, %p11485_p13  ;;  %p11534_p1 = por %p11533_p0, %p11532_p12 }
  0x37   : > { %p11528_p9 = pneg %p11527_p7 }
  0x39   : > { %p11535_p2 = pnand %p11534_p1, %p11528_p9 }
  0x3b   : > { %11538 = shalt.err (!%p11535_p2)
}
  0x3c   : > { %11185 = dma.hbm_to_vmem [thread:$0]  (!%p11736_p11), %s14370_s2, 9216, %s11740_s10, [#allocation7], %s14376_s19, %s14376_s19, %s14377_s20  }
  0x3d   : > { %s11801_s8 = sadd.s32 1, %s11639_s24   ;;  %s30_s26 = sadd.s32 1, %s11635_s23 }
  0x3e   : > { %s27_s30 = ssub.s32 %s11639_s24, %s11801_s8  ;;  %p37_p13 = scmp.ne.s32.totalorder %s11635_s23, %s11631_s22 }
  0x3f   : > { %p28_p6 = scmp.eq.s32.totalorder %s27_s30, 0  ;;  %p38_p10 = scmp.eq.s32.totalorder %s11639_s24, 0 }
  0x40   : > { %p14454_p3 = scmp.eq.s32.totalorder %s11706_s25, 1  ;;  %p11196_p7 = scmp.lt.s32.totalorder %s11639_s24, 2 }
  0x41   : > { %s11817_s11 = scalar_select %p28_p6, %s11635_s23, %s30_s26  }
  0x42   : > { %p11811_p5 = por %p14454_p3, %p37_p13  ;;  %p39_p9 = por %p38_p10, %p37_p13 }
  0x43   : > { %s233_s12 = sand.u32 1, %s11635_s23   ;;  %s11163_s10 = smul.u32 2688, %s11639_s24 }
  0x44   : > { %s14455_s9 = scalar_select %p11811_p5, 1, 0 }
  0x45   : > { %s11162_s13 = smul.u32 168, %s233_s12  ;;  %p11821_p11 = pnand %p11196_p7, %p39_p9 }
  0x46   : > { %s11828_s7 = scalar_lea.hbm %s14368_s0, %s11163_s10  ;;  %s11832_s26 = scalar_lea.sflag [#allocation4], %s233_s12 }
  0x47   : > { %s237_s17 = scalar_lea.vmem [#allocation3], %s11162_s13  ;;  %s11539_s30 = scalar_lea.hbm %s11828_s7, 2688 }
  0x48   : > { %s244_s18 = sshll.u32 %s237_s17, 4  ;;  %p11540_p12 = scmp.ne.s32.totalorder %s11828_s7, %s11539_s30  ;;  %s11830_s18 = int_to_ptr.vmem [resolvable:$true] %s244_s18 }
  0x49   : > { %p11541_p0 = pneg %p11821_p11  ;;  %s11544_s16 = scalar_lea.hbm %s14368_s0, 5376 }
  0x4a   : > { %p11545_p13 = scmp.lt.u32.totalorder %s11828_s7, %s14368_s0  ;;  %p11546_p6 = scmp.lt.u32.totalorder %s11544_s16, %s11539_s30 }
  0x4b   : > { %p11542_p1 = pnand %p11541_p0, %p11540_p12  ;;  %p11548_p3 = scmp.lt.u32.totalorder %s11539_s30, %s11828_s7 }
  0x4c   : > { %p11547_p10 = por %p11546_p6, %p11545_p13 }
  0x4d   : > { %p11543_p2 = pneg %p11542_p1 }
  0x4e   : > { %p11549_p7 = por %p11548_p3, %p11547_p10 }
  0x50   : > { %p11550_p9 = pnand %p11549_p7, %p11543_p2 }
  0x52   : > { %11553 = shalt.err (!%p11550_p9)
}
  0x53   : > { %s11554_s12 = scalar_lea.vmem %s11830_s18, 2688  ;;  %s11645_s13 = smov [#allocation3]  }
  0x54   : > { %p11555_p12 = scmp.ne.s32.totalorder %s11830_s18, %s11554_s12  ;;  %s11559_s17 = sshll.u32 %s11645_s13, 4  ;;  %s11560_s17 = int_to_ptr.vmem [resolvable:$false] %s11559_s17 }
  0x55   : > { %s11561_s19 = scalar_lea.vmem %s11560_s17, 5376  ;;  %p11562_p4 = scmp.lt.s32.totalorder %s11830_s18, %s11560_s17 }
  0x56   : > { %p11557_p1 = pnand %p11555_p12, %p11541_p0  ;;  %p11563_p13 = scmp.lt.s32.totalorder %s11561_s19, %s11554_s12 }
  0x58   : > { %p11558_p5 = pneg %p11557_p1  ;;  %p11564_p6 = por %p11563_p13, %p11562_p4 }
  0x5a   : > { %p11565_p10 = pnand %p11564_p6, %p11558_p5 }
  0x5c   : > { %11568 = shalt.err (!%p11565_p10)
}
  0x5d   : > { %s14457_s20 = smov 4   ;;  %s14458_s30 = smov 64  }
  0x5e   : > { %11189 = dma.hbm_to_vmem [thread:$0]  (!%p11821_p11), %s11828_s7, 2688, %s11830_s18, %s11832_s26, %s14458_s30, %s14458_s30, %s14457_s20  }
  0x5f   : > { %256 = sbr.rel (%p11725_p8) target bundleno = 1838 (0x72e), region = 44 }
  0x66   : > { %s11866_s10 = sand.u32 1, %s11631_s22   ;;  %p14459_p4 = scmp.ne.s32.totalorder %s14450_s27, 0 }
  0x67   : > { %s11164_s15 = smul.u32 168, %s11866_s10  ;;  %s259_s16 = scalar_lea.sflag [#allocation4], %s11866_s10 }
  0x69   : > { %s11870_s12 = scalar_lea.vmem [#allocation3], %s11164_s15 }
  0x6a   : > { %11614 = dma.done.wait (%p14459_p4), %s259_s16, 2688  }
  0x6b   : > { %11616 = vsyncadd (%p14459_p4), %s259_s16, 4294964608  ;;  %p14460_p5 = scmp.eq.s32.totalorder %s11706_s25, 0 }
  0x6d   : > { %11618 = dma.done.wait (%p14460_p5), [#allocation7], 18432   ;;  %p14461_p8 = pmov %p14460_p5 }
  0x6e   : > { %v11241_v0 = vld [vmem:[#allocation6] sm:$0xff]   ;;  %v11242_v1 = vld [vmem:[#allocation6 + $0x8] sm:$0xff]   ;;  %v11243_v2 = vld [vmem:[#allocation6 + $0x10] sm:$0xff]   ;;  %vm458_vm0 = vsmask.f32 5376  ;;  %vm929_vm1 = vcmask 1044480  }
  0x6f   : > { %11620 = vsyncadd (%p14461_p8), [#allocation7], 4294948864  ;;  %9578 = vmatprep.subr.bf16.mxu0 %v11241_v0  ;;  %v11244_v3 = vld [vmem:[#allocation6 + $0x18] sm:$0xff]   ;;  %v11889_v8 = vld [vmem:[%s11870_s12 + $0x10] sm:$0xff]   ;;  %vm1267_vm2 = vsmask.f32 4352 }
  0x70   : > { %9579 = vmatpush3.bf16.msra.mxu0 %v11241_v0  ;;  %v312_v4 = vld [vmem:[%s11870_s12] sm:$0xc]  ;;  %v11882_v5 = vld [vmem:[%s11870_s12 + $0x4] sm:$0xf]  ;;  %v11886_v7 = vld [vmem:[%s11870_s12 + $0x8] sm:$0xff]   ;;  %v14409_v20 = vshrl.u32 %v11889_v8, 16 }
  0x71   : > { %9580 = vmatprep.subr.bf16.mxu0 %v11242_v1  ;;  %v8779_v6 = vcombine.low %v312_v4, %v11882_v5  ;;  %v468_v11 = vshrl.u32 %v11886_v7, 16  ;;  %v471_v12 = vshll.u32 %v11886_v7, 16  ;;  %v11245_v13 = vld [vmem:[#allocation6 + $0x20] sm:$0xff]   ;;  %v11246_v21 = vld [vmem:[#allocation6 + $0x28] sm:$0xff]   ;;  %v14408_v24 = vshll.u32 %v11889_v8, 16  ;;  %v11904_v25 = vld [vmem:[%s11870_s12 + $0x20] sm:$0xff]  }
  0x72   : > { %v11899_v22 = vld [vmem:[%s11870_s12 + $0x18] sm:$0xff]   ;;  %v479_v27 = vrot.slane %v14409_v20, 2  ;;  %v11909_v28 = vld [vmem:[%s11870_s12 + $0x28] sm:$0xff]   ;;  %v14405_v32 = vshrl.u32 %v11904_v25, 16  ;;  %v14404_v33 = vshll.u32 %v11904_v25, 16  ;;  %v11918_v34 = vld [vmem:[%s11870_s12 + $0x30] sm:$0xff]  }
  0x73   : > { %v460_v9 = vshrl.u32 %v8779_v6, 16  ;;  %v463_v10 = vshll.u32 %v8779_v6, 16  ;;  %v470_v16 = vrot.slane %v468_v11, 2  ;;  %v473_v17 = vrot.slane %v471_v12, 3  ;;  %v11247_v26 = vld [vmem:[#allocation6 + $0x30] sm:$0xff]   ;;  %v11248_v38 = vld [vmem:[#allocation6 + $0x38] sm:$0xff]  }
  0x74   : > { %9581 = vmatpush3.bf16.msra.mxu0 %v11242_v1  ;;  %v14407_v29 = vshrl.u32 %v11899_v22, 16  ;;  %v14406_v30 = vshll.u32 %v11899_v22, 16  ;;  %v482_v31 = vrot.slane %v14408_v24, 3  ;;  %v14403_v35 = vshrl.u32 %v11909_v28, 16  ;;  %v11923_v37 = vld [vmem:[%s11870_s12 + $0x38] sm:$0xff]   ;;  %v11930_v41 = vld [vmem:[%s11870_s12 + $0x40] sm:$0xff]  }
  0x75   : > { %9582 = vmatprep.subr.bf16.mxu0 %v11243_v2  ;;  %v462_v14 = vrot.slane %v460_v9, 2  ;;  %v465_v15 = vrot.slane %v463_v10, 3  ;;  %v474_v19 = vor.u32 %v473_v17, %v470_v16  ;;  %v14402_v36 = vshll.u32 %v11909_v28, 16  ;;  %v11252_v44 = vld [vmem:[#allocation6 + $0x40] sm:$0xff]   ;;  %v11255_v58 = vld [vmem:[#allocation6 + $0x48] sm:$0xff]   ;;  %v11971_v9 = vld [vmem:[%s11870_s12 + $0x60] sm:$0xff]  }
  0x76   : > { %v488_v39 = vrot.slane %v14407_v29, 2  ;;  %v491_v40 = vrot.slane %v14406_v30, 3  ;;  %v14401_v42 = vshrl.u32 %v11918_v34, 16  ;;  %v483_v43 = vor.u32 %v482_v31, %v479_v27  ;;  %v11949_v56 = vld [vmem:[%s11870_s12 + $0x48] sm:$0xff]   ;;  %v11955_v60 = vld [vmem:[%s11870_s12 + $0x50] sm:$0xff]   ;;  %v11968_v6 = vld [vmem:[%s11870_s12 + $0x58] sm:$0xff]  }
  0x77   : > { %v466_v18 = vor.u32 %v465_v15, %v462_v14  ;;  %v497_v45 = vrot.slane %v14405_v32, 2  ;;  %v500_v46 = vrot.slane %v14404_v33, 3  ;;  %v14400_v47 = vshll.u32 %v11918_v34, 16  ;;  %v11258_v14 = vld [vmem:[#allocation6 + $0x50] sm:$0xff]   ;;  %v11274_v20 = vld [vmem:[#allocation6 + $0x78] sm:$0xff]   ;;  %s11165_s15 = smul.u32 288, %s11866_s10 }
  0x78   : > { %9583 = vmatpush3.bf16.msra.mxu0 %v11243_v2  ;;  %v506_v48 = vrot.slane %v14403_v35, 2  ;;  %v509_v49 = vrot.slane %v14402_v36, 3  ;;  %v14398_v50 = vshrl.u32 %v11923_v37, 16  ;;  %v14396_v51 = vshll.u32 %v11923_v37, 16  ;;  %v11989_v31 = vld [vmem:[%s11870_s12 + $0x78] sm:$0xff]   ;;  %p14660_p0 = scmp.ne.s32.totalorder %s14455_s9, 0 }
  0x79   : > { %9584 = vmatprep.subr.bf16.mxu0 %v11244_v3  ;;  %v475_v23 = vsel %vm458_vm0, %v466_v18, %v474_v19  ;;  %v492_v52 = vor.u32 %v491_v40, %v488_v39  ;;  %v14392_v53 = vshrl.u32 %v11930_v41, 16  ;;  %v14390_v54 = vshll.u32 %v11930_v41, 16  ;;  %v11981_v18 = vld [vmem:[%s11870_s12 + $0x70] sm:$0xff]   ;;  %s14233_s16 = scalar_lea.vmem [#allocation9], %s11165_s15  ;;  %s11647_s26 = smov [#allocation9]  }
  0x7a   : > { %9594 = vmatprep.mubr.bf16.mxu0 %v475_v23  ;;  %v515_v55 = vrot.slane %v14401_v42, 2  ;;  %v931_v57 = vrot.slane %v11886_v7, 3  ;;  %v518_v59 = vrot.slane %v14400_v47, 3  ;;  %v484_v61 = vsel %vm458_vm0, %v474_v19, %v483_v43  ;;  %s8677_s27 = sshll.u32 %s14233_s16, 4  ;;  %s11573_s13 = sshll.u32 %s11647_s26, 4  ;;  %s14322_s27 = int_to_ptr.vmem [resolvable:$true] %s8677_s27  ;;  %s11574_s13 = int_to_ptr.vmem [resolvable:$false] %s11573_s13 }
  0x7b   : > { %v501_v62 = vor.u32 %v500_v46, %v497_v45  ;;  %v524_v63 = vrot.slane %v14398_v50, 2  ;;  %v527_v0 = vrot.slane %v14396_v51, 3  ;;  %v493_v1 = vsel %vm458_vm0, %v483_v43, %v492_v52  ;;  %v11261_v45 = vld [vmem:[#allocation6 + $0x58] sm:$0xff]   ;;  %s11569_s18 = scalar_lea.vmem %s14322_s27, 4608  ;;  %s11575_s17 = scalar_lea.vmem %s11574_s13, 9216 }
  0x7c   : > { %9585 = vmatpush3.bf16.msra.mxu0 %v11244_v3  ;;  %v510_v2 = vor.u32 %v509_v49, %v506_v48  ;;  %v533_v3 = vrot.slane %v14392_v53, 2  ;;  %v536_v4 = vrot.slane %v14390_v54, 3  ;;  %v14388_v10 = vshrl.u32 %v11949_v56, 16  ;;  %p11570_p11 = scmp.ne.s32.totalorder %s14322_s27, %s11569_s18  ;;  %p11576_p7 = scmp.lt.s32.totalorder %s14322_s27, %s11574_s13 }
  0x7d   : > { %9586 = vmatprep.subr.bf16.mxu0 %v11245_v13  ;;  %v14385_v15 = vshll.u32 %v11949_v56, 16  ;;  %v14383_v16 = vshrl.u32 %v11955_v60, 16  ;;  %v14380_v17 = vshll.u32 %v11955_v60, 16  ;;  %v502_v19 = vsel %vm458_vm0, %v492_v52, %v501_v62  ;;  %v11998_v52 = vld [vmem:[%s11870_s12 + $0x80] sm:$0xff]   ;;  %p11577_p9 = scmp.lt.s32.totalorder %s11575_s17, %s11569_s18 }
  0x7e   : > { %v14381_v23 = vshrl.u32 %v11968_v6, 16  ;;  %v14384_v27 = vshrl.u32 %v11971_v9, 16  ;;  %v528_v39 = vor.u32 %v527_v0, %v524_v63  ;;  %v14386_v40 = vshll.u32 %v11971_v9, 16  ;;  %p11571_p2 = pnand %p11570_p11, %p14660_p0 }
  0x7f   : > { %v542_v46 = vrot.slane %v14388_v10, 2  ;;  %v14391_v49 = vshrl.u32 %v11981_v18, 16  ;;  %v933_v54 = vrot.slane %v11889_v8, 3  ;;  %v939_v51 = vrot.slane %v11909_v28, 3  ;;  %p11578_p12 = por %p11577_p9, %p11576_p7 }
  0x80   : > { %9587 = vmatpush3.bf16.msra.mxu0 %v11245_v13  ;;  %v11975_v13 = vld [vmem:[%s11870_s12 + $0x68] sm:$0xff]   ;;  %v560_v63 = vrot.slane %v14381_v23, 2  ;;  %v945_v47 = vrot.slane %v11930_v41, 3  ;;  %v947_v50 = vrot.slane %v11949_v56, 3  ;;  %v961_v33 = vrot.slane %v11998_v52, 3  ;;  %p11572_p3 = pneg %p11571_p2 }
  0x81   : > { %9588 = vmatprep.subr.bf16.mxu0 %v11246_v21  ;;  %v14387_v43 = vshrl.u32 %v11975_v13, 16  ;;  %v14389_v48 = vshll.u32 %v11975_v13, 16  ;;  %vm2689_vm3 = vsmask.f32 7424  ;;  %vm3712_vm4 = vcmask 1046528  }
  0x82   : > { %v12117_v35 = vsel %vm929_vm1, %v945_v47, %v947_v50  ;;  %vm4050_vm5 = vsmask.f32 6400  ;;  %vm4739_vm6 = vcmask 1043456   ;;  %vm6896_vm7 = vsmask.f32 3328  ;;  %p11579_p1 = pnand %p11578_p12, %p11572_p3 }
  0x83   : > { %v12024_v23 = vrot.slane %v14387_v43, 2  ;;  %vm7783_vm8 = vcmask 1042432   ;;  %vm8118_vm9 = vsmask.f32 2304 }
  0x84   : > { %9589 = vmatpush3.bf16.msra.mxu0 %v11246_v21  ;;  %v511_v21 = vsel %vm458_vm0, %v501_v62, %v510_v2  ;;  %v14393_v62 = vshll.u32 %v11981_v18, 16 }
  0x85   : > { %9590 = vmatprep.subr.bf16.mxu0 %v11247_v26 }
  0x88   : > { %9591 = vmatpush3.bf16.msra.mxu0 %v11247_v26  ;;  %v14382_v26 = vshll.u32 %v11968_v6, 16 }
  0x89   : > { %9592 = vmatprep.subr.bf16.mxu0 %v11248_v38 }
  0x8a   : > { %v563_v0 = vrot.slane %v14382_v26, 3  ;;  %v12027_v26 = vld [vmem:[%s11870_s12 + $0x88] sm:$0xff]  }
  0x8b   : > { %v963_v32 = vrot.slane %v12027_v26, 3 }
  0x8c   : > { %9593 = vmatpush3.bf16.msra.mxu0 %v11248_v38  ;;  %v519_v38 = vor.u32 %v518_v59, %v515_v55  ;;  %v545_v55 = vrot.slane %v14385_v15, 3  ;;  %v551_v59 = vrot.slane %v14383_v16, 2  ;;  %v11264_v16 = vld [vmem:[#allocation6 + $0x60] sm:$0xff]   ;;  %v14397_v15 = vshrl.u32 %v11998_v52, 16 }
  0x8d   : > { %9630 = vmatprep.subr.bf16.mxu0 %v11252_v44  ;;  %v12103_v42 = vor.u32 %v563_v0, %v560_v63  ;;  %v953_v63 = vrot.slane %v11971_v9, 3  ;;  %v955_v0 = vrot.slane %v11975_v13, 3 }
  0x8e   : > { %v529_v43 = vsel %vm458_vm0, %v519_v38, %v528_v39  ;;  %v12040_v10 = vor.u32 %v545_v55, %v542_v46  ;;  %v935_v55 = vrot.slane %v11899_v22, 3 }
  0x8f   : > { %9595 = vmatmul.mubr.bf16.vlgmr.msra.gmra.mrb[0].mxu0 %v484_v61  ;;  %v554_v61 = vrot.slane %v14380_v17, 3  ;;  %v12020_v17 = vrot.slane %v14386_v40, 3  ;;  %v14399_v40 = vshll.u32 %v11998_v52, 16 }
  0x90   : > { %9631 = vmatpush3.bf16.msra.mxu0 %v11252_v44  ;;  %9598 = vmatprep.mubr.bf16.mxu0 %v493_v1  ;;  %v537_v44 = vor.u32 %v536_v4, %v533_v3  ;;  %v14395_v1 = vshll.u32 %v11989_v31, 16  ;;  %v520_v3 = vsel %vm458_vm0, %v510_v2, %v519_v38  ;;  %v12016_v4 = vrot.slane %v14384_v27, 2 }
  0x91   : > { %9632 = vmatprep.subr.bf16.mxu0 %v11255_v58  ;;  %v12031_v2 = vrot.slane %v14389_v48, 3  ;;  %v12035_v27 = vrot.slane %v14391_v49, 2  ;;  %v908_v48 = vld [vmem:[%s11870_s12] sm:$0x8]  ;;  %v12060_v38 = vor.u32 %v554_v61, %v551_v59  ;;  %v12081_v61 = vsel %vm929_vm1, %v933_v54, %v935_v55 }
  0x92   : > { %v12049_v49 = vsel %vm458_vm0, %v528_v39, %v537_v44  ;;  %v12066_v39 = vsel %vm929_vm1, %v931_v57, %v933_v54  ;;  %v547_v59 = vsel %vm458_vm0, %v537_v44, %v12040_v10  ;;  %v943_v44 = vrot.slane %v11923_v37, 3 }
  0x94   : > { %9633 = vmatpush3.bf16.msra.mxu0 %v11255_v58  ;;  %v14394_v58 = vshrl.u32 %v11989_v31, 16  ;;  %v12114_v36 = vsel %vm929_vm1, %v943_v44, %v945_v47  ;;  %v12133_v47 = vsel %vm929_vm1, %v953_v63, %v955_v0 }
  0x95   : > { %9634 = vmatprep.subr.bf16.mxu0 %v11258_v14  ;;  %14463 = vst [vmem:[#allocation14_spill] sm:$0xff] %v12133_v47 }
  0x96   : > { %v12053_v53 = vrot.slane %v14394_v58, 2  ;;  %v12071_v58 = vrot.slane %v14397_v15, 2  ;;  %v941_v15 = vrot.slane %v11918_v34, 3 }
  0x97   : > { %9599 = vmatmul.mubr.bf16.gmra.mrb[4].mxu0 %v502_v19  ;;  %v12044_v19 = vrot.slane %v14393_v62, 3  ;;  %v11267_v62 = vld [vmem:[#allocation6 + $0x68] sm:$0xff]  }
  0x98   : > { %9602 = vmatprep.mubr.bf16.mxu0 %v511_v21  ;;  %9635 = vmatpush3.bf16.msra.mxu0 %v11258_v14  ;;  %v12057_v14 = vrot.slane %v14395_v1, 3  ;;  %v8806_v21 = vcombine.low %v908_v48, %v11882_v5  ;;  %v12075_v1 = vrot.slane %v14399_v40, 3  ;;  %v937_v48 = vrot.slane %v11904_v25, 3 }
  0x99   : > { %9636 = vmatprep.subr.bf16.mxu0 %v11261_v45  ;;  %v12099_v46 = vsel %vm929_vm1, %v939_v51, %v941_v15 }
  0x9a   : > { %v930_v5 = vrot.slane %v8806_v21, 3  ;;  %v12096_v54 = vsel %vm929_vm1, %v937_v48, %v939_v51  ;;  %v11270_v51 = vld [vmem:[#allocation6 + $0x70] sm:$0xff]   ;;  %v1269_v29 = vshrl.u32 %v8806_v21, 16  ;;  %v1272_v24 = vshll.u32 %v8806_v21, 16 }
  0x9b   : > { %v14471_v21 = vshrl.u32 %v11899_v22, 16 }
  0x9c   : > { %9637 = vmatpush3.bf16.msra.mxu0 %v11261_v45  ;;  %v12089_v40 = vsel %vm929_vm1, %v930_v5, %v931_v57  ;;  %v12092_v45 = vsel %vm929_vm1, %v935_v55, %v937_v48  ;;  %v12106_v57 = vld [vmem:[%s11870_s12 + $0x90] ss:$0 sps:$4 sm:$0x77]   ;;  %v12109_v55 = vsel %vm929_vm1, %v941_v15, %v943_v44  ;;  %v949_v5 = vrot.slane %v11955_v60, 3 }
  0x9d   : > { %9638 = vmatprep.subr.bf16.mxu0 %v11264_v16  ;;  %v951_v48 = vrot.slane %v11968_v6, 3  ;;  %v965_v30 = vrot.slane %v12106_v57, 3  ;;  %v1284_v47 = vrot.slane %v14471_v21, 3 }
  0x9e   : > { %v12122_v15 = vsel %vm929_vm1, %v947_v50, %v949_v5 }
  0x9f   : > { %9603 = vmatmul.mubr.bf16.gmra.mrb[8].mxu0 %v520_v3  ;;  %v12125_v3 = vsel %vm929_vm1, %v949_v5, %v951_v48  ;;  %v12130_v44 = vsel %vm929_vm1, %v951_v48, %v953_v63  ;;  %v12148_v63 = vsel %vm929_vm1, %v961_v33, %v963_v32 }
  0xa0   : > { %9606 = vmatprep.mubr.bf16.mxu0 %v529_v43  ;;  %9639 = vmatpush3.bf16.msra.mxu0 %v11264_v16  ;;  %v957_v16 = vrot.slane %v11981_v18, 3  ;;  %v959_v43 = vrot.slane %v11989_v31, 3  ;;  %14462 = vst [vmem:[#allocation13_spill] sm:$0xff] %v12130_v44  ;;  %14467 = vst [vmem:[#allocation18_spill] sm:$0xff] %v12148_v63 }
  0xa1   : > { %9640 = vmatprep.subr.bf16.mxu0 %v11267_v62 }
  0xa2   : > { %v12138_v50 = vsel %vm929_vm1, %v955_v0, %v957_v16  ;;  %v12141_v5 = vsel %vm929_vm1, %v957_v16, %v959_v43  ;;  %v12145_v48 = vsel %vm929_vm1, %v959_v43, %v961_v33  ;;  %v12151_v0 = vsel %vm929_vm1, %v963_v32, %v965_v30  ;;  %v12164_v30 = vld [vmem:[#allocation6 + $0x80] sm:$0xff]  }
  0xa3   : > { %14464 = vst [vmem:[#allocation15_spill] sm:$0xff] %v12138_v50  ;;  %14465 = vst [vmem:[#allocation16_spill] sm:$0xff] %v12141_v5  ;;  %v1276_v16 = vrot.slane %v468_v11, 3  ;;  %v1277_v5 = vrot.slane %v471_v12, 4  ;;  %v1274_v50 = vrot.slane %v1272_v24, 4  ;;  %v14470_v33 = vshll.u32 %v11889_v8, 16 }
  0xa4   : > { %9641 = vmatpush3.bf16.msra.mxu0 %v11267_v62  ;;  %14466 = vst [vmem:[#allocation17_spill] sm:$0xff] %v12145_v48  ;;  %14468 = vst [vmem:[#allocation19_spill] sm:$0xff] %v12151_v0  ;;  %v14469_v62 = vshrl.u32 %v11889_v8, 16  ;;  %v1271_v48 = vrot.slane %v1269_v29, 3  ;;  %v14472_v11 = vshll.u32 %v11899_v22, 16  ;;  %v14473_v12 = vshrl.u32 %v11904_v25, 16 }
  0xa5   : > { %9642 = vmatprep.subr.bf16.mxu0 %v11270_v51  ;;  %v1281_v63 = vrot.slane %v14470_v33, 4  ;;  %v1278_v32 = vor.u32 %v1277_v5, %v1276_v16  ;;  %v14474_v29 = vshll.u32 %v11904_v25, 16  ;;  %v14475_v33 = vshrl.u32 %v11909_v28, 16 }
  0xa6   : > { %v1280_v43 = vrot.slane %v14469_v62, 3  ;;  %v1285_v7 = vrot.slane %v14472_v11, 4  ;;  %v1288_v0 = vrot.slane %v14473_v12, 3  ;;  %v1275_v8 = vor.u32 %v1274_v50, %v1271_v48 }
  0xa7   : > { %9607 = vmatmul.mubr.bf16.gmra.mrb[12].mxu0 %v12049_v49  ;;  %v1289_v24 = vrot.slane %v14474_v29, 4  ;;  %v1292_v21 = vrot.slane %v14475_v33, 3  ;;  %v14476_v49 = vshll.u32 %v11909_v28, 16  ;;  %v14477_v16 = vshrl.u32 %v11918_v34, 16 }
  0xa8   : > { %9610 = vmatprep.mubr.bf16.mxu0 %v547_v59  ;;  %9643 = vmatpush3.bf16.msra.mxu0 %v11270_v51  ;;  %v1282_v62 = vor.u32 %v1281_v63, %v1280_v43  ;;  %v1286_v5 = vor.u32 %v1285_v7, %v1284_v47  ;;  %v14478_v12 = vshll.u32 %v11918_v34, 16  ;;  %v12181_v59 = vsel %vm1267_vm2, %v1275_v8, %v1278_v32 }
  0xa9   : > { %v1293_v44 = vrot.slane %v14476_v49, 4  ;;  %9644 = vmatprep.subr.bf16.mxu0 %v11274_v20  ;;  %v1290_v22 = vor.u32 %v1289_v24, %v1288_v0  ;;  %v1296_v11 = vrot.slane %v14477_v16, 3  ;;  %v556_v63 = vsel %vm458_vm0, %v12040_v10, %v12060_v38 }
  0xaa   : > { %v1297_v25 = vrot.slane %v14478_v12, 4  ;;  %v12184_v51 = vsel %vm1267_vm2, %v1278_v32, %v1282_v62  ;;  %v12187_v48 = vsel %vm1267_vm2, %v1282_v62, %v1286_v5  ;;  %v565_v0 = vsel %vm458_vm0, %v12060_v38, %v12103_v42 }
  0xab   : > { %v1294_v50 = vor.u32 %v1293_v44, %v1292_v21  ;;  %v12190_v28 = vsel %vm1267_vm2, %v1286_v5, %v1290_v22  ;;  %v14479_v43 = vshrl.u32 %v12027_v26, 16  ;;  %v14480_v7 = vshll.u32 %v12027_v26, 16 }
  0xac   : > { %v1298_v47 = vor.u32 %v1297_v25, %v1296_v11  ;;  %9645 = vmatpush3.bf16.msra.mxu0 %v11274_v20  ;;  %v14481_v20 = vshrl.u32 %v11923_v37, 16  ;;  %v14482_v24 = vshll.u32 %v11923_v37, 16  ;;  %v573_v38 = vor.u32 %v12020_v17, %v12016_v4 }
  0xad   : > { %v12196_v34 = vsel %vm1267_vm2, %v1290_v22, %v1294_v50  ;;  %9682 = vmatprep.subr.bf16.mxu0 %v12164_v30  ;;  %v614_v32 = vrot.slane %v14479_v43, 2  ;;  %v617_v10 = vrot.slane %v14480_v7, 3  ;;  %v14483_v62 = vshrl.u32 %v11930_v41, 16 }
  0xae   : > { %v12203_v44 = vsel %vm1267_vm2, %v1294_v50, %v1298_v47  ;;  %v1300_v29 = vrot.slane %v14481_v20, 3  ;;  %v1301_v8 = vrot.slane %v14482_v24, 4  ;;  %v14484_v21 = vshll.u32 %v11930_v41, 16 }
  0xaf   : > { %9611 = vmatmul.mubr.bf16.gmra.mrb[16].mxu0 %v556_v63  ;;  %v1304_v33 = vrot.slane %v14483_v62, 3  ;;  %v582_v5 = vor.u32 %v12031_v2, %v12024_v23  ;;  %v574_v37 = vsel %vm458_vm0, %v12103_v42, %v573_v38  ;;  %v621_v41 = vshrl.u32 %v12106_v57, 16 }
  0xb0   : > { %9614 = vmatprep.mubr.bf16.mxu0 %v565_v0  ;;  %v1305_v49 = vrot.slane %v14484_v21, 4  ;;  %v1302_v22 = vor.u32 %v1301_v8, %v1300_v29  ;;  %v624_v4 = vshll.u32 %v12106_v57, 16  ;;  %v14485_v23 = vshrl.u32 %v11949_v56, 16 }
  0xb1   : > { %v583_v17 = vsel %vm458_vm0, %v573_v38, %v582_v5  ;;  %v14486_v25 = vshll.u32 %v11949_v56, 16  ;;  %v591_v42 = vor.u32 %v12044_v19, %v12035_v27  ;;  %v14488_v0 = vshll.u32 %v11955_v60, 16 }
  0xb2   : > { %v1306_v16 = vor.u32 %v1305_v49, %v1304_v33  ;;  %v12222_v11 = vsel %vm1267_vm2, %v1298_v47, %v1302_v22  ;;  %v1308_v2 = vrot.slane %v14485_v23, 3  ;;  %v14487_v47 = vshrl.u32 %v11955_v60, 16 }
  0xb3   : > { %v1309_v50 = vrot.slane %v14486_v25, 4  ;;  %v1313_v43 = vrot.slane %v14488_v0, 4  ;;  %v600_v7 = vor.u32 %v12057_v14, %v12053_v53  ;;  %v592_v56 = vsel %vm458_vm0, %v582_v5, %v591_v42 }
  0xb4   : > { %v12227_v12 = vsel %vm1267_vm2, %v1302_v22, %v1306_v16  ;;  %v1312_v63 = vrot.slane %v14487_v47, 3  ;;  %v623_v19 = vrot.slane %v621_v41, 2  ;;  %v626_v8 = vrot.slane %v624_v4, 3 }
  0xb5   : > { %v1310_v57 = vor.u32 %v1309_v50, %v1308_v2  ;;  %v601_v27 = vsel %vm458_vm0, %v591_v42, %v600_v7  ;;  %v14489_v60 = vshrl.u32 %v11968_v6, 16  ;;  %v14490_v53 = vshll.u32 %v11968_v6, 16 }
  0xb6   : > { %v1314_v20 = vor.u32 %v1313_v43, %v1312_v63  ;;  %v609_v62 = vor.u32 %v12075_v1, %v12071_v58  ;;  %v14491_v33 = vshrl.u32 %v11971_v9, 16  ;;  %v14492_v49 = vshll.u32 %v11971_v9, 16 }
  0xb7   : > { %9615 = vmatmul.mubr.bf16.gmra.mrb[20].mxu0 %v574_v37  ;;  %v12245_v29 = vsel %vm1267_vm2, %v1306_v16, %v1310_v57  ;;  %v1316_v38 = vrot.slane %v14489_v60, 3  ;;  %v1317_v14 = vrot.slane %v14490_v53, 4  ;;  %v618_v22 = vor.u32 %v617_v10, %v614_v32 }
  0xb8   : > { %9618 = vmatprep.mubr.bf16.mxu0 %v583_v17  ;;  %v12249_v24 = vsel %vm1267_vm2, %v1310_v57, %v1314_v20  ;;  %v1320_v21 = vrot.slane %v14491_v33, 3  ;;  %v1321_v5 = vrot.slane %v14492_v49, 4  ;;  %v610_v41 = vsel %vm458_vm0, %v600_v7, %v609_v62 }
  0xb9   : > { %v1318_v16 = vor.u32 %v1317_v14, %v1316_v38  ;;  %v619_v4 = vsel %vm458_vm0, %v609_v62, %v618_v22  ;;  %v14493_v58 = vshrl.u32 %v11975_v13, 16  ;;  %v14494_v9 = vshll.u32 %v11975_v13, 16  ;;  %v11278_v38 = vld [vmem:[#allocation6 + $0x88] sm:$0xff]  }
  0xba   : > { %v1322_v37 = vor.u32 %v1321_v5, %v1320_v21  ;;  %v627_v32 = vor.u32 %v626_v8, %v623_v19  ;;  %v14495_v10 = vshrl.u32 %v11981_v18, 16  ;;  %v14496_v25 = vshll.u32 %v11981_v18, 16  ;;  %v11284_v5 = vld [vmem:[#allocation6 + $0xb8] sm:$0xff]  }
  0xbb   : > { %v12263_v17 = vsel %vm1267_vm2, %v1314_v20, %v1318_v16  ;;  %v1324_v1 = vrot.slane %v14493_v58, 3  ;;  %v1325_v23 = vrot.slane %v14494_v9, 4  ;;  %v14497_v13 = vshrl.u32 %v11989_v31, 16 }
  0xbc   : > { %v12267_v6 = vsel %vm1267_vm2, %v1318_v16, %v1322_v37  ;;  %v1328_v2 = vrot.slane %v14495_v10, 3  ;;  %v1329_v50 = vrot.slane %v14496_v25, 4  ;;  %v628_v0 = vsel %vm458_vm0, %v618_v22, %v627_v32  ;;  %v14506_v22 = vld [vmem:[#allocation16_spill] sm:$0xff]  ;;  %v14509_v16 = vld [vmem:[#allocation19_spill] sm:$0xff] }
  0xbd   : > { %v1326_v42 = vor.u32 %v1325_v23, %v1324_v1  ;;  %v1332_v7 = vrot.slane %v14497_v13, 3  ;;  %v14498_v57 = vshll.u32 %v11989_v31, 16  ;;  %v14499_v18 = vshrl.u32 %v11998_v52, 16  ;;  %v12361_v1 = vld [vmem:[%s11870_s12 + $0x18] sm:$0xf] }
  0xbe   : > { %v1330_v47 = vor.u32 %v1329_v50, %v1328_v2  ;;  %v14501_v31 = vshrl.u32 %v12027_v26, 16  ;;  %v14502_v62 = vshll.u32 %v12027_v26, 16  ;;  %v11281_v26 = vld [vmem:[#allocation6 + $0xa0] sm:$0xff]   ;;  %v12364_v10 = vld [vmem:[%s11870_s12 + $0x1c] sm:$0xf] }
  0xbf   : > { %9619 = vmatmul.mubr.bf16.gmra.mrb[24].mxu0 %v592_v56  ;;  %v12279_v63 = vsel %vm1267_vm2, %v1322_v37, %v1326_v42  ;;  %v1333_v20 = vrot.slane %v14498_v57, 4  ;;  %v1336_v56 = vrot.slane %v14499_v18, 3  ;;  %v11286_v37 = vld [vmem:[#allocation6 + $0xc8] sm:$0xff]   ;;  %v12367_v2 = vld [vmem:[%s11870_s12 + $0x20] sm:$0xf] }
  0xc0   : > { %9622 = vmatprep.mubr.bf16.mxu0 %v601_v27  ;;  %v12283_v43 = vsel %vm1267_vm2, %v1326_v42, %v1330_v47  ;;  %v14500_v27 = vshll.u32 %v11998_v52, 16  ;;  %v1341_v33 = vrot.slane %v14502_v62, 4  ;;  %v11279_v52 = vld [vmem:[#allocation6 + $0x90] sm:$0xff]  }
  0xc1   : > { %v1334_v8 = vor.u32 %v1333_v20, %v1332_v7  ;;  %v12370_v25 = vld [vmem:[%s11870_s12 + $0x24] sm:$0xf] }
  0xc2   : > { %v1337_v19 = vrot.slane %v14500_v27, 4  ;;  %v8827_v7 = vcombine.low %v12367_v2, %v12370_v25 }
  0xc3   : > { %v12295_v53 = vsel %vm1267_vm2, %v1330_v47, %v1334_v8 }
  0xc4   : > { %v1338_v60 = vor.u32 %v1337_v19, %v1336_v56  ;;  %v1806_v19 = vshrl.u32 %v8827_v7, 16 }
  0xc6   : > { %v12298_v14 = vsel %vm1267_vm2, %v1334_v8, %v1338_v60  ;;  %v1809_v8 = vshll.u32 %v8827_v7, 16  ;;  %v11306_v7 = vld [vmem:[#allocation6 + $0x118] sm:$0xff]  }
  0xc7   : > { %9623 = vmatmul.mubr.bf16.gmra.mrb[28].mxu0 %v610_v41  ;;  %v11289_v41 = vld [vmem:[#allocation6 + $0xe0] sm:$0xff]  }
  0xc8   : > { %9626 = vmatprep.mubr.bf16.mxu0 %v619_v4  ;;  %v11290_v4 = vld [vmem:[#allocation6 + $0xe8] sm:$0xff]  }
  0xcf   : > { %9627 = vmatmul.mubr.bf16.gmra.mrb[32].mxu0 %v628_v0 }
  0xd0   : > { %9646 = vmatprep.mubr.bf16.mxu0 %v12089_v40  ;;  %v1340_v40 = vrot.slane %v14501_v31, 3  ;;  %v12388_v31 = vld [vmem:[%s11870_s12 + $0x34] sm:$0xf] }
  0xd2   : > { %v12307_v21 = vor.u32 %v1341_v33, %v1340_v40 }
  0xd4   : > { %v12311_v49 = vsel %vm1267_vm2, %v1338_v60, %v12307_v21  ;;  %v12379_v60 = vld [vmem:[%s11870_s12 + $0x28] sm:$0xf] }
  0xd7   : > { %9647 = vmatmul.mubr.bf16.vlgmr.msra.gmra.mrb[0].mxu0 %v12066_v39  ;;  %v11280_v39 = vld [vmem:[#allocation6 + $0x98] sm:$0xff]  }
  0xd8   : > { %9683 = vmatpush3.bf16.msra.mxu0 %v12164_v30  ;;  %9650 = vmatprep.mubr.bf16.mxu0 %v12081_v61  ;;  %v11282_v61 = vld [vmem:[#allocation6 + $0xa8] sm:$0xff]   ;;  %v11283_v30 = vld [vmem:[#allocation6 + $0xb0] sm:$0xff]  }
  0xd9   : > { %9684 = vmatprep.subr.bf16.mxu0 %v11278_v38 }
  0xdc   : > { %9685 = vmatpush3.bf16.msra.mxu0 %v11278_v38  ;;  %v12382_v38 = vld [vmem:[%s11870_s12 + $0x2c] sm:$0xf] }
  0xdd   : > { %9686 = vmatprep.subr.bf16.mxu0 %v11279_v52  ;;  %v8828_v33 = vcombine.low %v12379_v60, %v12382_v38 }
  0xdf   : > { %9651 = vmatmul.mubr.bf16.gmra.mrb[4].mxu0 %v12092_v45  ;;  %v11285_v45 = vld [vmem:[#allocation6 + $0xc0] sm:$0xff]  }
  0xe0   : > { %9654 = vmatprep.mubr.bf16.mxu0 %v12096_v54  ;;  %9687 = vmatpush3.bf16.msra.mxu0 %v11279_v52  ;;  %v14504_v54 = vld [vmem:[#allocation14_spill] sm:$0xff] }
  0xe1   : > { %9688 = vmatprep.subr.bf16.mxu0 %v11280_v39 }
  0xe4   : > { %9689 = vmatpush3.bf16.msra.mxu0 %v11280_v39  ;;  %v1811_v39 = vrot.slane %v1809_v8, 4 }
  0xe5   : > { %9690 = vmatprep.subr.bf16.mxu0 %v11281_v26 }
  0xe7   : > { %9655 = vmatmul.mubr.bf16.gmra.mrb[8].mxu0 %v12099_v46  ;;  %v14503_v46 = vld [vmem:[#allocation13_spill] sm:$0xff] }
  0xe8   : > { %9658 = vmatprep.mubr.bf16.mxu0 %v12109_v55  ;;  %9691 = vmatpush3.bf16.msra.mxu0 %v11281_v26  ;;  %v14505_v55 = vld [vmem:[#allocation15_spill] sm:$0xff] }
  0xe9   : > { %9692 = vmatprep.subr.bf16.mxu0 %v11282_v61 }
  0xec   : > { %9693 = vmatpush3.bf16.msra.mxu0 %v11282_v61 }
  0xed   : > { %9694 = vmatprep.subr.bf16.mxu0 %v11283_v30 }
  0xef   : > { %9659 = vmatmul.mubr.bf16.gmra.mrb[12].mxu0 %v12114_v36  ;;  %v14507_v36 = vld [vmem:[#allocation17_spill] sm:$0xff] }
  0xf0   : > { %9662 = vmatprep.mubr.bf16.mxu0 %v12117_v35  ;;  %9695 = vmatpush3.bf16.msra.mxu0 %v11283_v30  ;;  %v14508_v35 = vld [vmem:[#allocation18_spill] sm:$0xff]  ;;  %v1818_v30 = vshll.u32 %v8828_v33, 16 }
  0xf1   : > { %9696 = vmatprep.subr.bf16.mxu0 %v11284_v5 }
  0xf4   : > { %9697 = vmatpush3.bf16.msra.mxu0 %v11284_v5 }
  0xf5   : > { %9734 = vmatprep.subr.bf16.mxu0 %v11285_v45 }
  0xf7   : > { %9663 = vmatmul.mubr.bf16.gmra.mrb[16].mxu0 %v12122_v15  ;;  %v11287_v15 = vld [vmem:[#allocation6 + $0xd0] sm:$0xff]  }
  0xf8   : > { %9666 = vmatprep.mubr.bf16.mxu0 %v12125_v3  ;;  %v11288_v3 = vld [vmem:[#allocation6 + $0xd8] sm:$0xff]  }
  0xff   : > { %9667 = vmatmul.mubr.bf16.gmra.mrb[20].mxu0 %v14503_v46 }
 0x100   : > { %9670 = vmatprep.mubr.bf16.mxu0 %v14504_v54  ;;  %v12398_v54 = vld [vmem:[%s11870_s12 + $0x38] sm:$0xf] }
 0x107   : > { %9671 = vmatmul.mubr.bf16.gmra.mrb[24].mxu0 %v14505_v55  ;;  %v12401_v55 = vld [vmem:[%s11870_s12 + $0x3c] sm:$0xf] }
 0x108   : > { %9674 = vmatprep.mubr.bf16.mxu0 %v14506_v22  ;;  %v12404_v22 = vld [vmem:[%s11870_s12 + $0x40] sm:$0xf] }
 0x10f   : > { %9675 = vmatmul.mubr.bf16.gmra.mrb[28].mxu0 %v14507_v36  ;;  %v12407_v36 = vld [vmem:[%s11870_s12 + $0x44] sm:$0xf] }
 0x110   : > { %9678 = vmatprep.mubr.bf16.mxu0 %v14508_v35 }
 0x117   : > { %9679 = vmatmul.mubr.bf16.gmra.mrb[32].mxu0 %v14509_v16 }
 0x118   : > { %9698 = vmatprep.mubr.bf16.mxu0 %v12181_v59  ;;  %v11291_v59 = vld [vmem:[#allocation6 + $0xf0] sm:$0xff]  }
 0x11f   : > { %9699 = vmatmul.mubr.bf16.vlgmr.msra.gmra.mrb[0].mxu0 %v12184_v51  ;;  %v11292_v51 = vld [vmem:[#allocation6 + $0xf8] sm:$0xff]  }
 0x120   : > { %9735 = vmatpush3.bf16.msra.mxu0 %v11285_v45  ;;  %9702 = vmatprep.mubr.bf16.mxu0 %v12187_v48  ;;  %v12337_v48 = vld [vmem:[#allocation6 + $0x100] sm:$0xff]  }
 0x121   : > { %9736 = vmatprep.subr.bf16.mxu0 %v11286_v37 }
 0x124   : > { %9737 = vmatpush3.bf16.msra.mxu0 %v11286_v37  ;;  %v1820_v37 = vrot.slane %v1818_v30, 4 }
 0x125   : > { %9738 = vmatprep.subr.bf16.mxu0 %v11287_v15 }
 0x127   : > { %9703 = vmatmul.mubr.bf16.gmra.mrb[4].mxu0 %v12190_v28  ;;  %v1632_v28 = vld [vmem:[%s11870_s12 + $0x8] sm:$0x8] }
 0x128   : > { %9706 = vmatprep.mubr.bf16.mxu0 %v12196_v34  ;;  %9739 = vmatpush3.bf16.msra.mxu0 %v11287_v15  ;;  %v12346_v34 = vld [vmem:[%s11870_s12 + $0xc] sm:$0xf]  ;;  %v8830_v15 = vcombine.low %v12398_v54, %v12401_v55 }
 0x129   : > { %9740 = vmatprep.subr.bf16.mxu0 %v11288_v3 }
 0x12c   : > { %9741 = vmatpush3.bf16.msra.mxu0 %v11288_v3 }
 0x12d   : > { %9742 = vmatprep.subr.bf16.mxu0 %v11289_v41 }
 0x12f   : > { %9707 = vmatmul.mubr.bf16.gmra.mrb[8].mxu0 %v12203_v44  ;;  %v12349_v44 = vld [vmem:[%s11870_s12 + $0x10] sm:$0xf] }
 0x130   : > { %9710 = vmatprep.mubr.bf16.mxu0 %v12222_v11  ;;  %9743 = vmatpush3.bf16.msra.mxu0 %v11289_v41  ;;  %v12352_v11 = vld [vmem:[%s11870_s12 + $0x14] sm:$0xf] }
 0x131   : > { %9744 = vmatprep.subr.bf16.mxu0 %v11290_v4  ;;  %v11300_v41 = vld [vmem:[#allocation6 + $0x108] sm:$0xff]  }
 0x134   : > { %9745 = vmatpush3.bf16.msra.mxu0 %v11290_v4 }
 0x135   : > { %9746 = vmatprep.subr.bf16.mxu0 %v11291_v59 }
 0x137   : > { %9711 = vmatmul.mubr.bf16.gmra.mrb[12].mxu0 %v12227_v12  ;;  %v11293_v12 = vld [vmem:[%s11870_s12 + $0x90] ss:$0 sps:$4 sm:$0xff]  }
 0x138   : > { %9714 = vmatprep.mubr.bf16.mxu0 %v12245_v29  ;;  %9747 = vmatpush3.bf16.msra.mxu0 %v11291_v59  ;;  %v8824_v29 = vcombine.low %v1632_v28, %v12346_v34 }
 0x139   : > { %9748 = vmatprep.subr.bf16.mxu0 %v11292_v51 }
 0x13a   : > { %v1780_v58 = vshrl.u32 %v8824_v29, 16  ;;  %v1783_v9 = vshll.u32 %v8824_v29, 16  ;;  %v1836_v29 = vshll.u32 %v8830_v15, 16 }
 0x13c   : > { %9749 = vmatpush3.bf16.msra.mxu0 %v11292_v51  ;;  %v1782_v47 = vrot.slane %v1780_v58, 3  ;;  %v1785_v0 = vrot.slane %v1783_v9, 4  ;;  %v8831_v51 = vcombine.low %v12404_v22, %v12407_v36 }
 0x13d   : > { %9786 = vmatprep.subr.bf16.mxu0 %v12337_v48 }
 0x13e   : > { %v1786_v56 = vor.u32 %v1785_v0, %v1782_v47  ;;  %v1842_v58 = vshrl.u32 %v8831_v51, 16  ;;  %v1845_v9 = vshll.u32 %v8831_v51, 16  ;;  %v1838_v47 = vrot.slane %v1836_v29, 4  ;;  %v11315_v51 = vld [vmem:[#allocation6 + $0x130] sm:$0xff]  }
 0x13f   : > { %9715 = vmatmul.mubr.bf16.gmra.mrb[16].mxu0 %v12249_v24  ;;  %v8825_v24 = vcombine.low %v12349_v44, %v12352_v11 }
 0x140   : > { %9718 = vmatprep.mubr.bf16.mxu0 %v12263_v17  ;;  %v1345_v17 = vshrl.u32 %v11293_v12, 16 }
 0x141   : > { %v1788_v23 = vshrl.u32 %v8825_v24, 16  ;;  %v1791_v32 = vshll.u32 %v8825_v24, 16  ;;  %v12417_v24 = vld [vmem:[%s11870_s12 + $0x48] sm:$0xf] }
 0x142   : > { %v1347_v50 = vrot.slane %v1345_v17, 3 }
 0x143   : > { %v1793_v13 = vrot.slane %v1791_v32, 4  ;;  %v12423_v32 = vld [vmem:[%s11870_s12 + $0x50] sm:$0xf] }
 0x147   : > { %9719 = vmatmul.mubr.bf16.gmra.mrb[20].mxu0 %v12267_v6  ;;  %v1348_v6 = vshll.u32 %v11293_v12, 16  ;;  %v1833_v12 = vshrl.u32 %v8830_v15, 16  ;;  %v12453_v15 = vld [vmem:[%s11870_s12 + $0x68] sm:$0xf] }
 0x148   : > { %9722 = vmatprep.mubr.bf16.mxu0 %v12279_v63  ;;  %v8826_v63 = vcombine.low %v12361_v1, %v12364_v10 }
 0x149   : > { %v1350_v42 = vrot.slane %v1348_v6, 4  ;;  %v11303_v6 = vld [vmem:[#allocation6 + $0x110] sm:$0xff]  }
 0x14a   : > { %v1797_v20 = vshrl.u32 %v8826_v63, 16  ;;  %v1800_v18 = vshll.u32 %v8826_v63, 16 }
 0x14b   : > { %v1351_v57 = vor.u32 %v1350_v42, %v1347_v50  ;;  %v12426_v50 = vld [vmem:[%s11870_s12 + $0x54] sm:$0xf] }
 0x14c   : > { %v1799_v40 = vrot.slane %v1797_v20, 3  ;;  %v1802_v62 = vrot.slane %v1800_v18, 4 }
 0x14e   : > { %v1803_v61 = vor.u32 %v1802_v62, %v1799_v40  ;;  %v12438_v40 = vld [vmem:[%s11870_s12 + $0x5c] sm:$0xf]  ;;  %v11309_v62 = vld [vmem:[#allocation6 + $0x120] sm:$0xff]  }
 0x14f   : > { %9723 = vmatmul.mubr.bf16.gmra.mrb[24].mxu0 %v12283_v43  ;;  %v1790_v43 = vrot.slane %v1788_v23, 3  ;;  %v12420_v23 = vld [vmem:[%s11870_s12 + $0x4c] sm:$0xf] }
 0x150   : > { %9726 = vmatprep.mubr.bf16.mxu0 %v12295_v53  ;;  %v12385_v53 = vld [vmem:[%s11870_s12 + $0x30] sm:$0xf]  ;;  %v8832_v63 = vcombine.low %v12417_v24, %v12420_v23 }
 0x151   : > { %v1794_v27 = vor.u32 %v1793_v13, %v1790_v43  ;;  %v8829_v26 = vcombine.low %v12385_v53, %v12388_v31  ;;  %v1844_v43 = vrot.slane %v1842_v58, 3  ;;  %v1847_v13 = vrot.slane %v1845_v9, 4 }
 0x152   : > { %v1851_v18 = vshrl.u32 %v8832_v63, 16 }
 0x153   : > { %v1795_v52 = vsel %vm1267_vm2, %v1786_v56, %v1794_v27  ;;  %v1824_v45 = vshrl.u32 %v8829_v26, 16  ;;  %v1827_v46 = vshll.u32 %v8829_v26, 16  ;;  %v1804_v35 = vsel %vm1267_vm2, %v1794_v27, %v1803_v61  ;;  %v12435_v27 = vld [vmem:[%s11870_s12 + $0x58] sm:$0xf] }
 0x154   : > { %v1854_v56 = vshll.u32 %v8832_v63, 16  ;;  %v11319_v63 = vld [vmem:[#allocation6 + $0x138] sm:$0xff]  }
 0x155   : > { %v1826_v4 = vrot.slane %v1824_v45, 3  ;;  %v1829_v59 = vrot.slane %v1827_v46, 4  ;;  %v11312_v46 = vld [vmem:[#allocation6 + $0x128] sm:$0xff]  }
 0x156   : > { %v1856_v26 = vrot.slane %v1854_v56, 4  ;;  %v12474_v56 = vld [vmem:[%s11870_s12 + $0x7c] sm:$0xf] }
 0x157   : > { %9727 = vmatmul.mubr.bf16.gmra.mrb[28].mxu0 %v12298_v14  ;;  %v1352_v14 = vsel %vm1267_vm2, %v12307_v21, %v1351_v57  ;;  %v1815_v21 = vshrl.u32 %v8828_v33, 16  ;;  %v1830_v17 = vor.u32 %v1829_v59, %v1826_v4  ;;  %v8833_v57 = vcombine.low %v12423_v32, %v12426_v50  ;;  %v12441_v33 = vld [vmem:[%s11870_s12 + $0x60] sm:$0xf]  ;;  %v12456_v59 = vld [vmem:[%s11870_s12 + $0x6c] sm:$0xf] }
 0x158   : > { %9730 = vmatprep.mubr.bf16.mxu0 %v12311_v49  ;;  %v1808_v49 = vrot.slane %v1806_v19, 3  ;;  %v1848_v19 = vor.u32 %v1847_v13, %v1844_v43  ;;  %v8836_v58 = vcombine.low %v12453_v15, %v12456_v59 }
 0x159   : > { %v1817_v16 = vrot.slane %v1815_v21, 3  ;;  %v1860_v8 = vshrl.u32 %v8833_v57, 16 }
 0x15a   : > { %v1812_v5 = vor.u32 %v1811_v39, %v1808_v49  ;;  %v1853_v39 = vrot.slane %v1851_v18, 3  ;;  %v1887_v43 = vshrl.u32 %v8836_v58, 16  ;;  %v1890_v13 = vshll.u32 %v8836_v58, 16 }
 0x15b   : > { %v1821_v28 = vor.u32 %v1820_v37, %v1817_v16  ;;  %v1862_v30 = vrot.slane %v1860_v8, 3  ;;  %v12479_v8 = vld [vmem:[%s11870_s12 + $0x80] sm:$0xf] }
 0x15c   : > { %v1813_v3 = vsel %vm1267_vm2, %v1803_v61, %v1812_v5  ;;  %v8834_v61 = vcombine.low %v12435_v27, %v12438_v40 }
 0x15d   : > { %v1822_v42 = vsel %vm1267_vm2, %v1812_v5, %v1821_v28  ;;  %v1831_v0 = vsel %vm1267_vm2, %v1821_v28, %v1830_v17  ;;  %v12459_v28 = vld [vmem:[%s11870_s12 + $0x70] sm:$0xf] }
 0x15e   : > { %v1869_v16 = vshrl.u32 %v8834_v61, 16  ;;  %v1872_v37 = vshll.u32 %v8834_v61, 16 }
 0x15f   : > { %9731 = vmatmul.mubr.bf16.gmra.mrb[32].mxu0 %v1352_v14  ;;  %v1863_v14 = vshll.u32 %v8833_v57, 16 }
 0x160   : > { %9750 = vmatprep.mubr.bf16.mxu0 %v1795_v52  ;;  %v12444_v52 = vld [vmem:[%s11870_s12 + $0x64] sm:$0xf] }
 0x161   : > { %v1865_v5 = vrot.slane %v1863_v14, 4  ;;  %v8835_v45 = vcombine.low %v12441_v33, %v12444_v52  ;;  %v12482_v14 = vld [vmem:[%s11870_s12 + $0x84] sm:$0xf] }
 0x163   : > { %v1881_v4 = vshll.u32 %v8835_v45, 16 }
 0x167   : > { %9751 = vmatmul.mubr.bf16.vlgmr.msra.gmra.mrb[0].mxu0 %v1804_v35  ;;  %v1857_v35 = vor.u32 %v1856_v26, %v1853_v39  ;;  %v1892_v39 = vrot.slane %v1890_v13, 4 }
 0x168   : > { %9787 = vmatpush3.bf16.msra.mxu0 %v12337_v48  ;;  %9754 = vmatprep.mubr.bf16.mxu0 %v1813_v3  ;;  %v1835_v48 = vrot.slane %v1833_v12, 3  ;;  %v1866_v3 = vor.u32 %v1865_v5, %v1862_v30  ;;  %v12462_v12 = vld [vmem:[%s11870_s12 + $0x74] sm:$0xf]  ;;  %v8839_v5 = vcombine.low %v12479_v8, %v12482_v14 }
 0x169   : > { %9788 = vmatprep.subr.bf16.mxu0 %v11300_v41  ;;  %v1858_v29 = vsel %vm1267_vm2, %v1848_v19, %v1857_v35 }
 0x16a   : > { %v1839_v20 = vor.u32 %v1838_v47, %v1835_v48  ;;  %v1867_v9 = vsel %vm1267_vm2, %v1857_v35, %v1866_v3  ;;  %v1883_v48 = vrot.slane %v1881_v4, 4  ;;  %v8837_v47 = vcombine.low %v12459_v28, %v12462_v12  ;;  %v12495_v4 = vld [vmem:[%s11870_s12 + $0x8c] sm:$0xf] }
 0x16c   : > { %9789 = vmatpush3.bf16.msra.mxu0 %v11300_v41  ;;  %v1840_v49 = vsel %vm1267_vm2, %v1830_v17, %v1839_v20  ;;  %v1849_v21 = vsel %vm1267_vm2, %v1839_v20, %v1848_v19  ;;  %v1878_v41 = vshrl.u32 %v8835_v45, 16  ;;  %v1871_v17 = vrot.slane %v1869_v16, 3  ;;  %v12476_v19 = vld [vmem:[#allocation6 + $0x140] sm:$0xff]  }
 0x16d   : > { %9790 = vmatprep.subr.bf16.mxu0 %v11303_v6  ;;  %v1896_v20 = vshrl.u32 %v8837_v47, 16  ;;  %v1899_v18 = vshll.u32 %v8837_v47, 16 }
 0x16f   : > { %9755 = vmatmul.mubr.bf16.gmra.mrb[4].mxu0 %v1822_v42  ;;  %v1880_v42 = vrot.slane %v1878_v41, 3  ;;  %v1901_v30 = vrot.slane %v1899_v18, 4  ;;  %v12492_v41 = vld [vmem:[%s11870_s12 + $0x88] sm:$0xf] }
 0x170   : > { %9758 = vmatprep.mubr.bf16.mxu0 %v1831_v0  ;;  %9791 = vmatpush3.bf16.msra.mxu0 %v11303_v6  ;;  %v1874_v6 = vrot.slane %v1872_v37, 4  ;;  %v1914_v37 = vshrl.u32 %v8839_v5, 16 }
 0x171   : > { %9792 = vmatprep.subr.bf16.mxu0 %v11306_v7  ;;  %v1884_v57 = vor.u32 %v1883_v48, %v1880_v42 }
 0x172   : > { %v1875_v0 = vor.u32 %v1874_v6, %v1871_v17  ;;  %v1916_v48 = vrot.slane %v1914_v37, 3 }
 0x174   : > { %9793 = vmatpush3.bf16.msra.mxu0 %v11306_v7  ;;  %v12471_v7 = vld [vmem:[%s11870_s12 + $0x78] sm:$0xf]  ;;  %v1885_v61 = vsel %vm1267_vm2, %v1875_v0, %v1884_v57 }
 0x175   : > { %9794 = vmatprep.subr.bf16.mxu0 %v11309_v62  ;;  %v8838_v26 = vcombine.low %v12471_v7, %v12474_v56 }
 0x177   : > { %9759 = vmatmul.mubr.bf16.gmra.mrb[8].mxu0 %v1840_v49  ;;  %v1889_v49 = vrot.slane %v1887_v43, 3  ;;  %v1908_v35 = vshll.u32 %v8838_v26, 16 }
 0x178   : > { %9762 = vmatprep.mubr.bf16.mxu0 %v1849_v21  ;;  %9795 = vmatpush3.bf16.msra.mxu0 %v11309_v62  ;;  %v1876_v62 = vsel %vm1267_vm2, %v1866_v3, %v1875_v0  ;;  %v1898_v21 = vrot.slane %v1896_v20, 3  ;;  %v1917_v3 = vshll.u32 %v8839_v5, 16 }
 0x179   : > { %9796 = vmatprep.subr.bf16.mxu0 %v11312_v46  ;;  %v1893_v45 = vor.u32 %v1892_v39, %v1889_v49  ;;  %v1910_v58 = vrot.slane %v1908_v35, 4 }
 0x17a   : > { %v1902_v16 = vor.u32 %v1901_v30, %v1898_v21  ;;  %v1919_v47 = vrot.slane %v1917_v3, 4 }
 0x17b   : > { %v1894_v17 = vsel %vm1267_vm2, %v1884_v57, %v1893_v45 }
 0x17c   : > { %9797 = vmatpush3.bf16.msra.mxu0 %v11312_v46  ;;  %v1905_v46 = vshrl.u32 %v8838_v26, 16  ;;  %v1903_v42 = vsel %vm1267_vm2, %v1893_v45, %v1902_v16  ;;  %v1920_v20 = vor.u32 %v1919_v47, %v1916_v48  ;;  %v8852_v48 = vcombine.low %v12352_v11, %v12361_v1  ;;  %v11335_v11 = vld [vmem:[#allocation6 + $0x160] sm:$0xff]  }
 0x17d   : > { %9798 = vmatprep.subr.bf16.mxu0 %v11315_v51  ;;  %v8853_v47 = vcombine.low %v12364_v10, %v12367_v2  ;;  %v8856_v1 = vcombine.low %v12388_v31, %v12398_v54  ;;  %v8857_v10 = vcombine.low %v12401_v55, %v12404_v22  ;;  %v11338_v2 = vld [vmem:[#allocation6 + $0x168] sm:$0xff]   ;;  %v11350_v31 = vld [vmem:[#allocation6 + $0x180] sm:$0xff]   ;;  %v8860_v54 = vcombine.low %v12426_v50, %v12435_v27 }
 0x17e   : > { %v1907_v6 = vrot.slane %v1905_v46, 3  ;;  %v8861_v55 = vcombine.low %v12438_v40, %v12441_v33  ;;  %v8862_v22 = vcombine.low %v12444_v52, %v12453_v15  ;;  %v11348_v50 = vld [vmem:[%s11870_s12 + $0x14] sm:$0xff]   ;;  %v8866_v40 = vcombine.low %v12482_v14, %v12492_v41 }
 0x17f   : > { %9763 = vmatmul.mubr.bf16.gmra.mrb[12].mxu0 %v1858_v29  ;;  %v12501_v29 = vld [vmem:[%s11870_s12 + $0x94] sm:$0xf]  ;;  %v2702_v14 = vshrl.u32 %v11348_v50, 16 }
 0x180   : > { %9766 = vmatprep.mubr.bf16.mxu0 %v1867_v9  ;;  %9799 = vmatpush3.bf16.msra.mxu0 %v11315_v51  ;;  %v12498_v51 = vld [vmem:[%s11870_s12 + $0x90] sm:$0xf]  ;;  %v8840_v9 = vcombine.low %v12492_v41, %v12495_v4  ;;  %v1911_v0 = vor.u32 %v1910_v58, %v1907_v6 }
 0x181   : > { %9800 = vmatprep.subr.bf16.mxu0 %v11319_v63  ;;  %v8867_v33 = vcombine.low %v12495_v4, %v12498_v51 }
 0x182   : > { %v1923_v43 = vshrl.u32 %v8840_v9, 16  ;;  %v1926_v13 = vshll.u32 %v8840_v9, 16  ;;  %v1912_v49 = vsel %vm1267_vm2, %v1902_v16, %v1911_v0  ;;  %v1921_v21 = vsel %vm1267_vm2, %v1911_v0, %v1920_v20  ;;  %v11329_v0 = vld [vmem:[#allocation6 + $0x150] sm:$0xff]  }
 0x184   : > { %9801 = vmatpush3.bf16.msra.mxu0 %v11319_v63  ;;  %v8841_v63 = vcombine.low %v12498_v51, %v12501_v29  ;;  %v1925_v39 = vrot.slane %v1923_v43, 3  ;;  %v1928_v26 = vrot.slane %v1926_v13, 4  ;;  %v8854_v43 = vcombine.low %v12370_v25, %v12379_v60  ;;  %v11341_v25 = vld [vmem:[#allocation6 + $0x170] sm:$0xff]  }
 0x185   : > { %9838 = vmatprep.subr.bf16.mxu0 %v12476_v19  ;;  %v8858_v60 = vcombine.low %v12407_v36, %v12417_v24  ;;  %v8863_v36 = vcombine.low %v12456_v59, %v12459_v28  ;;  %v8864_v24 = vcombine.low %v12462_v12, %v12471_v7  ;;  %v2698_v59 = vshll.u32 %v11348_v50, 16  ;;  %v11349_v28 = vld [vmem:[%s11870_s12 + $0x1c] sm:$0xff]  }
 0x186   : > { %v1932_v57 = vshrl.u32 %v8841_v63, 16  ;;  %v1935_v18 = vshll.u32 %v8841_v63, 16  ;;  %v1929_v45 = vor.u32 %v1928_v26, %v1925_v39  ;;  %v11326_v63 = vld [vmem:[#allocation6 + $0x148] sm:$0xff]   ;;  %v2710_v4 = vshrl.u32 %v11349_v28, 16  ;;  %v11368_v50 = vld [vmem:[#allocation6 + $0x1b0] sm:$0xff]  }
 0x187   : > { %9767 = vmatmul.mubr.bf16.gmra.mrb[16].mxu0 %v1876_v62  ;;  %v12510_v62 = vld [vmem:[%s11870_s12 + $0x98] sm:$0xf]  ;;  %v2700_v7 = vrot.slane %v2698_v59, 1 }
 0x188   : > { %9770 = vmatprep.mubr.bf16.mxu0 %v1885_v61  ;;  %v8842_v61 = vcombine.low %v12510_v62, %v12510_v62  ;;  %v1934_v30 = vrot.slane %v1932_v57, 3  ;;  %v1937_v5 = vrot.slane %v1935_v18, 4  ;;  %v1930_v3 = vsel %vm1267_vm2, %v1920_v20, %v1929_v45  ;;  %v11352_v20 = vld [vmem:[%s11870_s12 + $0x2c] sm:$0xff]   ;;  %v11354_v39 = vld [vmem:[%s11870_s12 + $0x34] sm:$0xff]  }
 0x189   : > { %v2704_v57 = vor.u32 %v2702_v14, %v2700_v7  ;;  %v2722_v26 = vshll.u32 %v11352_v20, 16  ;;  %v11366_v14 = vld [vmem:[%s11870_s12 + $0x74] sm:$0xff]  }
 0x18a   : > { %v1941_v46 = vshrl.u32 %v8842_v61, 16  ;;  %v1944_v35 = vshll.u32 %v8842_v61, 16  ;;  %v1938_v37 = vor.u32 %v1937_v5, %v1934_v30  ;;  %v2726_v30 = vshrl.u32 %v11352_v20, 16 }
 0x18b   : > { %v2730_v5 = vshll.u32 %v11354_v39, 16 }
 0x18c   : > { %v1946_v6 = vrot.slane %v1944_v35, 4  ;;  %v1939_v16 = vsel %vm1267_vm2, %v1929_v45, %v1938_v37  ;;  %v2724_v45 = vrot.slane %v2722_v26, 1 }
 0x18f   : > { %9771 = vmatmul.mubr.bf16.gmra.mrb[20].mxu0 %v1894_v17  ;;  %v1943_v17 = vrot.slane %v1941_v46, 3  ;;  %v11355_v46 = vld [vmem:[%s11870_s12 + $0x3c] sm:$0xff]  }
 0x190   : > { %9774 = vmatprep.mubr.bf16.mxu0 %v1903_v42  ;;  %v8851_v42 = vcombine.low %v12346_v34, %v12349_v44  ;;  %v8855_v34 = vcombine.low %v12382_v38, %v12385_v53  ;;  %v11332_v44 = vld [vmem:[#allocation6 + $0x158] sm:$0xff]   ;;  %v8859_v38 = vcombine.low %v12420_v23, %v12423_v32  ;;  %v8865_v23 = vcombine.low %v12474_v56, %v12479_v8 }
 0x191   : > { %v1947_v58 = vor.u32 %v1946_v6, %v1943_v17  ;;  %v11345_v53 = vld [vmem:[#allocation6 + $0x178] sm:$0xff]   ;;  %v2706_v8 = vshll.u32 %v11349_v28, 16  ;;  %v11356_v17 = vld [vmem:[#allocation6 + $0x190] sm:$0xff]  }
 0x192   : > { %v11347_v32 = vld [vmem:[%s11870_s12 + $0xc] sm:$0xff]   ;;  %v11351_v56 = vld [vmem:[%s11870_s12 + $0x24] sm:$0xff]  }
 0x193   : > { %v1948_v9 = vsel %vm1267_vm2, %v1938_v37, %v1947_v58  ;;  %v2693_v27 = vshll.u32 %v11347_v32, 16  ;;  %v2691_v52 = vshrl.u32 %v11347_v32, 16  ;;  %v2714_v51 = vshll.u32 %v11351_v56, 16  ;;  %v11357_v6 = vld [vmem:[%s11870_s12 + $0x44] sm:$0xff]  }
 0x194   : > { %v2708_v13 = vrot.slane %v2706_v8, 1  ;;  %v2728_v37 = vor.u32 %v2726_v30, %v2724_v45  ;;  %v11363_v32 = vld [vmem:[%s11870_s12 + $0x64] sm:$0xff]  }
 0x195   : > { %v2695_v15 = vrot.slane %v2693_v27, 1  ;;  %v2778_v59 = vshll.u32 %v11363_v32, 16  ;;  %v11372_v28 = vld [vmem:[#allocation6 + $0x1b8] sm:$0xff]  }
 0x196   : > { %v2712_v18 = vor.u32 %v2710_v4, %v2708_v13  ;;  %v2709_v61 = vsel %vm2689_vm3, %v2704_v57, %v2708_v13  ;;  %v2782_v13 = vshrl.u32 %v11363_v32, 16 }
 0x197   : > { %9775 = vmatmul.mubr.bf16.gmra.mrb[24].mxu0 %v1912_v49  ;;  %v2696_v12 = vor.u32 %v2695_v15, %v2691_v52  ;;  %v2716_v49 = vrot.slane %v2714_v51, 1  ;;  %v2780_v8 = vrot.slane %v2778_v59, 1 }
 0x198   : > { %9778 = vmatprep.mubr.bf16.mxu0 %v1921_v21  ;;  %v11353_v21 = vld [vmem:[#allocation6 + $0x188] sm:$0xff]  }
 0x199   : > { %v2701_v41 = vsel %vm2689_vm3, %v2696_v12, %v2700_v7  ;;  %v11364_v7 = vld [vmem:[%s11870_s12 + $0x6c] sm:$0xff]   ;;  %v2784_v26 = vor.u32 %v2782_v13, %v2780_v8 }
 0x19a   : > { %v2786_v4 = vshll.u32 %v11364_v7, 16  ;;  %v2790_v57 = vshrl.u32 %v11364_v7, 16 }
 0x19f   : > { %9779 = vmatmul.mubr.bf16.gmra.mrb[28].mxu0 %v1930_v3  ;;  %v2732_v3 = vrot.slane %v2730_v5, 1  ;;  %v2798_v5 = vshrl.u32 %v11366_v14, 16 }
 0x1a0   : > { %9782 = vmatprep.mubr.bf16.mxu0 %v1939_v16  ;;  %v2738_v16 = vshll.u32 %v11355_v46, 16 }
 0x1a7   : > { %9783 = vmatmul.mubr.bf16.gmra.mrb[32].mxu0 %v1948_v9  ;;  %v2734_v9 = vshrl.u32 %v11354_v39, 16  ;;  %v11367_v39 = vld [vmem:[%s11870_s12 + $0x7c] sm:$0xff]  }
 0x1a8   : > { %9802 = vmatprep.mubr.bf16.mxu0 %v8851_v42  ;;  %v2733_v42 = vsel %vm2689_vm3, %v2728_v37, %v2732_v3 }
 0x1af   : > { %9803 = vmatmul.mubr.bf16.vlgmr.msra.gmra.mrb[0].mxu0 %v8852_v48  ;;  %v2742_v48 = vshrl.u32 %v11355_v46, 16  ;;  %v2806_v46 = vshrl.u32 %v11367_v39, 16 }
 0x1b0   : > { %9839 = vmatpush3.bf16.msra.mxu0 %v12476_v19  ;;  %9806 = vmatprep.mubr.bf16.mxu0 %v8853_v47  ;;  %v8868_v19 = vcombine.low %v12501_v29, %v12510_v62  ;;  %v2718_v29 = vshrl.u32 %v11351_v56, 16  ;;  %v2717_v62 = vsel %vm2689_vm3, %v2712_v18, %v2716_v49  ;;  %v2746_v47 = vshll.u32 %v11357_v6, 16 }
 0x1b1   : > { %9840 = vmatprep.subr.bf16.mxu0 %v11326_v63  ;;  %v2794_v18 = vshll.u32 %v11366_v14, 16 }
 0x1b2   : > { %v2720_v35 = vor.u32 %v2718_v29, %v2716_v49  ;;  %v2788_v49 = vrot.slane %v2786_v4, 1 }
 0x1b3   : > { %v2796_v29 = vrot.slane %v2794_v18, 1 }
 0x1b4   : > { %9841 = vmatpush3.bf16.msra.mxu0 %v11326_v63  ;;  %v2725_v58 = vsel %vm2689_vm3, %v2720_v35, %v2724_v45  ;;  %v11359_v63 = vld [vmem:[#allocation6 + $0x198] sm:$0xff]   ;;  %v2789_v30 = vsel %vm2689_vm3, %v2784_v26, %v2788_v49 }
 0x1b5   : > { %9842 = vmatprep.subr.bf16.mxu0 %v11329_v0 }
 0x1b7   : > { %9807 = vmatmul.mubr.bf16.gmra.mrb[4].mxu0 %v8854_v43  ;;  %v11358_v43 = vld [vmem:[%s11870_s12 + $0x4c] sm:$0xff]  }
 0x1b8   : > { %9810 = vmatprep.mubr.bf16.mxu0 %v8855_v34  ;;  %9843 = vmatpush3.bf16.msra.mxu0 %v11329_v0  ;;  %v2740_v0 = vrot.slane %v2738_v16, 1  ;;  %v2736_v34 = vor.u32 %v2734_v9, %v2732_v3  ;;  %v11370_v3 = vld [vmem:[%s11870_s12 + $0x8c] sm:$0xff]   ;;  %v3117_v9 = vld [vmem:[%s11870_s12 + $0x14] sm:$0xf] }
 0x1b9   : > { %9844 = vmatprep.subr.bf16.mxu0 %v11332_v44 }
 0x1bc   : > { %9845 = vmatpush3.bf16.msra.mxu0 %v11332_v44  ;;  %v2744_v44 = vor.u32 %v2742_v48, %v2740_v0  ;;  %v2818_v48 = vshll.u32 %v11370_v3, 16 }
 0x1bd   : > { %9846 = vmatprep.subr.bf16.mxu0 %v11335_v11 }
 0x1bf   : > { %9811 = vmatmul.mubr.bf16.gmra.mrb[8].mxu0 %v8856_v1  ;;  %v11360_v1 = vld [vmem:[%s11870_s12 + $0x54] sm:$0xff]  }
 0x1c0   : > { %9814 = vmatprep.mubr.bf16.mxu0 %v8857_v10  ;;  %9847 = vmatpush3.bf16.msra.mxu0 %v11335_v11  ;;  %v2748_v11 = vrot.slane %v2746_v47, 1  ;;  %v11362_v10 = vld [vmem:[#allocation6 + $0x1a0] sm:$0xff]  }
 0x1c1   : > { %9848 = vmatprep.subr.bf16.mxu0 %v11338_v2 }
 0x1c4   : > { %9849 = vmatpush3.bf16.msra.mxu0 %v11338_v2  ;;  %v2754_v2 = vshll.u32 %v11358_v43, 16 }
 0x1c5   : > { %9850 = vmatprep.subr.bf16.mxu0 %v11341_v25 }
 0x1c7   : > { %9815 = vmatmul.mubr.bf16.gmra.mrb[12].mxu0 %v8858_v60  ;;  %v2750_v60 = vshrl.u32 %v11357_v6, 16 }
 0x1c8   : > { %9818 = vmatprep.mubr.bf16.mxu0 %v8859_v38  ;;  %9851 = vmatpush3.bf16.msra.mxu0 %v11341_v25  ;;  %v2741_v25 = vsel %vm2689_vm3, %v2736_v34, %v2740_v0  ;;  %v2749_v38 = vsel %vm2689_vm3, %v2744_v44, %v2748_v11 }
 0x1c9   : > { %9852 = vmatprep.subr.bf16.mxu0 %v11345_v53 }
 0x1cc   : > { %9853 = vmatpush3.bf16.msra.mxu0 %v11345_v53  ;;  %v2758_v53 = vshrl.u32 %v11358_v43, 16  ;;  %v2822_v43 = vshrl.u32 %v11370_v3, 16 }
 0x1cd   : > { %9890 = vmatprep.subr.bf16.mxu0 %v11350_v31 }
 0x1cf   : > { %9819 = vmatmul.mubr.bf16.gmra.mrb[16].mxu0 %v8860_v54  ;;  %v11365_v54 = vld [vmem:[#allocation6 + $0x1a8] sm:$0xff]  }
 0x1d0   : > { %9822 = vmatprep.mubr.bf16.mxu0 %v8861_v55  ;;  %v2756_v55 = vrot.slane %v2754_v2, 1 }
 0x1d7   : > { %9823 = vmatmul.mubr.bf16.gmra.mrb[20].mxu0 %v8862_v22  ;;  %v11361_v22 = vld [vmem:[%s11870_s12 + $0x5c] sm:$0xff]  }
 0x1d8   : > { %9826 = vmatprep.mubr.bf16.mxu0 %v8863_v36  ;;  %v2752_v36 = vor.u32 %v2750_v60, %v2748_v11  ;;  %v2770_v27 = vshll.u32 %v11361_v22, 16  ;;  %v2774_v15 = vshrl.u32 %v11361_v22, 16  ;;  %v2820_v11 = vrot.slane %v2818_v48, 1  ;;  %v12599_v60 = vld [vmem:[%s11870_s12 + $0x1c] sm:$0xff]  }
 0x1d9   : > { %v3276_v59 = vshrl.u32 %v12599_v60, 16 }
 0x1da   : > { %v2772_v12 = vrot.slane %v2770_v27, 1  ;;  %v2824_v2 = vor.u32 %v2822_v43, %v2820_v11 }
 0x1df   : > { %9827 = vmatmul.mubr.bf16.gmra.mrb[24].mxu0 %v8864_v24  ;;  %v2760_v24 = vor.u32 %v2758_v53, %v2756_v55 }
 0x1e0   : > { %9830 = vmatprep.mubr.bf16.mxu0 %v8865_v23 }
 0x1e7   : > { %9831 = vmatmul.mubr.bf16.gmra.mrb[28].mxu0 %v8866_v40  ;;  %v2757_v40 = vsel %vm2689_vm3, %v2752_v36, %v2756_v55 }
 0x1e8   : > { %9834 = vmatprep.mubr.bf16.mxu0 %v8867_v33  ;;  %v2766_v33 = vshrl.u32 %v11360_v1, 16 }
 0x1ef   : > { %9835 = vmatmul.mubr.bf16.gmra.mrb[32].mxu0 %v8868_v19  ;;  %v2776_v19 = vor.u32 %v2774_v15, %v2772_v12 }
 0x1f0   : > { %9854 = vmatprep.mubr.bf16.mxu0 %v2701_v41  ;;  %v12579_v41 = vld [vmem:[#allocation6 + $0x1c0] sm:$0xff]  }
 0x1f1   : > { %v2781_v20 = vsel %vm2689_vm3, %v2776_v19, %v2780_v8  ;;  %v12621_v19 = vld [vmem:[%s11870_s12 + $0x34] sm:$0xff]  }
 0x1f2   : > { %v3296_v13 = vshll.u32 %v12621_v19, 16 }
 0x1f7   : > { %9855 = vmatmul.mubr.bf16.vlgmr.msra.gmra.mrb[0].mxu0 %v2709_v61  ;;  %v2792_v61 = vor.u32 %v2790_v57, %v2788_v49  ;;  %v11380_v49 = vld [vmem:[#allocation6 + $0x1c8] sm:$0xff]  }
 0x1f8   : > { %9891 = vmatpush3.bf16.msra.mxu0 %v11350_v31  ;;  %9858 = vmatprep.mubr.bf16.mxu0 %v2717_v62  ;;  %v2762_v31 = vshll.u32 %v11360_v1, 16  ;;  %v11369_v62 = vld [vmem:[%s11870_s12 + $0x84] sm:$0xff]  }
 0x1f9   : > { %9892 = vmatprep.subr.bf16.mxu0 %v11353_v21  ;;  %v2797_v45 = vsel %vm2689_vm3, %v2792_v61, %v2796_v29  ;;  %v2810_v35 = vshll.u32 %v11369_v62, 16  ;;  %v3298_v61 = vrot.slane %v3296_v13, 1 }
 0x1fa   : > { %v2764_v23 = vrot.slane %v2762_v31, 1 }
 0x1fb   : > { %v2812_v16 = vrot.slane %v2810_v35, 1 }
 0x1fc   : > { %9893 = vmatpush3.bf16.msra.mxu0 %v11353_v21  ;;  %v2765_v52 = vsel %vm2689_vm3, %v2760_v24, %v2764_v23  ;;  %v2768_v56 = vor.u32 %v2766_v33, %v2764_v23  ;;  %v2802_v21 = vshll.u32 %v11367_v39, 16  ;;  %v3272_v24 = vshll.u32 %v12599_v60, 16  ;;  %v12605_v23 = vld [vmem:[%s11870_s12 + $0x24] sm:$0xff]   ;;  %v12610_v33 = vld [vmem:[%s11870_s12 + $0x2c] sm:$0xff]  }
 0x1fd   : > { %9894 = vmatprep.subr.bf16.mxu0 %v11356_v17  ;;  %v3288_v7 = vshll.u32 %v12610_v33, 16  ;;  %v3292_v57 = vshrl.u32 %v12610_v33, 16  ;;  %v3300_v39 = vshrl.u32 %v12621_v19, 16 }
 0x1fe   : > { %v2773_v51 = vsel %vm2689_vm3, %v2768_v56, %v2772_v12  ;;  %v2804_v37 = vrot.slane %v2802_v21, 1  ;;  %v3284_v12 = vshrl.u32 %v12605_v23, 16 }
 0x1ff   : > { %9859 = vmatmul.mubr.bf16.gmra.mrb[4].mxu0 %v2725_v58  ;;  %v11371_v58 = vld [vmem:[%s11870_s12 + $0x94] sm:$0xff]   ;;  %v3290_v4 = vrot.slane %v3288_v7, 1  ;;  %v3302_v21 = vor.u32 %v3300_v39, %v3298_v61 }
 0x200   : > { %9862 = vmatprep.mubr.bf16.mxu0 %v2733_v42  ;;  %9895 = vmatpush3.bf16.msra.mxu0 %v11356_v17  ;;  %v2800_v17 = vor.u32 %v2798_v5, %v2796_v29  ;;  %v2808_v6 = vor.u32 %v2806_v46, %v2804_v37  ;;  %v12592_v42 = vld [vmem:[%s11870_s12 + $0x18] sm:$0xf]  ;;  %v2826_v34 = vshll.u32 %v11371_v58, 16  ;;  %v2830_v31 = vshrl.u32 %v11371_v58, 16  ;;  %v12641_v29 = vld [vmem:[%s11870_s12 + $0x44] sm:$0xff]  }
 0x201   : > { %9896 = vmatprep.subr.bf16.mxu0 %v11359_v63  ;;  %v8904_v44 = vcombine.low %v3117_v9, %v12592_v42  ;;  %v11383_v5 = vld [vmem:[#allocation6 + $0x1d0] sm:$0xff]   ;;  %v3312_v46 = vshll.u32 %v12641_v29, 16  ;;  %v3316_v3 = vshrl.u32 %v12641_v29, 16 }
 0x202   : > { %v2805_v47 = vsel %vm2689_vm3, %v2800_v17, %v2804_v37  ;;  %v2813_v0 = vsel %vm2689_vm3, %v2808_v6, %v2812_v16  ;;  %v11386_v6 = vld [vmem:[#allocation6 + $0x1d8] sm:$0xff]   ;;  %v12662_v58 = vld [vmem:[%s11870_s12 + $0x54] sm:$0xff]  }
 0x203   : > { %v3265_v22 = vshrl.u32 %v8904_v44, 16  ;;  %v3328_v43 = vshll.u32 %v12662_v58, 16 }
 0x204   : > { %9897 = vmatpush3.bf16.msra.mxu0 %v11359_v63  ;;  %v2814_v63 = vshrl.u32 %v11369_v62, 16  ;;  %v3294_v62 = vor.u32 %v3292_v57, %v3290_v4 }
 0x205   : > { %9898 = vmatprep.subr.bf16.mxu0 %v11362_v10 }
 0x206   : > { %v2816_v1 = vor.u32 %v2814_v63, %v2812_v16  ;;  %v3299_v35 = vsel %vm2689_vm3, %v3294_v62, %v3298_v61  ;;  %v3314_v16 = vrot.slane %v3312_v46, 1  ;;  %v12671_v63 = vld [vmem:[%s11870_s12 + $0x5c] sm:$0xff]  }
 0x207   : > { %9863 = vmatmul.mubr.bf16.gmra.mrb[8].mxu0 %v2741_v25  ;;  %v2828_v25 = vrot.slane %v2826_v34, 1 }
 0x208   : > { %9866 = vmatprep.mubr.bf16.mxu0 %v2749_v38  ;;  %9899 = vmatpush3.bf16.msra.mxu0 %v11362_v10  ;;  %v11373_v10 = vld [vmem:[%s11870_s12 + $0x9c] ss:$0 sps:$4 sm:$0x11]   ;;  %v3267_v38 = vshll.u32 %v8904_v44, 16  ;;  %v2821_v53 = vsel %vm2689_vm3, %v2816_v1, %v2820_v11  ;;  %v3318_v48 = vor.u32 %v3316_v3, %v3314_v16  ;;  %v3332_v1 = vshrl.u32 %v12662_v58, 16 }
 0x209   : > { %9900 = vmatprep.subr.bf16.mxu0 %v11365_v54  ;;  %v2829_v55 = vsel %vm2689_vm3, %v2824_v2, %v2828_v25  ;;  %v2832_v32 = vor.u32 %v2830_v31, %v2828_v25  ;;  %v11392_v2 = vld [vmem:[#allocation6 + $0x1e8] sm:$0xff]   ;;  %v3330_v25 = vrot.slane %v3328_v43, 1 }
 0x20a   : > { %v3269_v36 = vrot.slane %v3267_v38, 1  ;;  %v12682_v38 = vld [vmem:[%s11870_s12 + $0x64] sm:$0xff]  }
 0x20b   : > { %v3334_v31 = vor.u32 %v3332_v1, %v3330_v25 }
 0x20c   : > { %9901 = vmatpush3.bf16.msra.mxu0 %v11365_v54  ;;  %v2834_v54 = vshll.u32 %v11373_v10, 16  ;;  %v3270_v27 = vor.u32 %v3269_v36, %v3265_v22  ;;  %v3336_v10 = vshll.u32 %v12671_v63, 16  ;;  %v11395_v22 = vld [vmem:[#allocation6 + $0x1f0] sm:$0xff]   ;;  %v3344_v36 = vshll.u32 %v12682_v38, 16 }
 0x20d   : > { %9902 = vmatprep.subr.bf16.mxu0 %v11368_v50 }
 0x20f   : > { %9867 = vmatmul.mubr.bf16.gmra.mrb[12].mxu0 %v2757_v40  ;;  %v3274_v40 = vrot.slane %v3272_v24, 1 }
 0x210   : > { %9870 = vmatprep.mubr.bf16.mxu0 %v2765_v52  ;;  %9903 = vmatpush3.bf16.msra.mxu0 %v11368_v50  ;;  %v2836_v50 = vrot.slane %v2834_v54, 1  ;;  %v3280_v52 = vshll.u32 %v12605_v23, 16  ;;  %v3338_v54 = vrot.slane %v3336_v10, 1 }
 0x211   : > { %9904 = vmatprep.subr.bf16.mxu0 %v11372_v28  ;;  %v3278_v8 = vor.u32 %v3276_v59, %v3274_v40 }
 0x212   : > { %v2837_v15 = vsel %vm2689_vm3, %v2832_v32, %v2836_v50  ;;  %v3282_v56 = vrot.slane %v3280_v52, 1  ;;  %v3340_v50 = vshrl.u32 %v12671_v63, 16 }
 0x214   : > { %9905 = vmatpush3.bf16.msra.mxu0 %v11372_v28  ;;  %v3275_v28 = vsel %vm2689_vm3, %v3270_v27, %v3274_v40  ;;  %v3286_v14 = vor.u32 %v3284_v12, %v3282_v56  ;;  %v3339_v27 = vsel %vm2689_vm3, %v3334_v31, %v3338_v54  ;;  %v3348_v40 = vshrl.u32 %v12682_v38, 16 }
 0x215   : > { %9942 = vmatprep.subr.bf16.mxu0 %v12579_v41 }
 0x216   : > { %v3291_v18 = vsel %vm2689_vm3, %v3286_v14, %v3290_v4  ;;  %v3342_v14 = vor.u32 %v3340_v50, %v3338_v54 }
 0x217   : > { %9871 = vmatmul.mubr.bf16.gmra.mrb[16].mxu0 %v2773_v51  ;;  %v12630_v51 = vld [vmem:[%s11870_s12 + $0x3c] sm:$0xff]  }
 0x218   : > { %9874 = vmatprep.mubr.bf16.mxu0 %v2781_v20  ;;  %v3283_v20 = vsel %vm2689_vm3, %v3278_v8, %v3282_v56  ;;  %v3304_v26 = vshll.u32 %v12630_v51, 16  ;;  %v3346_v56 = vrot.slane %v3344_v36, 1  ;;  %v12702_v8 = vld [vmem:[%s11870_s12 + $0x74] sm:$0xff]  }
 0x219   : > { %v3360_v61 = vshll.u32 %v12702_v8, 16 }
 0x21a   : > { %v3350_v4 = vor.u32 %v3348_v40, %v3346_v56  ;;  %v3347_v62 = vsel %vm2689_vm3, %v3342_v14, %v3346_v56  ;;  %v12757_v56 = vld [vmem:[%s11870_s12 + $0x94] sm:$0xff]  }
 0x21b   : > { %v4456_v14 = vld [vmem:[%s14373_s5 + $0x28] sm:$0xff] }
 0x21f   : > { %9875 = vmatmul.mubr.bf16.gmra.mrb[20].mxu0 %v2789_v30  ;;  %v3306_v30 = vrot.slane %v3304_v26, 1 }
 0x220   : > { %9878 = vmatprep.mubr.bf16.mxu0 %v2797_v45  ;;  %v12651_v45 = vld [vmem:[%s11870_s12 + $0x4c] sm:$0xff]  }
 0x221   : > { %v3307_v37 = vsel %vm2689_vm3, %v3302_v21, %v3306_v30  ;;  %v3320_v17 = vshll.u32 %v12651_v45, 16  ;;  %v3324_v44 = vshrl.u32 %v12651_v45, 16 }
 0x227   : > { %9879 = vmatmul.mubr.bf16.gmra.mrb[24].mxu0 %v2805_v47  ;;  %v3322_v47 = vrot.slane %v3320_v17, 1 }
 0x228   : > { %9882 = vmatprep.mubr.bf16.mxu0 %v2813_v0  ;;  %v11389_v0 = vld [vmem:[#allocation6 + $0x1e0] sm:$0xff]  }
 0x229   : > { %v3323_v11 = vsel %vm2689_vm3, %v3318_v48, %v3322_v47 }
 0x22f   : > { %9883 = vmatmul.mubr.bf16.gmra.mrb[28].mxu0 %v2821_v53  ;;  %v3326_v53 = vor.u32 %v3324_v44, %v3322_v47  ;;  %v11646_v47 = vmov 0  }
 0x230   : > { %9886 = vmatprep.mubr.bf16.mxu0 %v2829_v55  ;;  %v12691_v55 = vld [vmem:[%s11870_s12 + $0x6c] sm:$0xff]   ;;  %11240 = vset.pattern.permute.xlu1 %v11646_v47  ;;  %300 = vst [vmem:[#allocation2] sm:$0xff] %v11646_v47  ;;  %301 = vst [vmem:[#allocation2 + $0x8] sm:$0xf] %v11646_v47 }
 0x231   : > { %v3331_v32 = vsel %vm2689_vm3, %v3326_v53, %v3330_v25  ;;  %v3356_v21 = vshrl.u32 %v12691_v55, 16  ;;  %302 = vst [vmem:[#allocation2 + $0x98] sm:$0xf0] %v11646_v47  ;;  %303 = vst [vmem:[#allocation2 + $0xa0] sm:$0xff] %v11646_v47  ;;  %11239 = vset.pattern.permute.xlu0 %v11646_v47 }
 0x237   : > { %9887 = vmatmul.mubr.bf16.gmra.mrb[32].mxu0 %v2837_v15  ;;  %v3352_v15 = vshll.u32 %v12691_v55, 16 }
 0x238   : > { %9906 = vmatprep.mubr.bf16.mxu0 %v3275_v28  ;;  %v11399_v28 = vld [vmem:[#allocation6 + $0x1f8] sm:$0xff]  }
 0x23f   : > { %9907 = vmatmul.mubr.bf16.vlgmr.msra.gmra.mrb[0].mxu0 %v3283_v20  ;;  %v3354_v20 = vrot.slane %v3352_v15, 1 }
 0x240   : > { %9943 = vmatpush3.bf16.msra.mxu0 %v12579_v41  ;;  %9910 = vmatprep.mubr.bf16.mxu0 %v3291_v18  ;;  %v3308_v41 = vshrl.u32 %v12630_v51, 16  ;;  %v12711_v18 = vld [vmem:[%s11870_s12 + $0x7c] sm:$0xff]  }
 0x241   : > { %9944 = vmatprep.subr.bf16.mxu0 %v11380_v49  ;;  %v3358_v48 = vor.u32 %v3356_v21, %v3354_v20  ;;  %v3372_v53 = vshrl.u32 %v12711_v18, 16 }
 0x242   : > { %v3310_v9 = vor.u32 %v3308_v41, %v3306_v30  ;;  %v3355_v30 = vsel %vm2689_vm3, %v3350_v4, %v3354_v20  ;;  %v4455_v4 = vld [vmem:[%s14373_s5 + $0x20] sm:$0xff] }
 0x244   : > { %9945 = vmatpush3.bf16.msra.mxu0 %v11380_v49  ;;  %v3315_v34 = vsel %vm2689_vm3, %v3310_v9, %v3314_v16  ;;  %v12713_v49 = vld [vmem:[#allocation6 + $0x200] sm:$0xff]   ;;  %v4453_v16 = vld [vmem:[%s14373_s5 + $0x10] sm:$0xff]  ;;  %v4451_v9 = vld [vmem:[%s14373_s5] sm:$0xff] }
 0x245   : > { %9946 = vmatprep.subr.bf16.mxu0 %v11383_v5  ;;  %4499 = vperm.xlu1 %11240, %v4453_v16   ;;  %v14410_v16 = vshll.u32 %v12757_v56, 16 }
 0x246   : > { %4489 = vperm.xlu0 %11239, %v4451_v9  }
 0x247   : > { %9911 = vmatmul.mubr.bf16.gmra.mrb[4].mxu0 %v3299_v35  ;;  %v3368_v35 = vshll.u32 %v12711_v18, 16 }
 0x248   : > { %9914 = vmatprep.mubr.bf16.mxu0 %v3307_v37  ;;  %9947 = vmatpush3.bf16.msra.mxu0 %v11383_v5  ;;  %v3364_v5 = vshrl.u32 %v12702_v8, 16  ;;  %v3362_v37 = vrot.slane %v3360_v61, 1 }
 0x249   : > { %9948 = vmatprep.subr.bf16.mxu0 %v11386_v6 }
 0x24a   : > { %v3363_v25 = vsel %vm2689_vm3, %v3358_v48, %v3362_v37 }
 0x24c   : > { %9949 = vmatpush3.bf16.msra.mxu0 %v11386_v6  ;;  %v12725_v6 = vld [vmem:[%s11870_s12 + $0x84] sm:$0xff]  }
 0x24d   : > { %9950 = vmatprep.subr.bf16.mxu0 %v11389_v0  ;;  %v3380_v54 = vshrl.u32 %v12725_v6, 16 }
 0x24f   : > { %9915 = vmatmul.mubr.bf16.gmra.mrb[8].mxu0 %v3315_v34  ;;  %v3370_v34 = vrot.slane %v3368_v35, 1 }
 0x250   : > { %9918 = vmatprep.mubr.bf16.mxu0 %v3323_v11  ;;  %9951 = vmatpush3.bf16.msra.mxu0 %v11389_v0  ;;  %v3366_v0 = vor.u32 %v3364_v5, %v3362_v37  ;;  %v12740_v11 = vld [vmem:[%s11870_s12 + $0x8c] sm:$0xff]   ;;  %v12772_v37 = vld [vmem:[%s11870_s12 + $0x9c] sm:$0xff]  }
 0x251   : > { %9952 = vmatprep.subr.bf16.mxu0 %v11392_v2  ;;  %v3374_v20 = vor.u32 %v3372_v53, %v3370_v34  ;;  %v3388_v48 = vshrl.u32 %v12740_v11, 16 }
 0x252   : > { %v3371_v31 = vsel %vm2689_vm3, %v3366_v0, %v3370_v34  ;;  %v14411_v0 = vshrl.u32 %v12757_v56, 16  ;;  %v14412_v34 = vshll.u32 %v12772_v37, 16 }
 0x254   : > { %9953 = vmatpush3.bf16.msra.mxu0 %v11392_v2  ;;  %v3376_v2 = vshll.u32 %v12725_v6, 16 }
 0x255   : > { %9954 = vmatprep.subr.bf16.mxu0 %v11395_v22 }
 0x257   : > { %9919 = vmatmul.mubr.bf16.gmra.mrb[12].mxu0 %v3331_v32  ;;  %v4454_v32 = vld [vmem:[%s14373_s5 + $0x18] sm:$0xff] }
 0x258   : > { %9922 = vmatprep.mubr.bf16.mxu0 %v3339_v27  ;;  %9955 = vmatpush3.bf16.msra.mxu0 %v11395_v22  ;;  %v3384_v22 = vshll.u32 %v12740_v11, 16  ;;  %v4452_v27 = vld [vmem:[%s14373_s5 + $0x8] sm:$0xff] }
 0x259   : > { %9956 = vmatprep.subr.bf16.mxu0 %v11399_v28  ;;  %4504 = vperm.xlu1 %11240, %v4454_v32   ;;  %v3394_v32 = vrot.slane %v14410_v16, 1 }
 0x25a   : > { %4494 = vperm.xlu0 %11239, %v4452_v27   ;;  %v4460_v27 = vld [vmem:[%s14373_s5 + $0x48] sm:$0xff] }
 0x25c   : > { %9957 = vmatpush3.bf16.msra.mxu0 %v11399_v28  ;;  %v3378_v28 = vrot.slane %v3376_v2, 1 }
 0x25d   : > { %9994 = vmatprep.subr.bf16.mxu0 %v12713_v49  ;;  %4514 = vperm.xlu1 %11240, %v4456_v14  }
 0x25e   : > { %4509 = vperm.xlu0 %11239, %v4455_v4   ;;  %v3379_v9 = vsel %vm2689_vm3, %v3374_v20, %v3378_v28  ;;  %v12797_v4 = vld [vmem:[%s11870_s12 + $0xa4] ss:$0 sps:$4 sm:$0x11]   ;;  %v3398_v20 = vor.u32 %v14411_v0, %v3394_v32  ;;  %v4462_v0 = vld [vmem:[%s14373_s5 + $0x58] sm:$0xff] }
 0x25f   : > { %9923 = vmatmul.mubr.bf16.gmra.mrb[16].mxu0 %v3347_v62  ;;  %v3382_v62 = vor.u32 %v3380_v54, %v3378_v28  ;;  %v4459_v28 = vld [vmem:[%s14373_s5 + $0x40] sm:$0xff] }
 0x260   : > { %9926 = vmatprep.mubr.bf16.mxu0 %v3355_v30  ;;  %v3386_v30 = vrot.slane %v3384_v22, 1 }
 0x262   : > { %v3387_v47 = vsel %vm2689_vm3, %v3382_v62, %v3386_v30  ;;  %v3390_v14 = vor.u32 %v3388_v48, %v3386_v30  ;;  %v3402_v62 = vrot.slane %v14412_v34, 1 }
 0x264   : > { %v3403_v16 = vsel %vm2689_vm3, %v3398_v20, %v3402_v62 }
 0x267   : > { %9927 = vmatmul.mubr.bf16.gmra.mrb[20].mxu0 %v3363_v25  ;;  %v4458_v25 = vld [vmem:[%s14373_s5 + $0x38] sm:$0xff] }
 0x268   : > { %9930 = vmatprep.mubr.bf16.mxu0 %v3371_v31  ;;  %v4457_v31 = vld [vmem:[%s14373_s5 + $0x30] sm:$0xff]  ;;  %4524 = vperm.xlu1 %11240, %v4458_v25   ;;  %v3395_v25 = vsel %vm2689_vm3, %v3390_v14, %v3394_v32  ;;  %v4464_v32 = vld [vmem:[%s14373_s5 + $0x68] sm:$0xff] }
 0x269   : > { %4519 = vperm.xlu0 %11239, %v4457_v31   ;;  %v3404_v31 = vshrl.u32 %v12772_v37, 16 }
 0x26c   : > { %4534 = vperm.xlu1 %11240, %v4460_v27   ;;  %v4461_v27 = vld [vmem:[%s14373_s5 + $0x50] sm:$0xff] }
 0x26d   : > { %4529 = vperm.xlu0 %11239, %v4459_v28   ;;  %v3406_v28 = vor.u32 %v3404_v31, %v3402_v62  ;;  %v4468_v62 = vld [vmem:[%s14373_s5 + $0x88] sm:$0xff] }
 0x26f   : > { %9931 = vmatmul.mubr.bf16.gmra.mrb[24].mxu0 %v3379_v9  ;;  %v3691_v9 = vld [vmem:[%s11870_s12 + $0x14] sm:$0xe] }
 0x270   : > { %9934 = vmatprep.mubr.bf16.mxu0 %v3387_v47  ;;  %v3408_v47 = vshll.u32 %v12797_v4, 16  ;;  %v12809_v30 = vcombine.low %v3691_v9, %v12592_v42  ;;  %4544 = vperm.xlu1 %11240, %v4462_v0   ;;  %v4463_v42 = vld [vmem:[%s14373_s5 + $0x60] sm:$0xff]  ;;  %v3714_v9 = vrot.slane %v12599_v60, 1  ;;  %v4067_v60 = vrot.slane %v3292_v57, 1 }
 0x271   : > { %4539 = vperm.xlu0 %11239, %v4461_v27   ;;  %v4466_v27 = vld [vmem:[%s14373_s5 + $0x78] sm:$0xff]  ;;  %v4075_v57 = vrot.slane %v3308_v41, 1  ;;  %v4083_v41 = vrot.slane %v3324_v44, 1  ;;  %v4091_v44 = vrot.slane %v3340_v50, 1  ;;  %v4099_v50 = vrot.slane %v3356_v21, 1 }
 0x272   : > { %v3410_v14 = vrot.slane %v3408_v47, 1  ;;  %v3713_v20 = vrot.slane %v12809_v30, 1  ;;  %v4467_v47 = vld [vmem:[%s14373_s5 + $0x80] sm:$0xff]  ;;  %v4107_v21 = vrot.slane %v3372_v53, 1  ;;  %v4115_v53 = vrot.slane %v3388_v48, 1 }
 0x273   : > { %v4123_v48 = vrot.slane %v3404_v31, 1 }
 0x274   : > { %4554 = vperm.xlu1 %11240, %v4464_v32   ;;  %v3411_v0 = vsel %vm2689_vm3, %v3406_v28, %v3410_v14  ;;  %v3716_v32 = vrot.slane %v12605_v23, 1  ;;  %v4072_v23 = vrot.slane %v3296_v13, 2 }
 0x275   : > { %4549 = vperm.xlu0 %11239, %v4463_v42   ;;  %v3718_v42 = vrot.slane %v12610_v33, 1  ;;  %v4076_v33 = vrot.slane %v3304_v26, 2 }
 0x276   : > { %v3717_v28 = vsel %vm3712_vm4, %v3714_v9, %v3716_v32 }
 0x277   : > { %9935 = vmatmul.mubr.bf16.gmra.mrb[28].mxu0 %v3395_v25  ;;  %v3715_v25 = vsel %vm3712_vm4, %v3713_v20, %v3714_v9  ;;  %v3719_v14 = vsel %vm3712_vm4, %v3716_v32, %v3718_v42  ;;  %v11403_v20 = vld [vmem:[#allocation6 + $0x208] sm:$0xff]  }
 0x278   : > { %9938 = vmatprep.mubr.bf16.mxu0 %v3403_v16  ;;  %v4465_v16 = vld [vmem:[%s14373_s5 + $0x70] sm:$0xff]  ;;  %4564 = vperm.xlu1 %11240, %v4466_v27   ;;  %v4471_v9 = vld [vmem:[%s14373_s5 + $0xa0] sm:$0xff] }
 0x279   : > { %4559 = vperm.xlu0 %11239, %v4465_v16   ;;  %v4469_v27 = vld [vmem:[%s14373_s5 + $0x90] sm:$0xff]  ;;  %v3720_v16 = vrot.slane %v12621_v19, 1  ;;  %v4080_v19 = vrot.slane %v3312_v46, 2 }
 0x27b   : > { %v3721_v32 = vsel %vm3712_vm4, %v3718_v42, %v3720_v16  ;;  %v4476_v42 = vld [vmem:[%s14373_s5 + $0xc8] sm:$0xff] }
 0x27c   : > { %4574 = vperm.xlu1 %11240, %v4468_v62   ;;  %v3722_v62 = vrot.slane %v12630_v51, 1  ;;  %v4084_v51 = vrot.slane %v3320_v17, 2 }
 0x27d   : > { %4569 = vperm.xlu0 %11239, %v4467_v47   ;;  %v11404_v47 = vld [vmem:[#allocation6 + $0x210] sm:$0xff]  }
 0x27f   : > { %9939 = vmatmul.mubr.bf16.gmra.mrb[32].mxu0 %v3411_v0  ;;  %v4470_v0 = vld [vmem:[%s14373_s5 + $0x98] sm:$0xff] }
 0x280   : > { %9958 = vmatprep.mubr.bf16.mxu0 %v3715_v25  ;;  %4584 = vperm.xlu1 %11240, %v4470_v0   ;;  %v4472_v25 = vld [vmem:[%s14373_s5 + $0xa8] sm:$0xff]  ;;  %v11405_v0 = vld [vmem:[#allocation6 + $0x218] sm:$0xff]  }
 0x281   : > { %4579 = vperm.xlu0 %11239, %v4469_v27   ;;  %v3724_v27 = vrot.slane %v12641_v29, 1  ;;  %v4088_v29 = vrot.slane %v3328_v43, 2 }
 0x284   : > { %4594 = vperm.xlu1 %11240, %v4472_v25   ;;  %v3726_v25 = vrot.slane %v12651_v45, 1  ;;  %v4092_v45 = vrot.slane %v3336_v10, 2 }
 0x285   : > { %4589 = vperm.xlu0 %11239, %v4471_v9   ;;  %v11406_v9 = vld [vmem:[#allocation6 + $0x220] sm:$0xff]  }
 0x287   : > { %9959 = vmatmul.mubr.bf16.vlgmr.msra.gmra.mrb[0].mxu0 %v3717_v28  ;;  %v3723_v28 = vsel %vm3712_vm4, %v3720_v16, %v3722_v62  ;;  %v4478_v16 = vld [vmem:[%s14373_s5 + $0xd8] sm:$0xff] }
 0x288   : > { %9995 = vmatpush3.bf16.msra.mxu0 %v12713_v49  ;;  %9962 = vmatprep.mubr.bf16.mxu0 %v3719_v14  ;;  %v4474_v49 = vld [vmem:[%s14373_s5 + $0xb8] sm:$0xff]  ;;  %v4473_v14 = vld [vmem:[%s14373_s5 + $0xb0] sm:$0xff] }
 0x289   : > { %9996 = vmatprep.subr.bf16.mxu0 %v11403_v20  ;;  %4604 = vperm.xlu1 %11240, %v4474_v49   ;;  %v3725_v49 = vsel %vm3712_vm4, %v3722_v62, %v3724_v27  ;;  %v3730_v62 = vrot.slane %v12671_v63, 1  ;;  %v4100_v63 = vrot.slane %v3352_v15, 2 }
 0x28a   : > { %4599 = vperm.xlu0 %11239, %v4473_v14   ;;  %v4480_v14 = vld [vmem:[%s14373_s5 + $0xe8] sm:$0xff] }
 0x28c   : > { %9997 = vmatpush3.bf16.msra.mxu0 %v11403_v20  ;;  %v4475_v20 = vld [vmem:[%s14373_s5 + $0xc0] sm:$0xff] }
 0x28d   : > { %9998 = vmatprep.subr.bf16.mxu0 %v11404_v47  ;;  %4614 = vperm.xlu1 %11240, %v4476_v42   ;;  %v4479_v42 = vld [vmem:[%s14373_s5 + $0xe0] sm:$0xff] }
 0x28e   : > { %4609 = vperm.xlu0 %11239, %v4475_v20   ;;  %v3728_v20 = vrot.slane %v12662_v58, 1  ;;  %v4096_v58 = vrot.slane %v3344_v36, 2 }
 0x28f   : > { %9963 = vmatmul.mubr.bf16.gmra.mrb[4].mxu0 %v3721_v32  ;;  %v4477_v32 = vld [vmem:[%s14373_s5 + $0xd0] sm:$0xff] }
 0x290   : > { %9966 = vmatprep.mubr.bf16.mxu0 %v3723_v28  ;;  %9999 = vmatpush3.bf16.msra.mxu0 %v11404_v47  ;;  %v3727_v28 = vsel %vm3712_vm4, %v3724_v27, %v3726_v25  ;;  %v11407_v47 = vld [vmem:[#allocation6 + $0x228] sm:$0xff]   ;;  %v4482_v27 = vld [vmem:[%s14373_s5 + $0xf8] sm:$0xff] }
 0x291   : > { %10000 = vmatprep.subr.bf16.mxu0 %v11405_v0  ;;  %4624 = vperm.xlu1 %11240, %v4478_v16   ;;  %v4481_v16 = vld [vmem:[%s14373_s5 + $0xf0] sm:$0xff] }
 0x292   : > { %4619 = vperm.xlu0 %11239, %v4477_v32   ;;  %v3729_v32 = vsel %vm3712_vm4, %v3726_v25, %v3728_v20  ;;  %v3732_v25 = vrot.slane %v12682_v38, 1  ;;  %v4104_v38 = vrot.slane %v3360_v61, 2 }
 0x294   : > { %10001 = vmatpush3.bf16.msra.mxu0 %v11405_v0  ;;  %v11408_v0 = vld [vmem:[#allocation6 + $0x230] sm:$0xff]  }
 0x295   : > { %10002 = vmatprep.subr.bf16.mxu0 %v11406_v9  ;;  %4634 = vperm.xlu1 %11240, %v4480_v14   ;;  %v4484_v14 = vld [vmem:[%s14373_s5 + $0x108] sm:$0xff] }
 0x296   : > { %4629 = vperm.xlu0 %11239, %v4479_v42   ;;  %v4483_v42 = vld [vmem:[%s14373_s5 + $0x100] sm:$0xff] }
 0x297   : > { %9967 = vmatmul.mubr.bf16.gmra.mrb[8].mxu0 %v3725_v49  ;;  %v3731_v49 = vsel %vm3712_vm4, %v3728_v20, %v3730_v62  ;;  %v4486_v20 = vld [vmem:[%s14373_s5 + $0x118] sm:$0xff] }
 0x298   : > { %9970 = vmatprep.mubr.bf16.mxu0 %v3727_v28  ;;  %10003 = vmatpush3.bf16.msra.mxu0 %v11406_v9  ;;  %v11409_v9 = vld [vmem:[#allocation6 + $0x238] sm:$0xff]   ;;  %v11411_v28 = vld [vmem:[#allocation8] sm:$0xff]  }
 0x299   : > { %10004 = vmatprep.subr.bf16.mxu0 %v11407_v47  ;;  %4644 = vperm.xlu1 %11240, %v4482_v27   ;;  %v4485_v27 = vld [vmem:[%s14373_s5 + $0x110] sm:$0xff] }
 0x29a   : > { %4639 = vperm.xlu0 %11239, %v4481_v16   ;;  %10046 = vmatprep.subr.bf16.mxu1 %v11411_v28  ;;  %v3733_v16 = vsel %vm3712_vm4, %v3730_v62, %v3732_v25  ;;  %v3742_v62 = vrot.slane %v12740_v11, 1  ;;  %v14512_v11 = vshll.u32 %v12772_v37, 16 }
 0x29b   : > { %10047 = vmatpush3.bf16.msra.mxu1 %v11411_v28 }
 0x29c   : > { %10005 = vmatpush3.bf16.msra.mxu0 %v11407_v47  ;;  %v3734_v47 = vrot.slane %v12691_v55, 1  ;;  %v4108_v55 = vrot.slane %v3368_v35, 2 }
 0x29d   : > { %10006 = vmatprep.subr.bf16.mxu0 %v11408_v0  ;;  %4654 = vperm.xlu1 %11240, %v4484_v14  }
 0x29e   : > { %4649 = vperm.xlu0 %11239, %v4483_v42   ;;  %v3740_v42 = vrot.slane %v12725_v6, 1  ;;  %v14511_v6 = vshll.u32 %v12757_v56, 16 }
 0x29f   : > { %9971 = vmatmul.mubr.bf16.gmra.mrb[12].mxu0 %v3729_v32  ;;  %v3735_v32 = vsel %vm3712_vm4, %v3732_v25, %v3734_v47 }
 0x2a0   : > { %9974 = vmatprep.mubr.bf16.mxu0 %v3731_v49  ;;  %10007 = vmatpush3.bf16.msra.mxu0 %v11408_v0  ;;  %v3736_v0 = vrot.slane %v12702_v8, 1  ;;  %v3738_v49 = vrot.slane %v12711_v18, 1  ;;  %v3743_v25 = vsel %vm3712_vm4, %v3740_v42, %v3742_v62  ;;  %v4112_v8 = vrot.slane %v3376_v2, 2 }
 0x2a1   : > { %10008 = vmatprep.subr.bf16.mxu0 %v11409_v9  ;;  %4664 = vperm.xlu1 %11240, %v4486_v20   ;;  %v3744_v20 = vrot.slane %v12757_v56, 1  ;;  %v4116_v18 = vrot.slane %v3384_v22, 2  ;;  %v4120_v2 = vrot.slane %v14511_v6, 2  ;;  %v4124_v22 = vrot.slane %v14512_v11, 2 }
 0x2a2   : > { %4659 = vperm.xlu0 %11239, %v4485_v27   ;;  %v3737_v28 = vsel %vm3712_vm4, %v3734_v47, %v3736_v0  ;;  %v3739_v14 = vsel %vm3712_vm4, %v3736_v0, %v3738_v49  ;;  %v3746_v27 = vrot.slane %v12772_v37, 1  ;;  %v4052_v47 = vshrl.u32 %v12809_v30, 16  ;;  %v11412_v37 = vld [vmem:[#allocation8 + $0x8] sm:$0xff]  }
 0x2a3   : > { %10048 = vmatprep.subr.bf16.mxu1 %v11412_v37 }
 0x2a4   : > { %10009 = vmatpush3.bf16.msra.mxu0 %v11409_v9  ;;  %v3741_v9 = vsel %vm3712_vm4, %v3738_v49, %v3740_v42  ;;  %v3747_v0 = vsel %vm3712_vm4, %v3744_v20, %v3746_v27  ;;  %v4059_v49 = vrot.slane %v3276_v59, 1  ;;  %v4060_v42 = vrot.slane %v3272_v24, 2  ;;  %10049 = vmatpush3.bf16.msra.mxu1 %v11412_v37 }
 0x2a5   : > { %v4068_v24 = vrot.slane %v3288_v7, 2 }
 0x2a6   : > { %v4061_v34 = vor.u32 %v4060_v42, %v4059_v49  ;;  %v4101_v49 = vor.u32 %v4100_v63, %v4099_v50 }
 0x2a7   : > { %9975 = vmatmul.mubr.bf16.gmra.mrb[16].mxu0 %v3733_v16  ;;  %v4055_v16 = vshll.u32 %v12809_v30, 16  ;;  %v4063_v30 = vrot.slane %v3284_v12, 1  ;;  %v4071_v12 = vrot.slane %v3300_v39, 1  ;;  %v4079_v39 = vrot.slane %v3316_v3, 1 }
 0x2a8   : > { %9978 = vmatprep.mubr.bf16.mxu0 %v3735_v32  ;;  %v3745_v32 = vsel %vm3712_vm4, %v3742_v62, %v3744_v20  ;;  %v4064_v20 = vrot.slane %v3280_v52, 2  ;;  %v4087_v3 = vrot.slane %v3332_v1, 1  ;;  %v4095_v1 = vrot.slane %v3348_v40, 1 }
 0x2a9   : > { %v4073_v7 = vor.u32 %v4072_v23, %v4071_v12  ;;  %v4081_v26 = vor.u32 %v4080_v19, %v4079_v39  ;;  %v4103_v40 = vrot.slane %v3364_v5, 1  ;;  %v4111_v5 = vrot.slane %v3380_v54, 1  ;;  %v11417_v39 = vld [vmem:[#allocation8 + $0x30] sm:$0xff]   ;;  %v11418_v19 = vld [vmem:[#allocation8 + $0x38] sm:$0xff]  }
 0x2aa   : > { %v4089_v17 = vor.u32 %v4088_v29, %v4087_v3  ;;  %v4097_v10 = vor.u32 %v4096_v58, %v4095_v1 }
 0x2ab   : > { %v4105_v15 = vor.u32 %v4104_v38, %v4103_v40  ;;  %v4113_v35 = vor.u32 %v4112_v8, %v4111_v5 }
 0x2ac   : > { %v4102_v36 = vsel %vm4050_vm5, %v4097_v10, %v4101_v49 }
 0x2af   : > { %9979 = vmatmul.mubr.bf16.gmra.mrb[20].mxu0 %v3737_v28  ;;  %v4054_v28 = vrot.slane %v4052_v47, 1  ;;  %v4069_v47 = vor.u32 %v4068_v24, %v4067_v60 }
 0x2b0   : > { %9982 = vmatprep.mubr.bf16.mxu0 %v3739_v14  ;;  %v4057_v14 = vrot.slane %v4055_v16, 2 }
 0x2b7   : > { %9983 = vmatmul.mubr.bf16.gmra.mrb[24].mxu0 %v3741_v9  ;;  %v3748_v9 = vrot.slane %v12797_v4, 1  ;;  %v4065_v4 = vor.u32 %v4064_v20, %v4063_v30  ;;  %v4117_v30 = vor.u32 %v4116_v18, %v4115_v53  ;;  %v14510_v20 = vshrl.u32 %v12757_v56, 16 }
 0x2b8   : > { %9986 = vmatprep.mubr.bf16.mxu0 %v3743_v25  ;;  %v4058_v25 = vor.u32 %v4057_v14, %v4054_v28  ;;  %v4093_v28 = vor.u32 %v4092_v45, %v4091_v44 }
 0x2b9   : > { %v3749_v62 = vsel %vm3712_vm4, %v3746_v27, %v3748_v9  ;;  %v4066_v16 = vsel %vm4050_vm5, %v4061_v34, %v4065_v4  ;;  %v4070_v52 = vsel %vm4050_vm5, %v4065_v4, %v4069_v47  ;;  %v4077_v27 = vor.u32 %v4076_v33, %v4075_v57  ;;  %v11413_v33 = vld [vmem:[#allocation8 + $0x10] sm:$0xff]  }
 0x2ba   : > { %v4062_v59 = vsel %vm4050_vm5, %v4058_v25, %v4061_v34  ;;  %v4074_v34 = vsel %vm4050_vm5, %v4069_v47, %v4073_v7  ;;  %v4094_v43 = vsel %vm4050_vm5, %v4089_v17, %v4093_v28  ;;  %v4098_v42 = vsel %vm4050_vm5, %v4093_v28, %v4097_v10  ;;  %10050 = vmatprep.subr.bf16.mxu1 %v11413_v33 }
 0x2bb   : > { %v4078_v13 = vsel %vm4050_vm5, %v4073_v7, %v4077_v27  ;;  %v4109_v9 = vor.u32 %v4108_v55, %v4107_v21  ;;  %v4106_v25 = vsel %vm4050_vm5, %v4101_v49, %v4105_v15  ;;  %v4119_v54 = vrot.slane %v14510_v20, 1  ;;  %10051 = vmatpush3.bf16.msra.mxu1 %v11413_v33  ;;  %v11414_v7 = vld [vmem:[#allocation8 + $0x18] sm:$0xff]   ;;  %v4821_v55 = vld [vmem:[#allocation2] sm:$0xfc] }
 0x2bc   : > { %v4118_v60 = vsel %vm4050_vm5, %v4113_v35, %v4117_v30  ;;  %10052 = vmatprep.subr.bf16.mxu1 %v11414_v7  ;;  %v4857_v8 = vshrl.u32 %v4821_v55, 16 }
 0x2bd   : > { %v4110_v61 = vsel %vm4050_vm5, %v4105_v15, %v4109_v9  ;;  %v4121_v24 = vor.u32 %v4120_v2, %v4119_v54 }
 0x2bf   : > { %9987 = vmatmul.mubr.bf16.gmra.mrb[28].mxu0 %v3745_v32  ;;  %v4085_v32 = vor.u32 %v4084_v51, %v4083_v41  ;;  %v4122_v12 = vsel %vm4050_vm5, %v4117_v30, %v4121_v24  ;;  %10053 = vmatpush3.bf16.msra.mxu1 %v11414_v7 }
 0x2c0   : > { %9990 = vmatprep.mubr.bf16.mxu0 %v3747_v0  ;;  %v4082_v0 = vsel %vm4050_vm5, %v4077_v27, %v4081_v26  ;;  %v11415_v27 = vld [vmem:[#allocation8 + $0x20] sm:$0xff]  }
 0x2c1   : > { %v4086_v46 = vsel %vm4050_vm5, %v4081_v26, %v4085_v32  ;;  %v4090_v14 = vsel %vm4050_vm5, %v4085_v32, %v4089_v17  ;;  %10054 = vmatprep.subr.bf16.mxu1 %v11415_v27 }
 0x2c3   : > { %10055 = vmatpush3.bf16.msra.mxu1 %v11415_v27 }
 0x2c4   : > { %v4500_v51 = vpop.permute.xlu1 %4499 }
 0x2c5   : > { %v4490_v41 = vpop.permute.xlu0 %4489 }
 0x2c7   : > { %9991 = vmatmul.mubr.bf16.gmra.mrb[32].mxu0 %v3749_v62  ;;  %v4114_v62 = vsel %vm4050_vm5, %v4109_v9, %v4113_v35 }
 0x2c8   : > { %10010 = vmatprep.mubr.bf16.mxu0 %v4062_v59  ;;  %v11410_v59 = vld [vmem:[%s11870_s12 + $0xa4] ss:$0 sps:$4 sm:$0x33]  }
 0x2c9   : > { %v4128_v4 = vshrl.u32 %v11410_v59, 16  ;;  %v4131_v47 = vshll.u32 %v11410_v59, 16 }
 0x2cb   : > { %v4130_v23 = vrot.slane %v4128_v4, 1  ;;  %v4133_v56 = vrot.slane %v4131_v47, 2 }
 0x2cd   : > { %v4134_v57 = vor.u32 %v4133_v56, %v4130_v23 }
 0x2cf   : > { %10011 = vmatmul.mubr.bf16.vlgmr.msra.gmra.mrb[0].mxu0 %v4066_v16  ;;  %v4125_v16 = vor.u32 %v4124_v22, %v4123_v48 }
 0x2d0   : > { %10014 = vmatprep.mubr.bf16.mxu0 %v4070_v52 }
 0x2d1   : > { %v4126_v52 = vsel %vm4050_vm5, %v4121_v24, %v4125_v16  ;;  %v4135_v31 = vsel %vm4050_vm5, %v4125_v16, %v4134_v57 }
 0x2d7   : > { %10015 = vmatmul.mubr.bf16.gmra.mrb[4].mxu0 %v4074_v34  ;;  %v11416_v34 = vld [vmem:[#allocation8 + $0x28] sm:$0xff]  }
 0x2d8   : > { %10018 = vmatprep.mubr.bf16.mxu0 %v4078_v13  ;;  %10056 = vmatprep.subr.bf16.mxu1 %v11416_v34  ;;  %v13019_v13 = vld [vmem:[#allocation8 + $0x40] sm:$0xff]   ;;  %v4505_v32 = vpop.permute.xlu1 %4504 }
 0x2d9   : > { %10057 = vmatpush3.bf16.msra.mxu1 %v11416_v34  ;;  %v4495_v26 = vpop.permute.xlu0 %4494 }
 0x2da   : > { %10058 = vmatprep.subr.bf16.mxu1 %v11417_v39 }
 0x2dc   : > { %v13024_v3 = vpop.permute.xlu1 %4514 }
 0x2dd   : > { %10059 = vmatpush3.bf16.msra.mxu1 %v11417_v39 }
 0x2de   : > { %10060 = vmatprep.subr.bf16.mxu1 %v11418_v19 }
 0x2df   : > { %10019 = vmatmul.mubr.bf16.gmra.mrb[8].mxu0 %v4082_v0  ;;  %v13022_v0 = vpop.permute.xlu0 %4509 }
 0x2e0   : > { %10022 = vmatprep.mubr.bf16.mxu0 %v4086_v46 }
 0x2e1   : > { %10061 = vmatpush3.bf16.msra.mxu1 %v11418_v19 }
 0x2e2   : > { %10098 = vmatprep.subr.bf16.mxu1 %v13019_v13 }
 0x2e7   : > { %10023 = vmatmul.mubr.bf16.gmra.mrb[12].mxu0 %v4090_v14  ;;  %v4525_v46 = vpop.permute.xlu1 %4524  ;;  %v13037_v14 = vld [vmem:[%s14371_s3] ss:$0 sm:$0xff] }
 0x2e8   : > { %10026 = vmatprep.mubr.bf16.mxu0 %v4094_v43  ;;  %v4520_v29 = vpop.permute.xlu0 %4519 }
 0x2eb   : > { %v13028_v45 = vpop.permute.xlu1 %4534 }
 0x2ec   : > { %v13026_v44 = vpop.permute.xlu0 %4529 }
 0x2ef   : > { %10027 = vmatmul.mubr.bf16.gmra.mrb[16].mxu0 %v4098_v42  ;;  %v13032_v28 = vpop.permute.xlu1 %4544 }
 0x2f0   : > { %10030 = vmatprep.mubr.bf16.mxu0 %v4102_v36  ;;  %v13030_v17 = vpop.permute.xlu0 %4539 }
 0x2f3   : > { %v13044_v38 = vpop.permute.xlu1 %4554 }
 0x2f4   : > { %v13040_v50 = vpop.permute.xlu0 %4549 }
 0x2f7   : > { %10031 = vmatmul.mubr.bf16.gmra.mrb[20].mxu0 %v4106_v25  ;;  %v13052_v2 = vpop.permute.xlu1 %4564 }
 0x2f8   : > { %10034 = vmatprep.mubr.bf16.mxu0 %v4110_v61  ;;  %v13047_v61 = vld [vmem:[#allocation2] sm:$0xf8]  ;;  %v13049_v53 = vpop.permute.xlu0 %4559 }
 0x2f9   : > { %v5677_v11 = vshrl.u32 %v13047_v61, 16  ;;  %v5680_v22 = vshll.u32 %v13047_v61, 16 }
 0x2fb   : > { %v13068_v27 = vrot.slane %v5677_v11, 3  ;;  %v13070_v34 = vrot.slane %v5680_v22, 4 }
 0x2fc   : > { %v13063_v37 = vpop.permute.xlu0 %4569 }
 0x2ff   : > { %10035 = vmatmul.mubr.bf16.gmra.mrb[24].mxu0 %v4114_v62  ;;  %v4860_v62 = vshll.u32 %v4821_v55, 16 }
 0x300   : > { %10038 = vmatprep.mubr.bf16.mxu0 %v4118_v60 }
 0x301   : > { %v13061_v57 = vrot.slane %v4860_v62, 3 }
 0x307   : > { %10039 = vmatmul.mubr.bf16.gmra.mrb[28].mxu0 %v4122_v12  ;;  %v13058_v12 = vrot.slane %v4857_v8, 2  ;;  %v13087_v8 = vpop.permute.xlu0 %4579 }
 0x308   : > { %10042 = vmatprep.mubr.bf16.mxu0 %v4126_v52 }
 0x30f   : > { %10043 = vmatmul.mubr.bf16.gmra.mrb[32].mxu0 %v4135_v31 }
 0x3a2   : > { %v10012_v1 = vpop.f32.mrb[0].mxu0 }
 0x3a3   : > { %v10514_v58 = vadd.f32 %v10012_v1, %v13037_v14  ;;  %v4236_v43 = vpop.f32.mrb[1].mxu0 }
 0x3a4   : > { %v10515_v63 = vadd.f32 %v13037_v14, %v4236_v43  ;;  %v10013_v10 = vpop.f32.mrb[2].mxu0  ;;  %v4863_v43 = vor.u32 %v13061_v57, %v13058_v12 }
 0x3a5   : > { %v4417_v49 = vmax.f32 %v10514_v58, 0.0  ;;  %v10516_v42 = vadd.f32 %v10013_v10, %v13037_v14  ;;  %v4239_v40 = vpop.f32.mrb[3].mxu0 }
 0x3a6   : > { %v4415_v36 = vmax.f32 %v10515_v63, 0.0  ;;  %v10517_v21 = vadd.f32 %v13037_v14, %v4239_v40  ;;  %v5342_v63 = vrot.slane %v13047_v61, 3 }
 0x3a7   : > { %v4418_v15 = vmax.f32 %v10516_v42, 0.0  ;;  %v4669_v25 = vmul.f32 %v4500_v51, %v4417_v49 }
 0x3a8   : > { %v4416_v9 = vmax.f32 %v10517_v21, 0.0  ;;  %v4667_v18 = vmul.f32 %v4490_v41, %v4415_v36 }
 0x3a9   : > { %v4670_v5 = vmul.f32 %v4505_v32, %v4418_v15 }
 0x3aa   : > { %v4668_v35 = vmul.f32 %v4495_v26, %v4416_v9  ;;  %v10016_v30 = vpop.f32.mrb[4].mxu0  ;;  %v13075_v26 = vpop.permute.xlu1 %4574 }
 0x3ab   : > { %v4704_v20 = vpack.c.bf16 %v4670_v5, %v4669_v25  ;;  %v10518_v54 = vadd.f32 %v10016_v30, %v13037_v14  ;;  %v4252_v6 = vpop.f32.mrb[5].mxu0 }
 0x3ac   : > { %v4703_v59 = vpack.c.bf16 %v4668_v35, %v4667_v18  ;;  %v10519_v60 = vadd.f32 %v13037_v14, %v4252_v6  ;;  %v10017_v48 = vpop.f32.mrb[6].mxu0 }
 0x3ad   : > { %v4741_v24 = vrot.slane %v4704_v20, 4  ;;  %v4421_v4 = vmax.f32 %v10518_v54, 0.0  ;;  %v10520_v47 = vadd.f32 %v10017_v48, %v13037_v14  ;;  %v4255_v16 = vpop.f32.mrb[7].mxu0 }
 0x3ae   : > { %v4740_v23 = vrot.slane %v4703_v59, 4  ;;  %v4419_v56 = vmax.f32 %v10519_v60, 0.0  ;;  %v10521_v52 = vadd.f32 %v13037_v14, %v4255_v16  ;;  %v13096_v48 = vpop.permute.xlu1 %4584 }
 0x3af   : > { %v4422_v31 = vmax.f32 %v10520_v47, 0.0  ;;  %v4673_v39 = vmul.f32 %v4520_v29, %v4421_v4 }
 0x3b0   : > { %v13066_v33 = vsel %vm4739_vm6, %v4740_v23, %v4741_v24  ;;  %4794 = vst [vmem:[#allocation2 + $0x8] sm:$0xf0] %v4740_v23  ;;  %v4420_v7 = vmax.f32 %v10521_v52, 0.0  ;;  %v4671_v32 = vmul.f32 %v13022_v0, %v4419_v56 }
 0x3b1   : > { %4795 = vst [vmem:[#allocation2 + $0x10] sm:$0xff] %v13066_v33  ;;  %v4674_v19 = vmul.f32 %v4525_v46, %v4422_v31  ;;  %v4874_v41 = vshrl.u32 %v13066_v33, 16  ;;  %v4877_v51 = vshll.u32 %v13066_v33, 16  ;;  %v5345_v60 = vrot.slane %v13066_v33, 3 }
 0x3b2   : > { %v4672_v1 = vmul.f32 %v13024_v3, %v4420_v7  ;;  %v10020_v58 = vpop.f32.mrb[8].mxu0 }
 0x3b3   : > { %v4706_v10 = vpack.c.bf16 %v4674_v19, %v4673_v39  ;;  %v10522_v29 = vadd.f32 %v10020_v58, %v13037_v14  ;;  %v4268_v46 = vpop.f32.mrb[9].mxu0  ;;  %v4876_v49 = vrot.slane %v4874_v41, 2  ;;  %v4879_v42 = vrot.slane %v4877_v51, 3 }
 0x3b4   : > { %v4705_v40 = vpack.c.bf16 %v4672_v1, %v4671_v32  ;;  %v10523_v36 = vadd.f32 %v13037_v14, %v4268_v46  ;;  %v10021_v21 = vpop.f32.mrb[10].mxu0  ;;  %v5688_v55 = vrot.slane %v4874_v41, 3  ;;  %v5689_v0 = vrot.slane %v4877_v51, 4  ;;  %v13120_v32 = vpop.permute.xlu0 %4589 }
 0x3b5   : > { %v4745_v15 = vrot.slane %v4706_v10, 4  ;;  %v4425_v3 = vmax.f32 %v10522_v29, 0.0  ;;  %v10524_v9 = vadd.f32 %v10021_v21, %v13037_v14  ;;  %v4271_v25 = vpop.f32.mrb[11].mxu0  ;;  %v4880_v59 = vor.u32 %v4879_v42, %v4876_v49  ;;  %v13130_v21 = vpop.permute.xlu1 %4594 }
 0x3b6   : > { %v4743_v18 = vrot.slane %v4705_v40, 4  ;;  %v4423_v35 = vmax.f32 %v10523_v36, 0.0  ;;  %v10525_v30 = vadd.f32 %v13037_v14, %v4271_v25  ;;  %v13090_v62 = vor.u32 %v5689_v0, %v5688_v55 }
 0x3b7   : > { %v4677_v20 = vmul.f32 %v13030_v17, %v4425_v3  ;;  %v4426_v54 = vmax.f32 %v10524_v9, 0.0  ;;  %v13093_v6 = vld [vmem:[#allocation2 + $0x8] sm:$0xff] }
 0x3b8   : > { %v13099_v11 = vsel %vm4739_vm6, %v4741_v24, %v4743_v18  ;;  %v13102_v22 = vsel %vm4739_vm6, %v4743_v18, %v4745_v15  ;;  %v4675_v4 = vmul.f32 %v13026_v44, %v4423_v35  ;;  %v4424_v47 = vmax.f32 %v10525_v30, 0.0 }
 0x3b9   : > { %4796 = vst [vmem:[#allocation2 + $0x18] sm:$0xff] %v13099_v11  ;;  %4797 = vst [vmem:[#allocation2 + $0x20] sm:$0xff] %v13102_v22  ;;  %v4678_v17 = vmul.f32 %v13032_v28, %v4426_v54  ;;  %v4865_v16 = vshrl.u32 %v13093_v6, 16  ;;  %v4868_v23 = vshll.u32 %v13093_v6, 16  ;;  %v4883_v56 = vshrl.u32 %v13099_v11, 16 }
 0x3ba   : > { %v4676_v24 = vmul.f32 %v13028_v45, %v4424_v47  ;;  %v10024_v52 = vpop.f32.mrb[12].mxu0  ;;  %v4886_v31 = vshll.u32 %v13099_v11, 16  ;;  %v4892_v44 = vshrl.u32 %v13102_v22, 16  ;;  %v4895_v7 = vshll.u32 %v13102_v22, 16 }
 0x3bb   : > { %v4708_v39 = vpack.c.bf16 %v4678_v17, %v4677_v20  ;;  %v10526_v19 = vadd.f32 %v10024_v52, %v13037_v14  ;;  %v4284_v41 = vpop.f32.mrb[13].mxu0  ;;  %v4867_v28 = vrot.slane %v4865_v16, 2  ;;  %v4870_v51 = vrot.slane %v4868_v23, 3  ;;  %v11420_v20 = vld [vmem:[#allocation8 + $0x48] sm:$0xff]  }
 0x3bc   : > { %v4707_v45 = vpack.c.bf16 %v4676_v24, %v4675_v4  ;;  %v10527_v1 = vadd.f32 %v13037_v14, %v4284_v41  ;;  %v10025_v58 = vpop.f32.mrb[14].mxu0  ;;  %v4885_v10 = vrot.slane %v4883_v56, 2  ;;  %v4888_v29 = vrot.slane %v4886_v31, 3 }
 0x3bd   : > { %v13127_v46 = vrot.slane %v4708_v39, 4  ;;  %v4429_v49 = vmax.f32 %v10526_v19, 0.0  ;;  %v10528_v42 = vadd.f32 %v10025_v58, %v13037_v14  ;;  %v4287_v40 = vpop.f32.mrb[15].mxu0  ;;  %v4871_v36 = vor.u32 %v4870_v51, %v4867_v28 }
 0x3be   : > { %v4747_v55 = vrot.slane %v4707_v45, 4  ;;  %v4427_v0 = vmax.f32 %v10527_v1, 0.0  ;;  %v10529_v3 = vadd.f32 %v13037_v14, %v4287_v40  ;;  %v4889_v9 = vor.u32 %v4888_v29, %v4885_v10  ;;  %v11421_v45 = vld [vmem:[#allocation8 + $0x50] sm:$0xff]  }
 0x3bf   : > { %v4681_v25 = vmul.f32 %v13049_v53, %v4429_v49  ;;  %v4430_v18 = vmax.f32 %v10528_v42, 0.0  ;;  %v4872_v35 = vsel %vm458_vm0, %v4863_v43, %v4871_v36  ;;  %v4881_v30 = vsel %vm458_vm0, %v4871_v36, %v4880_v59 }
 0x3c0   : > { %v13140_v54 = vsel %vm4739_vm6, %v4745_v15, %v4747_v55  ;;  %v13144_v4 = vsel %vm4739_vm6, %v4747_v55, %v13127_v46  ;;  %v4679_v47 = vmul.f32 %v13040_v50, %v4427_v0  ;;  %v4428_v17 = vmax.f32 %v10529_v3, 0.0  ;;  %10062 = vmatprep.mubr.bf16.mxu1 %v4872_v35  ;;  %v13155_v15 = vpop.permute.xlu0 %4599 }
 0x3c1   : > { %4798 = vst [vmem:[#allocation2 + $0x28] sm:$0xff] %v13140_v54  ;;  %4799 = vst [vmem:[#allocation2 + $0x30] sm:$0xff] %v13144_v4  ;;  %v4682_v53 = vmul.f32 %v13052_v2, %v4430_v18  ;;  %10063 = vmatmul.mubr.bf16.vlgmr.msra.gmra.mrb[0].mxu1 %v4881_v30  ;;  %v4890_v12 = vsel %vm458_vm0, %v4880_v59, %v4889_v9  ;;  %v4894_v57 = vrot.slane %v4892_v44, 2  ;;  %v4897_v43 = vrot.slane %v4895_v7, 3 }
 0x3c2   : > { %v4680_v50 = vmul.f32 %v13044_v38, %v4428_v17  ;;  %v10028_v24 = vpop.f32.mrb[16].mxu0  ;;  %10099 = vmatpush3.bf16.msra.mxu1 %v13019_v13  ;;  %10066 = vmatprep.mubr.bf16.mxu1 %v4890_v12  ;;  %v4901_v52 = vshrl.u32 %v13140_v54, 16  ;;  %v4904_v2 = vshll.u32 %v13140_v54, 16  ;;  %v14430_v59 = vshrl.u32 %v13144_v4, 16  ;;  %v13164_v38 = vpop.permute.xlu1 %4604 }
 0x3c3   : > { %v4710_v39 = vpack.c.bf16 %v4682_v53, %v4681_v25  ;;  %v10530_v19 = vadd.f32 %v10028_v24, %v13037_v14  ;;  %v4300_v41 = vpop.f32.mrb[17].mxu0  ;;  %v4898_v28 = vor.u32 %v4897_v43, %v4894_v57  ;;  %10100 = vmatprep.subr.bf16.mxu1 %v11420_v20  ;;  %v14429_v51 = vshll.u32 %v13144_v4, 16  ;;  %v11422_v53 = vld [vmem:[#allocation8 + $0x58] sm:$0xff]  }
 0x3c4   : > { %v4709_v1 = vpack.c.bf16 %v4680_v50, %v4679_v47  ;;  %v10531_v13 = vadd.f32 %v13037_v14, %v4300_v41  ;;  %v10029_v58 = vpop.f32.mrb[18].mxu0  ;;  %v4903_v10 = vrot.slane %v4901_v52, 2  ;;  %v4906_v29 = vrot.slane %v4904_v2, 3  ;;  %v13181_v12 = vpop.permute.xlu0 %4609 }
 0x3c5   : > { %v13171_v49 = vrot.slane %v4710_v39, 4  ;;  %v4433_v42 = vmax.f32 %v10530_v19, 0.0  ;;  %v10532_v40 = vadd.f32 %v10029_v58, %v13037_v14  ;;  %v4303_v36 = vpop.f32.mrb[19].mxu0  ;;  %v4899_v55 = vsel %vm458_vm0, %v4889_v9, %v4898_v28 }
 0x3c6   : > { %v4751_v0 = vrot.slane %v4709_v1, 4  ;;  %v4431_v3 = vmax.f32 %v10531_v13, 0.0  ;;  %v10533_v25 = vadd.f32 %v13037_v14, %v4303_v36  ;;  %10101 = vmatpush3.bf16.msra.mxu1 %v11420_v20  ;;  %v4907_v18 = vor.u32 %v4906_v29, %v4903_v10  ;;  %v13197_v39 = vpop.permute.xlu1 %4614 }
 0x3c7   : > { %v4685_v35 = vmul.f32 %v13087_v8, %v4433_v42  ;;  %v4434_v30 = vmax.f32 %v10532_v40, 0.0  ;;  %v4912_v47 = vrot.slane %v14430_v59, 2  ;;  %v4915_v17 = vrot.slane %v14429_v51, 3  ;;  %10102 = vmatprep.subr.bf16.mxu1 %v11421_v45 }
 0x3c8   : > { %v13185_v9 = vsel %vm4739_vm6, %v13127_v46, %v4751_v0  ;;  %v13189_v20 = vsel %vm4739_vm6, %v4751_v0, %v13171_v49  ;;  %v4683_v8 = vmul.f32 %v13063_v37, %v4431_v3  ;;  %v4432_v57 = vmax.f32 %v10533_v25, 0.0 }
 0x3c9   : > { %4800 = vst [vmem:[#allocation2 + $0x38] sm:$0xff] %v13185_v9  ;;  %4801 = vst [vmem:[#allocation2 + $0x40] sm:$0xff] %v13189_v20  ;;  %v4686_v43 = vmul.f32 %v13096_v48, %v4434_v30  ;;  %10067 = vmatmul.mubr.bf16.gmra.mrb[4].mxu1 %v4899_v55  ;;  %v4908_v50 = vsel %vm458_vm0, %v4898_v28, %v4907_v18  ;;  %v4916_v24 = vor.u32 %v4915_v17, %v4912_v47  ;;  %v4620_v30 = vpop.permute.xlu0 %4619 }
 0x3ca   : > { %v14428_v46 = vshrl.u32 %v13185_v9, 16  ;;  %v4684_v19 = vmul.f32 %v13075_v26, %v4432_v57  ;;  %v10032_v41 = vpop.f32.mrb[20].mxu0  ;;  %10070 = vmatprep.mubr.bf16.mxu1 %v4908_v50  ;;  %10103 = vmatpush3.bf16.msra.mxu1 %v11421_v45  ;;  %v14427_v37 = vshll.u32 %v13185_v9, 16  ;;  %v14419_v1 = vshrl.u32 %v13189_v20, 16  ;;  %v11423_v26 = vld [vmem:[#allocation8 + $0x60] sm:$0xff]  }
 0x3cb   : > { %v14418_v13 = vshll.u32 %v13189_v20, 16  ;;  %v4712_v48 = vpack.c.bf16 %v4686_v43, %v4685_v35  ;;  %v10534_v58 = vadd.f32 %v10032_v41, %v13037_v14  ;;  %v4316_v28 = vpop.f32.mrb[21].mxu0  ;;  %v4917_v10 = vsel %vm458_vm0, %v4907_v18, %v4916_v24  ;;  %10104 = vmatprep.subr.bf16.mxu1 %v11422_v53  ;;  %v11424_v41 = vld [vmem:[#allocation8 + $0x68] sm:$0xff]  }
 0x3cc   : > { %v4921_v29 = vrot.slane %v14428_v46, 2  ;;  %v4711_v42 = vpack.c.bf16 %v4684_v19, %v4683_v8  ;;  %v10535_v45 = vadd.f32 %v13037_v14, %v4316_v28  ;;  %v10033_v40 = vpop.f32.mrb[22].mxu0  ;;  %v4924_v36 = vrot.slane %v14427_v37, 3 }
 0x3cd   : > { %v4930_v55 = vrot.slane %v14419_v1, 2  ;;  %v13212_v0 = vrot.slane %v4712_v48, 4  ;;  %v4437_v3 = vmax.f32 %v10534_v58, 0.0  ;;  %v10536_v25 = vadd.f32 %v10033_v40, %v13037_v14  ;;  %v4319_v18 = vpop.f32.mrb[23].mxu0  ;;  %v4625_v58 = vpop.permute.xlu1 %4624 }
 0x3ce   : > { %v4933_v35 = vrot.slane %v14418_v13, 3  ;;  %v4755_v47 = vrot.slane %v4711_v42, 4  ;;  %v4435_v17 = vmax.f32 %v10535_v45, 0.0  ;;  %v10537_v8 = vadd.f32 %v13037_v14, %v4319_v18  ;;  %10105 = vmatpush3.bf16.msra.mxu1 %v11422_v53 }
 0x3cf   : > { %v4925_v57 = vor.u32 %v4924_v36, %v4921_v29  ;;  %v4689_v43 = vmul.f32 %v13155_v15, %v4437_v3  ;;  %v4438_v50 = vmax.f32 %v10536_v25, 0.0  ;;  %10106 = vmatprep.subr.bf16.mxu1 %v11423_v26  ;;  %v5343_v48 = vrot.slane %v13093_v6, 3 }
 0x3d0   : > { %v4934_v19 = vor.u32 %v4933_v35, %v4930_v55  ;;  %v13222_v28 = vsel %vm4739_vm6, %v13171_v49, %v4755_v47  ;;  %v13226_v42 = vsel %vm4739_vm6, %v4755_v47, %v13212_v0  ;;  %v4687_v29 = vmul.f32 %v13120_v32, %v4435_v17  ;;  %v11425_v35 = vld [vmem:[#allocation8 + $0x70] sm:$0xff]   ;;  %v13247_v47 = vpop.permute.xlu0 %4629 }
 0x3d1   : > { %v4436_v53 = vmax.f32 %v10537_v8, 0.0  ;;  %4802 = vst [vmem:[#allocation2 + $0x48] sm:$0xff] %v13222_v28  ;;  %4803 = vst [vmem:[#allocation2 + $0x50] sm:$0xff] %v13226_v42  ;;  %v4690_v15 = vmul.f32 %v13164_v38, %v4438_v50  ;;  %10071 = vmatmul.mubr.bf16.gmra.mrb[8].mxu1 %v4917_v10  ;;  %v4926_v45 = vsel %vm458_vm0, %v4916_v24, %v4925_v57  ;;  %v14414_v49 = vshrl.u32 %v13222_v28, 16 }
 0x3d2   : > { %v4935_v40 = vsel %vm458_vm0, %v4925_v57, %v4934_v19  ;;  %v10036_v55 = vpop.f32.mrb[24].mxu0  ;;  %10074 = vmatprep.mubr.bf16.mxu1 %v4926_v45  ;;  %v14413_v32 = vshll.u32 %v13222_v28, 16  ;;  %v14415_v3 = vshrl.u32 %v13226_v42, 16  ;;  %v14417_v25 = vshll.u32 %v13226_v42, 16  ;;  %10107 = vmatpush3.bf16.msra.mxu1 %v11423_v26  ;;  %v13259_v45 = vpop.permute.xlu1 %4634 }
 0x3d3   : > { %v4688_v36 = vmul.f32 %v13130_v21, %v4436_v53  ;;  %v4714_v18 = vpack.c.bf16 %v4690_v15, %v4689_v43  ;;  %v10538_v38 = vadd.f32 %v10036_v55, %v13037_v14  ;;  %v4332_v10 = vpop.f32.mrb[25].mxu0  ;;  %v4939_v24 = vrot.slane %v14414_v49, 2  ;;  %10108 = vmatprep.subr.bf16.mxu1 %v11424_v41 }
 0x3d4   : > { %v13245_v21 = vsel %vm929_vm1, %v5342_v63, %v5343_v48  ;;  %v10539_v8 = vadd.f32 %v13037_v14, %v4332_v10  ;;  %v10037_v26 = vpop.f32.mrb[26].mxu0  ;;  %v4942_v57 = vrot.slane %v14413_v32, 3  ;;  %v4948_v43 = vrot.slane %v14415_v3, 2 }
 0x3d5   : > { %v4713_v17 = vpack.c.bf16 %v4688_v36, %v4687_v29  ;;  %v13254_v50 = vrot.slane %v4714_v18, 4  ;;  %v4441_v53 = vmax.f32 %v10538_v38, 0.0  ;;  %v10540_v61 = vadd.f32 %v10037_v26, %v13037_v14  ;;  %v4335_v15 = vpop.f32.mrb[27].mxu0  ;;  %v11426_v18 = vld [vmem:[#allocation8 + $0x78] sm:$0xff]  }
 0x3d6   : > { %v4951_v63 = vrot.slane %v14417_v25, 3  ;;  %v4439_v36 = vmax.f32 %v10539_v8, 0.0  ;;  %v10541_v55 = vadd.f32 %v13037_v14, %v4335_v15  ;;  %v4943_v10 = vor.u32 %v4942_v57, %v4939_v24  ;;  %10109 = vmatpush3.bf16.msra.mxu1 %v11424_v41  ;;  %v4640_v57 = vpop.permute.xlu0 %4639 }
 0x3d7   : > { %v4759_v29 = vrot.slane %v4713_v17, 4  ;;  %v4693_v32 = vmul.f32 %v4620_v30, %v4441_v53  ;;  %v4442_v49 = vmax.f32 %v10540_v61, 0.0  ;;  %10110 = vmatprep.subr.bf16.mxu1 %v11425_v35  ;;  %v13265_v38 = vsel %vm929_vm1, %v5343_v48, %v5345_v60 }
 0x3d8   : > { %v4952_v3 = vor.u32 %v4951_v63, %v4948_v43  ;;  %v4691_v41 = vmul.f32 %v13181_v12, %v4439_v36  ;;  %v4440_v30 = vmax.f32 %v10541_v55, 0.0  ;;  %v4944_v48 = vsel %vm458_vm0, %v4934_v19, %v4943_v10  ;;  %v13288_v63 = vld [vmem:[#allocation8 + $0x80] sm:$0xff]  }
 0x3d9   : > { %v13269_v26 = vsel %vm4739_vm6, %v13212_v0, %v4759_v29  ;;  %v13273_v17 = vsel %vm4739_vm6, %v4759_v29, %v13254_v50  ;;  %v4694_v24 = vmul.f32 %v4625_v58, %v4442_v49  ;;  %10075 = vmatmul.mubr.bf16.gmra.mrb[12].mxu1 %v4935_v40  ;;  %v4645_v29 = vpop.permute.xlu1 %4644  ;;  %v5684_v5 = vrot.slane %v4865_v16, 3 }
 0x3da   : > { %4804 = vst [vmem:[#allocation2 + $0x58] sm:$0xff] %v13269_v26  ;;  %4805 = vst [vmem:[#allocation2 + $0x60] sm:$0xff] %v13273_v17  ;;  %v4953_v8 = vsel %vm458_vm0, %v4943_v10, %v4952_v3  ;;  %v14416_v0 = vshrl.u32 %v13269_v26, 16  ;;  %v4692_v43 = vmul.f32 %v13197_v39, %v4440_v30  ;;  %v10040_v53 = vpop.f32.mrb[28].mxu0  ;;  %10078 = vmatprep.mubr.bf16.mxu1 %v4944_v48  ;;  %v14420_v12 = vshll.u32 %v13269_v26, 16 }
 0x3db   : > { %v14423_v61 = vshrl.u32 %v13273_v17, 16  ;;  %v14422_v15 = vshll.u32 %v13273_v17, 16  ;;  %10111 = vmatpush3.bf16.msra.mxu1 %v11425_v35  ;;  %v4716_v58 = vpack.c.bf16 %v4694_v24, %v4693_v32  ;;  %v10542_v40 = vadd.f32 %v10040_v53, %v13037_v14  ;;  %v4348_v19 = vpop.f32.mrb[29].mxu0 }
 0x3dc   : > { %v4957_v49 = vrot.slane %v14416_v0, 2  ;;  %10112 = vmatprep.subr.bf16.mxu1 %v11426_v18  ;;  %v5347_v39 = vrot.slane %v13099_v11, 3  ;;  %v4715_v36 = vpack.c.bf16 %v4692_v43, %v4691_v41  ;;  %v10543_v55 = vadd.f32 %v13037_v14, %v4348_v19  ;;  %v10041_v10 = vpop.f32.mrb[30].mxu0 }
 0x3dd   : > { %v4960_v35 = vrot.slane %v14420_v12, 3  ;;  %v4966_v32 = vrot.slane %v14423_v61, 2  ;;  %v4765_v30 = vrot.slane %v4716_v58, 4  ;;  %v4445_v24 = vmax.f32 %v10542_v40, 0.0  ;;  %v4351_v53 = vpop.f32.mrb[31].mxu0  ;;  %v4650_v40 = vpop.permute.xlu0 %4649 }
 0x3de   : > { %v10544_v48 = vadd.f32 %v10041_v10, %v13037_v14  ;;  %v4969_v0 = vrot.slane %v14422_v15, 3  ;;  %v4763_v25 = vrot.slane %v4715_v36, 4  ;;  %v4443_v13 = vmax.f32 %v10543_v55, 0.0 }
 0x3df   : > { %v10545_v41 = vadd.f32 %v13037_v14, %v4351_v53  ;;  %v4961_v43 = vor.u32 %v4960_v35, %v4957_v49  ;;  %10113 = vmatpush3.bf16.msra.mxu1 %v11426_v18  ;;  %v4697_v19 = vmul.f32 %v4640_v57, %v4445_v24  ;;  %v13306_v58 = vsel %vm929_vm1, %v5345_v60, %v5347_v39 }
 0x3e0   : > { %v4446_v1 = vmax.f32 %v10544_v48, 0.0  ;;  %v4970_v12 = vor.u32 %v4969_v0, %v4966_v32  ;;  %10150 = vmatprep.subr.bf16.mxu1 %v13288_v63  ;;  %v13310_v36 = vsel %vm4739_vm6, %v13254_v50, %v4763_v25  ;;  %v13313_v49 = vsel %vm4739_vm6, %v4763_v25, %v4765_v30  ;;  %v4655_v50 = vpop.permute.xlu1 %4654 }
 0x3e1   : > { %v4695_v18 = vmul.f32 %v13247_v47, %v4443_v13  ;;  %v4444_v0 = vmax.f32 %v10545_v41, 0.0  ;;  %4806 = vst [vmem:[#allocation2 + $0x68] sm:$0xff] %v13310_v36  ;;  %4807 = vst [vmem:[#allocation2 + $0x70] sm:$0xff] %v13313_v49  ;;  %10079 = vmatmul.mubr.bf16.gmra.mrb[16].mxu1 %v4953_v8  ;;  %v4962_v33 = vsel %vm458_vm0, %v4952_v3, %v4961_v43  ;;  %v14421_v55 = vshrl.u32 %v13310_v36, 16 }
 0x3e2   : > { %v4698_v57 = vmul.f32 %v4645_v29, %v4446_v1  ;;  %v4971_v60 = vsel %vm458_vm0, %v4961_v43, %v4970_v12  ;;  %v10044_v25 = vpop.f32.mrb[32].mxu0  ;;  %10082 = vmatprep.mubr.bf16.mxu1 %v4962_v33  ;;  %v14424_v13 = vshll.u32 %v13310_v36, 16  ;;  %v14426_v47 = vshrl.u32 %v13313_v49, 16 }
 0x3e3   : > { %v4696_v10 = vmul.f32 %v13259_v45, %v4444_v0  ;;  %v14425_v35 = vshll.u32 %v13313_v49, 16  ;;  %v10546_v1 = vadd.f32 %v10044_v25, %v13037_v14  ;;  %v4364_v8 = vpop.f32.mrb[33].mxu0  ;;  %v4975_v3 = vrot.slane %v14421_v55, 2  ;;  %v4660_v25 = vpop.permute.xlu0 %4659 }
 0x3e4   : > { %v4718_v32 = vpack.c.bf16 %v4698_v57, %v4697_v19  ;;  %v5349_v29 = vrot.slane %v13102_v22, 3  ;;  %v10547_v45 = vadd.f32 %v13037_v14, %v4364_v8  ;;  %v10045_v48 = vpop.f32.mrb[34].mxu0  ;;  %v4978_v53 = vrot.slane %v14424_v13, 3 }
 0x3e5   : > { %v4717_v24 = vpack.c.bf16 %v4696_v10, %v4695_v18  ;;  %v4984_v41 = vrot.slane %v14426_v47, 2  ;;  %v4449_v19 = vmax.f32 %v10546_v1, 0.0  ;;  %v10548_v0 = vadd.f32 %v10045_v48, %v13037_v14  ;;  %v4367_v57 = vpop.f32.mrb[35].mxu0  ;;  %v4665_v1 = vpop.permute.xlu1 %4664 }
 0x3e6   : > { %v4769_v43 = vrot.slane %v4718_v32, 4  ;;  %v4987_v33 = vrot.slane %v14425_v35, 3  ;;  %v4447_v18 = vmax.f32 %v10547_v45, 0.0  ;;  %v10549_v10 = vadd.f32 %v13037_v14, %v4367_v57 }
 0x3e7   : > { %v4767_v55 = vrot.slane %v4717_v24, 4  ;;  %v4979_v8 = vor.u32 %v4978_v53, %v4975_v3  ;;  %v4701_v15 = vmul.f32 %v4660_v25, %v4449_v19  ;;  %v4450_v61 = vmax.f32 %v10548_v0, 0.0 }
 0x3e8   : > { %v4988_v13 = vor.u32 %v4987_v33, %v4984_v41  ;;  %v13341_v32 = vsel %vm929_vm1, %v5347_v39, %v5349_v29  ;;  %v4699_v24 = vmul.f32 %v4650_v40, %v4447_v18  ;;  %v4448_v45 = vmax.f32 %v10549_v10, 0.0 }
 0x3e9   : > { %v13344_v48 = vsel %vm4739_vm6, %v4765_v30, %v4767_v55  ;;  %v13347_v35 = vsel %vm4739_vm6, %v4767_v55, %v4769_v43  ;;  %v4702_v14 = vmul.f32 %v4665_v1, %v4450_v61  ;;  %10083 = vmatmul.mubr.bf16.gmra.mrb[20].mxu1 %v4971_v60  ;;  %v4980_v3 = vsel %vm458_vm0, %v4970_v12, %v4979_v8 }
 0x3ea   : > { %4808 = vst [vmem:[#allocation2 + $0x78] sm:$0xff] %v13344_v48  ;;  %4809 = vst [vmem:[#allocation2 + $0x80] sm:$0xff] %v13347_v35  ;;  %v4989_v39 = vsel %vm458_vm0, %v4979_v8, %v4988_v13  ;;  %v13354_v53 = vshrl.u32 %v13344_v48, 16  ;;  %v4700_v30 = vmul.f32 %v4655_v50, %v4448_v45  ;;  %10086 = vmatprep.mubr.bf16.mxu1 %v4980_v3  ;;  %v13357_v55 = vshll.u32 %v13344_v48, 16 }
 0x3eb   : > { %v13360_v40 = vshrl.u32 %v13347_v35, 16  ;;  %v13363_v41 = vshll.u32 %v13347_v35, 16  ;;  %v4720_v61 = vpack.c.bf16 %v4702_v14, %v4701_v15  ;;  %v5351_v12 = vrot.slane %v13140_v54, 3 }
 0x3ec   : > { %v4993_v60 = vrot.slane %v13354_v53, 2  ;;  %v5353_v19 = vrot.slane %v13144_v4, 3  ;;  %v4719_v0 = vpack.c.bf16 %v4700_v30, %v4699_v24  ;;  %v4996_v50 = vrot.slane %v13357_v55, 3 }
 0x3ed   : > { %14513 = vst [vmem:[#allocation13_spill] sm:$0xff] %v13360_v40  ;;  %14514 = vst [vmem:[#allocation14_spill] sm:$0xff] %v13363_v41  ;;  %v5002_v57 = vrot.slane %v13360_v40, 2  ;;  %v5005_v33 = vrot.slane %v13363_v41, 3  ;;  %v4773_v25 = vrot.slane %v4720_v61, 4  ;;  %v13372_v18 = vsel %vm929_vm1, %v5349_v29, %v5351_v12 }
 0x3ee   : > { %v13375_v10 = vsel %vm929_vm1, %v5351_v12, %v5353_v19  ;;  %v5355_v15 = vrot.slane %v13185_v9, 3  ;;  %v4771_v8 = vrot.slane %v4719_v0, 4  ;;  %v4997_v1 = vor.u32 %v4996_v50, %v4993_v60 }
 0x3ef   : > { %v5006_v45 = vor.u32 %v5005_v33, %v5002_v57  ;;  %v5357_v24 = vrot.slane %v13189_v20, 3  ;;  %4812 = vst [vmem:[#allocation2 + $0x98] sm:$0xf] %v4773_v25  ;;  %v5359_v3 = vrot.slane %v13222_v28, 3  ;;  %v5361_v30 = vrot.slane %v13226_v42, 3 }
 0x3f0   : > { %v13380_v14 = vsel %vm929_vm1, %v5353_v19, %v5355_v15  ;;  %v5363_v29 = vrot.slane %v13269_v26, 3  ;;  %v13386_v61 = vsel %vm4739_vm6, %v4769_v43, %v4771_v8  ;;  %v13389_v12 = vsel %vm4739_vm6, %v4771_v8, %v4773_v25 }
 0x3f1   : > { %v4998_v60 = vsel %vm458_vm0, %v4988_v13, %v4997_v1  ;;  %v5007_v0 = vsel %vm458_vm0, %v4997_v1, %v5006_v45  ;;  %4810 = vst [vmem:[#allocation2 + $0x88] sm:$0xff] %v13386_v61  ;;  %4811 = vst [vmem:[#allocation2 + $0x90] sm:$0xff] %v13389_v12  ;;  %10087 = vmatmul.mubr.bf16.gmra.mrb[24].mxu1 %v4989_v39  ;;  %v13396_v19 = vshrl.u32 %v13386_v61, 16  ;;  %v13399_v50 = vshll.u32 %v13386_v61, 16 }
 0x3f2   : > { %v13402_v43 = vsel %vm929_vm1, %v5355_v15, %v5357_v24  ;;  %v13405_v57 = vsel %vm929_vm1, %v5357_v24, %v5359_v3  ;;  %10090 = vmatprep.mubr.bf16.mxu1 %v4998_v60  ;;  %v13408_v13 = vsel %vm929_vm1, %v5359_v3, %v5361_v30  ;;  %v13411_v33 = vsel %vm929_vm1, %v5361_v30, %v5363_v29 }
 0x3f3   : > { %v5365_v39 = vrot.slane %v13273_v17, 3  ;;  %v5367_v25 = vrot.slane %v13310_v36, 3  ;;  %v5011_v8 = vrot.slane %v13396_v19, 2  ;;  %v5014_v1 = vrot.slane %v13399_v50, 3 }
 0x3f4   : > { %v5369_v15 = vrot.slane %v13313_v49, 3  ;;  %v5371_v24 = vrot.slane %v13344_v48, 3  ;;  %v5373_v30 = vrot.slane %v13347_v35, 3  ;;  %v5375_v47 = vrot.slane %v13386_v61, 3 }
 0x3f5   : > { %v13420_v60 = vsel %vm929_vm1, %v5363_v29, %v5365_v39  ;;  %v13423_v3 = vsel %vm929_vm1, %v5365_v39, %v5367_v25  ;;  %v5015_v37 = vor.u32 %v5014_v1, %v5011_v8  ;;  %v5685_v59 = vrot.slane %v4868_v23, 4 }
 0x3f6   : > { %v13428_v46 = vsel %vm929_vm1, %v5367_v25, %v5369_v15  ;;  %v13431_v51 = vsel %vm929_vm1, %v5369_v15, %v5371_v24  ;;  %v13436_v29 = vsel %vm929_vm1, %v5371_v24, %v5373_v30  ;;  %v13439_v39 = vsel %vm929_vm1, %v5373_v30, %v5375_v47 }
 0x3f7   : > { %v5692_v8 = vrot.slane %v4883_v56, 3  ;;  %v5016_v25 = vsel %vm458_vm0, %v5006_v45, %v5015_v37  ;;  %v5693_v1 = vrot.slane %v4886_v31, 4  ;;  %v5696_v16 = vrot.slane %v4892_v44, 3 }
 0x3f8   : > { %v5697_v15 = vrot.slane %v4895_v7, 4  ;;  %v4839_v24 = vld [vmem:[#allocation2 + $0x90] sm:$0x7]  ;;  %v5686_v30 = vor.u32 %v5685_v59, %v5684_v5  ;;  %v5700_v6 = vrot.slane %v4901_v52, 3  ;;  %v5701_v23 = vrot.slane %v4904_v2, 4 }
 0x3f9   : > { %v14515_v56 = vshrl.u32 %v13144_v4, 16  ;;  %10091 = vmatmul.mubr.bf16.gmra.mrb[28].mxu1 %v5007_v0  ;;  %v5018_v11 = vshrl.u32 %v4839_v24, 16  ;;  %v5021_v31 = vshll.u32 %v4839_v24, 16  ;;  %v5377_v41 = vrot.slane %v4839_v24, 3 }
 0x3fa   : > { %v5694_v40 = vor.u32 %v5693_v1, %v5692_v8  ;;  %10094 = vmatprep.mubr.bf16.mxu1 %v5016_v25  ;;  %v14516_v22 = vor.u32 %v13070_v34, %v13068_v27  ;;  %v13466_v44 = vsel %vm1267_vm2, %v5686_v30, %v13090_v62  ;;  %v5698_v7 = vor.u32 %v5697_v15, %v5696_v16 }
 0x3fb   : > { %v5704_v45 = vrot.slane %v14515_v56, 3  ;;  %v5702_v54 = vor.u32 %v5701_v23, %v5700_v6  ;;  %v5020_v52 = vrot.slane %v5018_v11, 2  ;;  %v5023_v2 = vrot.slane %v5021_v31, 3 }
 0x3fc   : > { %v13462_v5 = vsel %vm1267_vm2, %v14516_v22, %v5686_v30  ;;  %v13469_v59 = vsel %vm929_vm1, %v5375_v47, %v5377_v41  ;;  %v13473_v0 = vsel %vm1267_vm2, %v13090_v62, %v5694_v40  ;;  %v13476_v27 = vsel %vm1267_vm2, %v5694_v40, %v5698_v7 }
 0x3fd   : > { %v13479_v34 = vsel %vm1267_vm2, %v5698_v7, %v5702_v54  ;;  %v14517_v8 = vshll.u32 %v13144_v4, 16  ;;  %v14518_v1 = vshrl.u32 %v13185_v9, 16  ;;  %v5024_v15 = vor.u32 %v5023_v2, %v5020_v52 }
 0x3fe   : > { %v14519_v47 = vshll.u32 %v13185_v9, 16  ;;  %v14520_v24 = vshrl.u32 %v13189_v20, 16  ;;  %v14521_v30 = vshll.u32 %v13189_v20, 16  ;;  %v14522_v23 = vshrl.u32 %v13222_v28, 16 }
 0x3ff   : > { %v5705_v25 = vrot.slane %v14517_v8, 4  ;;  %v5708_v16 = vrot.slane %v14518_v1, 3  ;;  %v14523_v4 = vshll.u32 %v13222_v28, 16  ;;  %v14524_v31 = vshrl.u32 %v13226_v42, 16 }
 0x400   : > { %v5709_v41 = vrot.slane %v14519_v47, 4  ;;  %v5712_v62 = vrot.slane %v14520_v24, 3  ;;  %v5713_v40 = vrot.slane %v14521_v30, 4  ;;  %v5716_v56 = vrot.slane %v14522_v23, 3 }
 0x401   : > { %v5706_v6 = vor.u32 %v5705_v25, %v5704_v45  ;;  %v5717_v11 = vrot.slane %v14523_v4, 4  ;;  %v5720_v22 = vrot.slane %v14524_v31, 3  ;;  %v5025_v7 = vsel %vm458_vm0, %v5015_v37, %v5024_v15 }
 0x402   : > { %v5710_v9 = vor.u32 %v5709_v41, %v5708_v16  ;;  %v5714_v52 = vor.u32 %v5713_v40, %v5712_v62  ;;  %v14525_v2 = vshll.u32 %v13226_v42, 16  ;;  %v14526_v25 = vshrl.u32 %v13269_v26, 16  ;;  %10095 = vmatmul.mubr.bf16.gmra.mrb[32].mxu1 %v5025_v7 }
 0x403   : > { %v13501_v20 = vsel %vm1267_vm2, %v5702_v54, %v5706_v6  ;;  %v5718_v45 = vor.u32 %v5717_v11, %v5716_v56  ;;  %v14527_v28 = vshll.u32 %v13269_v26, 16  ;;  %v14528_v42 = vshrl.u32 %v13273_v17, 16  ;;  %10114 = vmatprep.mubr.bf16.mxu1 %v13245_v21 }
 0x404   : > { %v5721_v8 = vrot.slane %v14525_v2, 4  ;;  %v5724_v1 = vrot.slane %v14526_v25, 3  ;;  %v13508_v24 = vsel %vm1267_vm2, %v5706_v6, %v5710_v9  ;;  %v13511_v37 = vsel %vm1267_vm2, %v5710_v9, %v5714_v52  ;;  %v11428_v2 = vld [vmem:[#allocation8 + $0x88] sm:$0xff]   ;;  %v11431_v25 = vld [vmem:[#allocation8 + $0xa0] sm:$0xff]  }
 0x405   : > { %v5725_v47 = vrot.slane %v14527_v28, 4  ;;  %v5728_v15 = vrot.slane %v14528_v42, 3  ;;  %v13517_v54 = vsel %vm1267_vm2, %v5714_v52, %v5718_v45  ;;  %v14529_v26 = vshll.u32 %v13273_v17, 16 }
 0x406   : > { %v5722_v16 = vor.u32 %v5721_v8, %v5720_v22  ;;  %v14530_v30 = vshrl.u32 %v13310_v36, 16  ;;  %v14531_v23 = vshll.u32 %v13310_v36, 16  ;;  %v14532_v4 = vshrl.u32 %v13313_v49, 16 }
 0x407   : > { %v5726_v41 = vor.u32 %v5725_v47, %v5724_v1  ;;  %v5729_v62 = vrot.slane %v14529_v26, 4  ;;  %v14533_v21 = vshll.u32 %v13313_v49, 16  ;;  %v11429_v49 = vld [vmem:[#allocation8 + $0x90] sm:$0xff]   ;;  %v11432_v1 = vld [vmem:[#allocation8 + $0xa8] sm:$0xff]   ;;  %v14436_v28 = vshll.u32 %v13389_v12, 16  ;;  %v13560_v47 = vld [vmem:[#allocation2 + $0x10] sm:$0xff] }
 0x408   : > { %v5732_v40 = vrot.slane %v14530_v30, 3  ;;  %v13524_v6 = vsel %vm1267_vm2, %v5718_v45, %v5722_v16  ;;  %v5733_v56 = vrot.slane %v14531_v23, 4  ;;  %v5736_v11 = vrot.slane %v14532_v4, 3  ;;  %v11430_v45 = vld [vmem:[#allocation8 + $0x98] sm:$0xff]   ;;  %v13576_v30 = vld [vmem:[#allocation2 + $0x38] sm:$0xff] }
 0x409   : > { %v5737_v31 = vrot.slane %v14533_v21, 4  ;;  %v13533_v22 = vsel %vm1267_vm2, %v5722_v16, %v5726_v41  ;;  %v5730_v17 = vor.u32 %v5729_v62, %v5728_v15  ;;  %v13562_v16 = vld [vmem:[#allocation2 + $0x20] sm:$0xff]  ;;  %v13568_v15 = vld [vmem:[#allocation2 + $0x28] sm:$0xff]  ;;  %v13574_v62 = vld [vmem:[#allocation2 + $0x30] sm:$0xff] }
 0x40a   : > { %v5734_v7 = vor.u32 %v5733_v56, %v5732_v40  ;;  %10115 = vmatmul.mubr.bf16.vlgmr.msra.gmra.mrb[0].mxu1 %v13265_v38  ;;  %v11433_v38 = vld [vmem:[#allocation8 + $0xb0] sm:$0xff]   ;;  %v13578_v40 = vld [vmem:[#allocation2 + $0x40] sm:$0xff]  ;;  %v14435_v56 = vrot.slane %v13560_v47, 4  ;;  %v6567_v4 = vrot.slane %v13562_v16, 4  ;;  %v13587_v21 = vld [vmem:[#allocation2 + $0x50] sm:$0xff] }
 0x40b   : > { %v13535_v9 = vor.u32 %v5737_v31, %v5736_v11  ;;  %v13538_v52 = vsel %vm1267_vm2, %v5726_v41, %v5730_v17  ;;  %10118 = vmatprep.mubr.bf16.mxu1 %v13306_v58  ;;  %10151 = vmatpush3.bf16.msra.mxu1 %v13288_v63  ;;  %v5748_v63 = vrot.slane %v13396_v19, 3  ;;  %v5749_v58 = vrot.slane %v13399_v50, 4  ;;  %v13585_v11 = vld [vmem:[#allocation2 + $0x48] sm:$0xff] }
 0x40c   : > { %v13541_v36 = vsel %vm1267_vm2, %v5730_v17, %v5734_v7  ;;  %10152 = vmatprep.subr.bf16.mxu1 %v11428_v2  ;;  %v6234_v41 = vrot.slane %v14436_v28, 4  ;;  %v6569_v31 = vrot.slane %v13568_v15, 4  ;;  %v13592_v17 = vld [vmem:[#allocation8 + $0xc0] sm:$0xff]  }
 0x40d   : > { %v13545_v8 = vsel %vm1267_vm2, %v5734_v7, %v13535_v9  ;;  %v13566_v42 = vor.u32 %v5749_v58, %v5748_v63  ;;  %v6573_v63 = vrot.slane %v13576_v30, 4  ;;  %v6575_v58 = vrot.slane %v13578_v40, 4 }
 0x40f   : > { %10153 = vmatpush3.bf16.msra.mxu1 %v11428_v2  ;;  %v13595_v2 = vld [vmem:[#allocation2 + $0x60] sm:$0xff] }
 0x410   : > { %10154 = vmatprep.subr.bf16.mxu1 %v11429_v49 }
 0x412   : > { %10119 = vmatmul.mubr.bf16.gmra.mrb[4].mxu1 %v13341_v32  ;;  %v14437_v32 = vshrl.u32 %v13389_v12, 16 }
 0x413   : > { %10122 = vmatprep.mubr.bf16.mxu1 %v13372_v18  ;;  %10155 = vmatpush3.bf16.msra.mxu1 %v11429_v49  ;;  %v13557_v18 = vld [vmem:[#allocation2 + $0x18] sm:$0xff] }
 0x414   : > { %10156 = vmatprep.subr.bf16.mxu1 %v11430_v45  ;;  %14534 = vst [vmem:[#allocation15_spill] sm:$0xff] %v13557_v18  ;;  %v6565_v26 = vrot.slane %v13557_v18, 4 }
 0x416   : > { %v13605_v49 = vsel %vm4739_vm6, %v14435_v56, %v6565_v26  ;;  %v6577_v56 = vrot.slane %v13585_v11, 4 }
 0x417   : > { %10157 = vmatpush3.bf16.msra.mxu1 %v11430_v45  ;;  %14537 = vst [vmem:[#allocation18_spill] sm:$0xff] %v13605_v49  ;;  %v13608_v45 = vsel %vm4739_vm6, %v6565_v26, %v6567_v4  ;;  %v6579_v26 = vrot.slane %v13587_v21, 4 }
 0x418   : > { %10158 = vmatprep.subr.bf16.mxu1 %v11431_v25  ;;  %14538 = vst [vmem:[#allocation19_spill] sm:$0xff] %v13608_v45  ;;  %v13637_v45 = vld [vmem:[#allocation2 + $0x8] sm:$0xf0]  ;;  %v13640_v49 = vsel %vm4739_vm6, %v6575_v58, %v6577_v56 }
 0x419   : > { %14544 = vst [vmem:[#allocation25_spill] sm:$0xff] %v13637_v45  ;;  %14545 = vst [vmem:[#allocation26_spill] sm:$0xff] %v13640_v49 }
 0x41a   : > { %10123 = vmatmul.mubr.bf16.gmra.mrb[8].mxu1 %v13375_v10  ;;  %v6231_v10 = vrot.slane %v14437_v32, 3  ;;  %v13624_v32 = vld [vmem:[#allocation2 + $0x98] sm:$0xf] }
 0x41b   : > { %10126 = vmatprep.mubr.bf16.mxu1 %v13380_v14  ;;  %10159 = vmatpush3.bf16.msra.mxu1 %v11431_v25  ;;  %v11434_v14 = vld [vmem:[#allocation8 + $0xb8] sm:$0xff]   ;;  %v13610_v25 = vld [vmem:[#allocation2 + $0x68] sm:$0xff]  ;;  %14540 = vst [vmem:[#allocation21_spill] sm:$0xff] %v13624_v32 }
 0x41c   : > { %10160 = vmatprep.subr.bf16.mxu1 %v11432_v1  ;;  %v13580_v23 = vor.u32 %v6234_v41, %v6231_v10  ;;  %v13619_v41 = vld [vmem:[#allocation2 + $0x70] sm:$0xff]  ;;  %v6583_v10 = vrot.slane %v13595_v2, 4 }
 0x41e   : > { %14535 = vst [vmem:[#allocation16_spill] sm:$0xff] %v13580_v23 }
 0x41f   : > { %10161 = vmatpush3.bf16.msra.mxu1 %v11432_v1  ;;  %v13613_v1 = vsel %vm4739_vm6, %v6567_v4, %v6569_v31 }
 0x420   : > { %10162 = vmatprep.subr.bf16.mxu1 %v11433_v38  ;;  %14539 = vst [vmem:[#allocation20_spill] sm:$0xff] %v13613_v1  ;;  %v13633_v1 = vsel %vm4739_vm6, %v6573_v63, %v6575_v58 }
 0x421   : > { %14543 = vst [vmem:[#allocation24_spill] sm:$0xff] %v13633_v1  ;;  %v6587_v1 = vrot.slane %v13619_v41, 4 }
 0x422   : > { %10127 = vmatmul.mubr.bf16.gmra.mrb[12].mxu1 %v13402_v43  ;;  %v13589_v43 = vld [vmem:[#allocation2 + $0x58] sm:$0xff] }
 0x423   : > { %10130 = vmatprep.mubr.bf16.mxu1 %v13405_v57  ;;  %10163 = vmatpush3.bf16.msra.mxu1 %v11433_v38  ;;  %v13600_v57 = vsel %vm1267_vm2, %v13566_v42, %v13580_v23  ;;  %v6571_v38 = vrot.slane %v13574_v62, 4  ;;  %v6581_v28 = vrot.slane %v13589_v43, 4 }
 0x424   : > { %10164 = vmatprep.subr.bf16.mxu1 %v11434_v14  ;;  %14536 = vst [vmem:[#allocation17_spill] sm:$0xff] %v13600_v57 }
 0x425   : > { %v13627_v4 = vsel %vm4739_vm6, %v6569_v31, %v6571_v38  ;;  %v13630_v7 = vsel %vm4739_vm6, %v6571_v38, %v6573_v63  ;;  %v13646_v31 = vsel %vm4739_vm6, %v6579_v26, %v6581_v28  ;;  %v6585_v38 = vrot.slane %v13610_v25, 4 }
 0x426   : > { %14541 = vst [vmem:[#allocation22_spill] sm:$0xff] %v13627_v4  ;;  %14542 = vst [vmem:[#allocation23_spill] sm:$0xff] %v13630_v7  ;;  %v13650_v63 = vsel %vm4739_vm6, %v6581_v28, %v6583_v10  ;;  %v6589_v7 = vrot.slane %v13344_v48, 4  ;;  %v6591_v4 = vrot.slane %v13347_v35, 4 }
 0x427   : > { %10165 = vmatpush3.bf16.msra.mxu1 %v11434_v14  ;;  %v13643_v14 = vsel %vm4739_vm6, %v6577_v56, %v6579_v26  ;;  %14547 = vst [vmem:[#allocation28_spill] sm:$0xff] %v13646_v31  ;;  %14548 = vst [vmem:[#allocation29_spill] sm:$0xff] %v13650_v63  ;;  %v13657_v58 = vsel %vm4739_vm6, %v6583_v10, %v6585_v38  ;;  %v6593_v56 = vrot.slane %v13386_v61, 4  ;;  %v6595_v26 = vrot.slane %v13389_v12, 4 }
 0x428   : > { %10202 = vmatprep.subr.bf16.mxu1 %v13592_v17  ;;  %14546 = vst [vmem:[#allocation27_spill] sm:$0xff] %v13643_v14  ;;  %14549 = vst [vmem:[#allocation30_spill] sm:$0xff] %v13657_v58  ;;  %v6597_v31 = vrot.slane %v13624_v32, 4  ;;  %v13664_v28 = vsel %vm4739_vm6, %v6585_v38, %v6587_v1  ;;  %v13667_v48 = vsel %vm4739_vm6, %v6587_v1, %v6589_v7  ;;  %v14556_v1 = vshrl.u32 %v13560_v47, 16 }
 0x429   : > { %14550 = vst [vmem:[#allocation31_spill] sm:$0xff] %v13664_v28  ;;  %14551 = vst [vmem:[#allocation32_spill] sm:$0xff] %v13667_v48  ;;  %v13670_v35 = vsel %vm4739_vm6, %v6589_v7, %v6591_v4  ;;  %v13674_v10 = vsel %vm4739_vm6, %v6591_v4, %v6593_v56  ;;  %v13677_v61 = vsel %vm4739_vm6, %v6593_v56, %v6595_v26  ;;  %v14557_v7 = vshll.u32 %v13560_v47, 16 }
 0x42a   : > { %10131 = vmatmul.mubr.bf16.gmra.mrb[16].mxu1 %v13408_v13  ;;  %14552 = vst [vmem:[#allocation33_spill] sm:$0xff] %v13670_v35  ;;  %v6898_v13 = vshrl.u32 %v13637_v45, 16  ;;  %14553 = vst [vmem:[#allocation34_spill] sm:$0xff] %v13674_v10  ;;  %v13680_v58 = vsel %vm4739_vm6, %v6595_v26, %v6597_v31  ;;  %v6905_v48 = vrot.slane %v14556_v1, 4  ;;  %v13696_v56 = vshrl.u32 %v13610_v25, 16 }
 0x42b   : > { %10134 = vmatprep.mubr.bf16.mxu1 %v13411_v33  ;;  %14554 = vst [vmem:[#allocation35_spill] sm:$0xff] %v13677_v61  ;;  %14555 = vst [vmem:[#allocation36_spill] sm:$0xff] %v13680_v58  ;;  %v6901_v33 = vshll.u32 %v13637_v45, 16  ;;  %v6906_v35 = vrot.slane %v14557_v7, 5  ;;  %v13699_v26 = vshll.u32 %v13610_v25, 16  ;;  %v14561_v14 = vshll.u32 %v13389_v12, 16 }
 0x42c   : > { %v6900_v38 = vrot.slane %v6898_v13, 4  ;;  %v13702_v13 = vshrl.u32 %v13619_v41, 16  ;;  %v6878_v7 = vld [vmem:[#allocation2 + $0x98] sm:$0x1f]  ;;  %v7261_v58 = vld [vmem:[#allocation2 + $0x10] sm:$0xf0] }
 0x42d   : > { %v6903_v28 = vrot.slane %v6901_v33, 5  ;;  %v13687_v63 = vor.u32 %v6906_v35, %v6905_v48  ;;  %v13705_v48 = vshll.u32 %v13619_v41, 16  ;;  %v13710_v35 = vshrl.u32 %v13557_v18, 16 }
 0x42e   : > { %v6953_v33 = vrot.slane %v13702_v13, 4  ;;  %v7298_v23 = vshrl.u32 %v7261_v58, 16  ;;  %v7301_v32 = vshll.u32 %v7261_v58, 16 }
 0x42f   : > { %14558 = vst [vmem:[#allocation37_spill] sm:$0xff] %v13687_v63  ;;  %v6904_v4 = vor.u32 %v6903_v28, %v6900_v38  ;;  %v6950_v28 = vrot.slane %v13699_v26, 5  ;;  %v6954_v1 = vrot.slane %v13705_v48, 5  ;;  %v6909_v61 = vrot.slane %v13710_v35, 4 }
 0x431   : > { %v13692_v31 = vsel %vm6896_vm7, %v6904_v4, %v13687_v63  ;;  %v13721_v4 = vor.u32 %v6954_v1, %v6953_v33  ;;  %v6965_v63 = vrot.slane %v13396_v19, 4  ;;  %v6974_v19 = vshrl.u32 %v6878_v7, 16  ;;  %v13738_v1 = vld [vmem:[#allocation2 + $0x78] sm:$0xff] }
 0x432   : > { %10135 = vmatmul.mubr.bf16.gmra.mrb[20].mxu1 %v13420_v60  ;;  %14559 = vst [vmem:[#allocation38_spill] sm:$0xff] %v13692_v31  ;;  %v6949_v60 = vrot.slane %v13696_v56, 4  ;;  %v6966_v31 = vrot.slane %v13399_v50, 5  ;;  %v6977_v50 = vshll.u32 %v6878_v7, 16  ;;  %v7303_v7 = vrot.slane %v7301_v32, 5 }
 0x433   : > { %10138 = vmatprep.mubr.bf16.mxu1 %v13423_v3  ;;  %v13713_v3 = vshll.u32 %v13557_v18, 16  ;;  %v6976_v45 = vrot.slane %v6974_v19, 4  ;;  %v14444_v32 = vrot.slane %v13557_v18, 5 }
 0x434   : > { %v13716_v38 = vor.u32 %v6950_v28, %v6949_v60  ;;  %v14560_v60 = vshrl.u32 %v13389_v12, 16  ;;  %v13736_v33 = vor.u32 %v6966_v31, %v6965_v63  ;;  %v6979_v57 = vrot.slane %v6977_v50, 5 }
 0x435   : > { %v6910_v10 = vrot.slane %v13713_v3, 5 }
 0x436   : > { %v6969_v28 = vrot.slane %v14560_v60, 4  ;;  %v14446_v60 = vshrl.u32 %v13738_v1, 16  ;;  %v6980_v31 = vor.u32 %v6979_v57, %v6976_v45  ;;  %v7791_v45 = vrot.slane %v13574_v62, 5 }
 0x437   : > { %v13746_v63 = vor.u32 %v6910_v10, %v6909_v61  ;;  %v7793_v10 = vrot.slane %v13576_v30, 5 }
 0x43a   : > { %10139 = vmatmul.mubr.bf16.gmra.mrb[24].mxu1 %v13428_v46  ;;  %v6970_v46 = vrot.slane %v14561_v14, 5  ;;  %v7300_v14 = vrot.slane %v7298_v23, 4 }
 0x43b   : > { %10142 = vmatprep.mubr.bf16.mxu1 %v13431_v51  ;;  %v13734_v51 = vsel %vm6896_vm7, %v13716_v38, %v13721_v4 }
 0x43c   : > { %14562 = vst [vmem:[#allocation39_spill] sm:$0xff] %v13734_v51  ;;  %v6971_v49 = vor.u32 %v6970_v46, %v6969_v28  ;;  %v14445_v51 = vshll.u32 %v13738_v1, 16  ;;  %v7416_v28 = vrot.slane %v14446_v60, 4  ;;  %v7304_v46 = vor.u32 %v7303_v7, %v7300_v14  ;;  %v13791_v7 = vld [vmem:[#allocation2 + $0x80] sm:$0xff] }
 0x43d   : > { %v13787_v14 = vsel %vm7783_vm8, %v7791_v45, %v7793_v10 }
 0x43e   : > { %v13742_v12 = vsel %vm6896_vm7, %v13736_v33, %v6971_v49  ;;  %v7419_v58 = vrot.slane %v14445_v51, 5  ;;  %v13755_v23 = vsel %vm6896_vm7, %v6971_v49, %v6980_v31  ;;  %v13761_v57 = vsel %vm6896_vm7, %v7304_v46, %v13746_v63  ;;  %14567 = vst [vmem:[#allocation44_spill] sm:$0xff] %v13787_v14 }
 0x43f   : > { %v7789_v49 = vrot.slane %v13568_v15, 5  ;;  %v7797_v31 = vrot.slane %v13585_v11, 5  ;;  %v7801_v46 = vrot.slane %v13589_v43, 5  ;;  %v7805_v14 = vrot.slane %v13610_v25, 5 }
 0x440   : > { %v13757_v19 = vor.u32 %v7419_v58, %v7416_v28  ;;  %v13793_v28 = vld [vmem:[#allocation2 + $0x88] sm:$0xff]  ;;  %v7799_v58 = vrot.slane %v13587_v21, 5  ;;  %v7811_v25 = vrot.slane %v13791_v7, 5 }
 0x442   : > { %10143 = vmatmul.mubr.bf16.gmra.mrb[28].mxu1 %v13436_v29  ;;  %14563 = vst [vmem:[#allocation40_spill] sm:$0xff] %v13757_v19  ;;  %v13766_v29 = vsel %vm6896_vm7, %v13721_v4, %v13757_v19  ;;  %v13816_v18 = vsel %vm7783_vm8, %v7799_v58, %v7801_v46 }
 0x443   : > { %10146 = vmatprep.mubr.bf16.mxu1 %v13439_v39  ;;  %v7787_v39 = vrot.slane %v13562_v16, 5  ;;  %14570 = vst [vmem:[#allocation47_spill] sm:$0xff] %v13816_v18 }
 0x445   : > { %v13778_v61 = vsel %vm7783_vm8, %v14444_v32, %v7787_v39  ;;  %v13781_v50 = vsel %vm7783_vm8, %v7787_v39, %v7789_v49  ;;  %v7803_v39 = vrot.slane %v13595_v2, 5  ;;  %v13798_v32 = vld [vmem:[#allocation2 + $0x90] sm:$0xff] }
 0x446   : > { %14564 = vst [vmem:[#allocation41_spill] sm:$0xff] %v13778_v61  ;;  %14565 = vst [vmem:[#allocation42_spill] sm:$0xff] %v13781_v50  ;;  %v11436_v50 = vld [vmem:[#allocation8 + $0xc8] sm:$0xff]   ;;  %v13813_v61 = vsel %vm7783_vm8, %v7797_v31, %v7799_v58  ;;  %v7815_v58 = vrot.slane %v13798_v32, 5 }
 0x447   : > { %14569 = vst [vmem:[#allocation46_spill] sm:$0xff] %v13813_v61  ;;  %v13819_v19 = vsel %vm7783_vm8, %v7801_v46, %v7803_v39 }
 0x448   : > { %14571 = vst [vmem:[#allocation48_spill] sm:$0xff] %v13819_v19 }
 0x44a   : > { %10147 = vmatmul.mubr.bf16.gmra.mrb[32].mxu1 %v13469_v59  ;;  %v13784_v59 = vsel %vm7783_vm8, %v7789_v49, %v7791_v45  ;;  %v13800_v49 = vld [vmem:[#allocation2 + $0x98] sm:$0xff]  ;;  %v13802_v45 = vld [vmem:[#allocation2 + $0xa0] sm:$0x1f] }
 0x44b   : > { %10166 = vmatprep.mubr.bf16.mxu1 %v13462_v5  ;;  %14566 = vst [vmem:[#allocation43_spill] sm:$0xff] %v13784_v59  ;;  %v7795_v5 = vrot.slane %v13578_v40, 5  ;;  %v7807_v59 = vrot.slane %v13619_v41, 5  ;;  %v7813_v41 = vrot.slane %v13793_v28, 5  ;;  %v7817_v46 = vrot.slane %v13800_v49, 5 }
 0x44c   : > { %v7819_v19 = vrot.slane %v13802_v45, 5 }
 0x44d   : > { %v13805_v51 = vsel %vm7783_vm8, %v7793_v10, %v7795_v5  ;;  %v13808_v60 = vsel %vm7783_vm8, %v7795_v5, %v7797_v31  ;;  %v7809_v10 = vrot.slane %v13738_v1, 5  ;;  %v13826_v5 = vsel %vm7783_vm8, %v7805_v14, %v7807_v59 }
 0x44e   : > { %14568 = vst [vmem:[#allocation45_spill] sm:$0xff] %v13805_v51  ;;  %v13823_v51 = vsel %vm7783_vm8, %v7803_v39, %v7805_v14  ;;  %14573 = vst [vmem:[#allocation50_spill] sm:$0xff] %v13826_v5  ;;  %v13843_v39 = vsel %vm7783_vm8, %v7811_v25, %v7813_v41  ;;  %v13852_v5 = vsel %vm7783_vm8, %v7817_v46, %v7819_v19  ;;  %v8167_v19 = vrot.slane %v13696_v56, 5 }
 0x44f   : > { %14572 = vst [vmem:[#allocation49_spill] sm:$0xff] %v13823_v51  ;;  %v13832_v31 = vsel %vm7783_vm8, %v7807_v59, %v7809_v10  ;;  %v13840_v14 = vsel %vm7783_vm8, %v7809_v10, %v7811_v25  ;;  %14576 = vst [vmem:[#allocation53_spill] sm:$0xff] %v13843_v39  ;;  %v13846_v59 = vsel %vm7783_vm8, %v7813_v41, %v7815_v58  ;;  %v11440_v10 = vld [vmem:[#allocation8 + $0xe8] sm:$0xff]   ;;  %v14584_v25 = vshll.u32 %v13791_v7, 16 }
 0x450   : > { %14574 = vst [vmem:[#allocation51_spill] sm:$0xff] %v13832_v31  ;;  %14575 = vst [vmem:[#allocation52_spill] sm:$0xff] %v13840_v14  ;;  %v13849_v31 = vsel %vm7783_vm8, %v7815_v58, %v7817_v46  ;;  %v8171_v46 = vrot.slane %v13702_v13, 5  ;;  %v8100_v14 = vld [vmem:[#allocation2 + $0xa0] sm:$0x3f]  ;;  %v14586_v41 = vshll.u32 %v13793_v28, 16 }
 0x451   : > { %14577 = vst [vmem:[#allocation54_spill] sm:$0xff] %v13846_v59  ;;  %14578 = vst [vmem:[#allocation55_spill] sm:$0xff] %v13849_v31  ;;  %v8180_v51 = vrot.slane %v14584_v25, 6 }
 0x452   : > { %10167 = vmatmul.mubr.bf16.vlgmr.msra.gmra.mrb[0].mxu1 %v13466_v44  ;;  %v11437_v44 = vld [vmem:[#allocation8 + $0xd0] sm:$0xff]   ;;  %14579 = vst [vmem:[#allocation56_spill] sm:$0xff] %v13852_v5  ;;  %v14581_v5 = vshrl.u32 %v13738_v1, 16 }
 0x453   : > { %10170 = vmatprep.mubr.bf16.mxu1 %v13473_v0  ;;  %10203 = vmatpush3.bf16.msra.mxu1 %v13592_v17  ;;  %v11438_v0 = vld [vmem:[#allocation8 + $0xd8] sm:$0xff]   ;;  %v11439_v17 = vld [vmem:[#allocation8 + $0xe0] sm:$0xff]  }
 0x454   : > { %10204 = vmatprep.subr.bf16.mxu1 %v11436_v50  ;;  %v8175_v31 = vrot.slane %v14581_v5, 5  ;;  %v8184_v5 = vrot.slane %v14586_v41, 6  ;;  %v14590_v41 = vshrl.u32 %v13800_v49, 16 }
 0x456   : > { %v8191_v61 = vrot.slane %v14590_v41, 5  ;;  %v11442_v41 = vld [vmem:[#allocation8 + $0xf8] sm:$0xff]  }
 0x457   : > { %10205 = vmatpush3.bf16.msra.mxu1 %v11436_v50  ;;  %v8168_v50 = vrot.slane %v13699_v26, 6 }
 0x458   : > { %10206 = vmatprep.subr.bf16.mxu1 %v11437_v44 }
 0x459   : > { %v13868_v58 = vor.u32 %v8168_v50, %v8167_v19  ;;  %v14585_v19 = vshrl.u32 %v13793_v28, 16 }
 0x45a   : > { %10171 = vmatmul.mubr.bf16.gmra.mrb[4].mxu1 %v13476_v27  ;;  %v14582_v27 = vshll.u32 %v13738_v1, 16 }
 0x45b   : > { %10174 = vmatprep.mubr.bf16.mxu1 %v13479_v34  ;;  %10207 = vmatpush3.bf16.msra.mxu1 %v11437_v44  ;;  %v8172_v44 = vrot.slane %v13705_v48, 6  ;;  %14580 = vst [vmem:[#allocation57_spill] sm:$0xff] %v13868_v58  ;;  %v14583_v34 = vshrl.u32 %v13791_v7, 16  ;;  %v8183_v50 = vrot.slane %v14585_v19, 5 }
 0x45c   : > { %10208 = vmatprep.subr.bf16.mxu1 %v11438_v0  ;;  %v8176_v59 = vrot.slane %v14582_v27, 6 }
 0x45d   : > { %v8179_v39 = vrot.slane %v14583_v34, 5  ;;  %v8185_v18 = vor.u32 %v8184_v5, %v8183_v50 }
 0x45e   : > { %v8177_v27 = vor.u32 %v8176_v59, %v8175_v31  ;;  %v8196_v59 = vshrl.u32 %v8100_v14, 16 }
 0x45f   : > { %10209 = vmatpush3.bf16.msra.mxu1 %v11438_v0  ;;  %v8173_v0 = vor.u32 %v8172_v44, %v8171_v46  ;;  %v14589_v46 = vshll.u32 %v13798_v32, 16  ;;  %v11441_v44 = vld [vmem:[#allocation8 + $0xf0] sm:$0xff]   ;;  %v8181_v19 = vor.u32 %v8180_v51, %v8179_v39 }
 0x460   : > { %10210 = vmatprep.subr.bf16.mxu1 %v11439_v17  ;;  %v8198_v50 = vrot.slane %v8196_v59, 5 }
 0x461   : > { %v13886_v1 = vsel %vm8118_vm9, %v13868_v58, %v8173_v0  ;;  %v8188_v25 = vrot.slane %v14589_v46, 6  ;;  %v13897_v58 = vsel %vm8118_vm9, %v8173_v0, %v8177_v27  ;;  %v13903_v46 = vsel %vm8118_vm9, %v8181_v19, %v8185_v18 }
 0x462   : > { %10175 = vmatmul.mubr.bf16.gmra.mrb[8].mxu1 %v13501_v20  ;;  %14587 = vst [vmem:[#allocation58_spill] sm:$0xff] %v13886_v1  ;;  %v14588_v20 = vshrl.u32 %v13798_v32, 16  ;;  %v8199_v1 = vshll.u32 %v8100_v14, 16  ;;  %14593 = vst [vmem:[#allocation60_spill] sm:$0xff] %v13903_v46  ;;  %v6195_v46 = vrot.slane %v13702_v13, 3 }
 0x463   : > { %10178 = vmatprep.mubr.bf16.mxu1 %v13508_v24  ;;  %10211 = vmatpush3.bf16.msra.mxu1 %v11439_v17  ;;  %v14591_v24 = vshll.u32 %v13800_v49, 16 }
 0x464   : > { %v8187_v34 = vrot.slane %v14588_v20, 5  ;;  %10212 = vmatprep.subr.bf16.mxu1 %v11440_v10  ;;  %v13900_v20 = vsel %vm8118_vm9, %v8177_v27, %v8181_v19  ;;  %v8201_v5 = vrot.slane %v8199_v1, 6  ;;  %v14598_v27 = vld [vmem:[#allocation14_spill] sm:$0xff] }
 0x465   : > { %v8192_v17 = vrot.slane %v14591_v24, 6  ;;  %14592 = vst [vmem:[#allocation59_spill] sm:$0xff] %v13900_v20 }
 0x466   : > { %v8189_v31 = vor.u32 %v8188_v25, %v8187_v34  ;;  %v8202_v34 = vor.u32 %v8201_v5, %v8198_v50  ;;  %v5745_v25 = vrot.slane %v14598_v27, 4  ;;  %v14599_v5 = vshrl.u32 %v13560_v47, 16 }
 0x467   : > { %v8193_v51 = vor.u32 %v8192_v17, %v8191_v61  ;;  %10213 = vmatpush3.bf16.msra.mxu1 %v11440_v10  ;;  %v11443_v61 = vld [vmem:[#allocation8 + $0x100] sm:$0xff]  }
 0x468   : > { %v13906_v39 = vsel %vm8118_vm9, %v8185_v18, %v8189_v31  ;;  %10214 = vmatprep.subr.bf16.mxu1 %v11441_v44  ;;  %v5740_v18 = vrot.slane %v13354_v53, 3  ;;  %v14597_v10 = vld [vmem:[#allocation13_spill] sm:$0xff] }
 0x469   : > { %14594 = vst [vmem:[#allocation61_spill] sm:$0xff] %v13906_v39  ;;  %v13909_v0 = vsel %vm8118_vm9, %v8189_v31, %v8193_v51  ;;  %v13914_v14 = vsel %vm8118_vm9, %v8193_v51, %v8202_v34  ;;  %v5744_v1 = vrot.slane %v14597_v10, 3  ;;  %v14600_v34 = vshll.u32 %v13560_v47, 16 }
 0x46a   : > { %14595 = vst [vmem:[#allocation62_spill] sm:$0xff] %v13909_v0  ;;  %10179 = vmatmul.mubr.bf16.gmra.mrb[12].mxu1 %v13511_v37  ;;  %14596 = vst [vmem:[#allocation63_spill] sm:$0xff] %v13914_v14  ;;  %v5741_v37 = vrot.slane %v13357_v55, 4  ;;  %v6186_v39 = vrot.slane %v13696_v56, 3 }
 0x46b   : > { %10182 = vmatprep.mubr.bf16.mxu1 %v13517_v54  ;;  %10215 = vmatpush3.bf16.msra.mxu1 %v11441_v44  ;;  %v5746_v44 = vor.u32 %v5745_v25, %v5744_v1 }
 0x46c   : > { %10216 = vmatprep.subr.bf16.mxu1 %v11442_v41  ;;  %v13922_v54 = vor.u32 %v5741_v37, %v5740_v18  ;;  %v6090_v18 = vrot.slane %v14600_v34, 4 }
 0x46d   : > { %v13936_v59 = vsel %vm1267_vm2, %v5746_v44, %v13566_v42 }
 0x46e   : > { %v13932_v31 = vsel %vm1267_vm2, %v13922_v54, %v5746_v44  ;;  %v6096_v44 = vrot.slane %v13710_v35, 3 }
 0x46f   : > { %10217 = vmatpush3.bf16.msra.mxu1 %v11442_v41  ;;  %v6087_v41 = vrot.slane %v14599_v5, 3  ;;  %v11444_v5 = vld [vmem:[#allocation8 + $0x108] sm:$0xff]  }
 0x470   : > { %10254 = vmatprep.subr.bf16.mxu1 %v11443_v61 }
 0x471   : > { %v6091_v25 = vor.u32 %v6090_v18, %v6087_v41 }
 0x472   : > { %10183 = vmatmul.mubr.bf16.gmra.mrb[16].mxu1 %v13524_v6  ;;  %v5743_v6 = vsel %vm1267_vm2, %v13535_v9, %v13922_v54 }
 0x473   : > { %10186 = vmatprep.mubr.bf16.mxu1 %v13533_v22  ;;  %v5658_v22 = vld [vmem:[#allocation2 + $0x90] sm:$0xf] }
 0x474   : > { %v5753_v19 = vshrl.u32 %v5658_v22, 16  ;;  %v5756_v24 = vshll.u32 %v5658_v22, 16  ;;  %v13948_v22 = vshll.u32 %v13562_v16, 16 }
 0x476   : > { %v5758_v51 = vrot.slane %v5756_v24, 4 }
 0x47a   : > { %10187 = vmatmul.mubr.bf16.gmra.mrb[20].mxu1 %v13538_v52  ;;  %v6040_v52 = vld [vmem:[#allocation2 + $0x8] sm:$0xf8] }
 0x47b   : > { %10190 = vmatprep.mubr.bf16.mxu1 %v13541_v36  ;;  %v6077_v17 = vshrl.u32 %v6040_v52, 16  ;;  %v6080_v36 = vshll.u32 %v6040_v52, 16 }
 0x47d   : > { %v6079_v9 = vrot.slane %v6077_v17, 3  ;;  %v6082_v50 = vrot.slane %v6080_v36, 4  ;;  %v6108_v36 = vrot.slane %v13948_v22, 4 }
 0x47f   : > { %v6083_v1 = vor.u32 %v6082_v50, %v6079_v9  ;;  %v13964_v9 = vshrl.u32 %v13574_v62, 16  ;;  %v13967_v50 = vshll.u32 %v13574_v62, 16 }
 0x481   : > { %v6092_v24 = vsel %vm1267_vm2, %v6083_v1, %v6091_v25  ;;  %v6126_v1 = vrot.slane %v13967_v50, 4 }
 0x482   : > { %10191 = vmatmul.mubr.bf16.gmra.mrb[24].mxu1 %v13545_v8  ;;  %v5755_v8 = vrot.slane %v5753_v19, 3  ;;  %v6099_v19 = vrot.slane %v13713_v3, 4 }
 0x483   : > { %10194 = vmatprep.mubr.bf16.mxu1 %v5743_v6  ;;  %v13945_v6 = vshrl.u32 %v13562_v16, 16  ;;  %v13961_v16 = vshll.u32 %v13568_v15, 16 }
 0x484   : > { %v5759_v37 = vor.u32 %v5758_v51, %v5755_v8  ;;  %v6100_v8 = vor.u32 %v6099_v19, %v6096_v44  ;;  %v13958_v51 = vshrl.u32 %v13568_v15, 16  ;;  %v6123_v15 = vrot.slane %v13964_v9, 3 }
 0x485   : > { %v6105_v17 = vrot.slane %v13945_v6, 3  ;;  %v6117_v18 = vrot.slane %v13961_v16, 4  ;;  %v13976_v44 = vshrl.u32 %v13576_v30, 16 }
 0x486   : > { %v5760_v52 = vsel %vm1267_vm2, %v13566_v42, %v5759_v37  ;;  %v6101_v41 = vsel %vm1267_vm2, %v6091_v25, %v6100_v8  ;;  %v6114_v34 = vrot.slane %v13958_v51, 3  ;;  %v13979_v25 = vshll.u32 %v13576_v30, 16 }
 0x487   : > { %v6109_v42 = vor.u32 %v6108_v36, %v6105_v17  ;;  %v6127_v19 = vor.u32 %v6126_v1, %v6123_v15  ;;  %v13985_v17 = vshll.u32 %v13578_v40, 16  ;;  %v11446_v36 = vld [vmem:[#allocation8 + $0x118] sm:$0xff]   ;;  %v14000_v1 = vshrl.u32 %v13587_v21, 16 }
 0x488   : > { %v6118_v62 = vor.u32 %v6117_v18, %v6114_v34 }
 0x489   : > { %v6110_v37 = vsel %vm1267_vm2, %v6100_v8, %v6109_v42  ;;  %v6132_v8 = vrot.slane %v13976_v44, 3  ;;  %v6144_v18 = vrot.slane %v13985_v17, 4 }
 0x48a   : > { %10195 = vmatmul.mubr.bf16.gmra.mrb[28].mxu1 %v13932_v31  ;;  %v6128_v30 = vsel %vm1267_vm2, %v6118_v62, %v6127_v19 }
 0x48b   : > { %10198 = vmatprep.mubr.bf16.mxu1 %v13936_v59 }
 0x492   : > { %10199 = vmatmul.mubr.bf16.gmra.mrb[32].mxu1 %v5760_v52  ;;  %v11445_v52 = vld [vmem:[#allocation8 + $0x110] sm:$0xff]  }
 0x493   : > { %10218 = vmatprep.mubr.bf16.mxu1 %v6092_v24  ;;  %v13982_v24 = vshrl.u32 %v13578_v40, 16  ;;  %v11447_v40 = vld [vmem:[#allocation8 + $0x120] sm:$0xff]  }
 0x495   : > { %v6141_v34 = vrot.slane %v13982_v24, 3 }
 0x497   : > { %v6145_v15 = vor.u32 %v6144_v18, %v6141_v34  ;;  %v14012_v18 = vshrl.u32 %v13589_v43, 16 }
 0x49a   : > { %10219 = vmatmul.mubr.bf16.vlgmr.msra.gmra.mrb[0].mxu1 %v6101_v41  ;;  %v6135_v41 = vrot.slane %v13979_v25, 4 }
 0x49b   : > { %10222 = vmatprep.mubr.bf16.mxu1 %v6110_v37  ;;  %10255 = vmatpush3.bf16.msra.mxu1 %v11443_v61  ;;  %v6119_v61 = vsel %vm1267_vm2, %v6109_v42, %v6118_v62  ;;  %v13994_v37 = vshrl.u32 %v13585_v11, 16  ;;  %v13997_v42 = vshll.u32 %v13585_v11, 16  ;;  %v14003_v62 = vshll.u32 %v13587_v21, 16  ;;  %v11449_v21 = vld [vmem:[#allocation8 + $0x130] sm:$0xff]  }
 0x49c   : > { %10256 = vmatprep.subr.bf16.mxu1 %v11444_v5 }
 0x49d   : > { %v6162_v34 = vrot.slane %v14003_v62, 4 }
 0x49f   : > { %10257 = vmatpush3.bf16.msra.mxu1 %v11444_v5  ;;  %v6136_v5 = vor.u32 %v6135_v41, %v6132_v8  ;;  %v6150_v8 = vrot.slane %v13994_v37, 3  ;;  %v6153_v41 = vrot.slane %v13997_v42, 4 }
 0x4a0   : > { %10258 = vmatprep.subr.bf16.mxu1 %v11445_v52 }
 0x4a1   : > { %v6146_v11 = vsel %vm1267_vm2, %v6136_v5, %v6145_v15 }
 0x4a2   : > { %10223 = vmatmul.mubr.bf16.gmra.mrb[4].mxu1 %v6119_v61  ;;  %v11448_v61 = vld [vmem:[#allocation8 + $0x128] sm:$0xff]  }
 0x4a3   : > { %10226 = vmatprep.mubr.bf16.mxu1 %v6128_v30  ;;  %10259 = vmatpush3.bf16.msra.mxu1 %v11445_v52  ;;  %v6137_v52 = vsel %vm1267_vm2, %v6127_v19, %v6136_v5  ;;  %v6159_v30 = vrot.slane %v14000_v1, 3  ;;  %v14015_v19 = vshll.u32 %v13589_v43, 16  ;;  %v14021_v5 = vshll.u32 %v13595_v2, 16 }
 0x4a4   : > { %10260 = vmatprep.subr.bf16.mxu1 %v11446_v36 }
 0x4a5   : > { %v6163_v14 = vor.u32 %v6162_v34, %v6159_v30  ;;  %v6180_v34 = vrot.slane %v14021_v5, 4 }
 0x4a7   : > { %10261 = vmatpush3.bf16.msra.mxu1 %v11446_v36  ;;  %v6154_v36 = vor.u32 %v6153_v41, %v6150_v8  ;;  %v6168_v8 = vrot.slane %v14012_v18, 3  ;;  %v6171_v41 = vrot.slane %v14015_v19, 4 }
 0x4a8   : > { %10262 = vmatprep.subr.bf16.mxu1 %v11447_v40 }
 0x4a9   : > { %v6164_v43 = vsel %vm1267_vm2, %v6154_v36, %v6163_v14 }
 0x4aa   : > { %10227 = vmatmul.mubr.bf16.gmra.mrb[8].mxu1 %v6137_v52  ;;  %v14018_v52 = vshrl.u32 %v13595_v2, 16  ;;  %v11451_v2 = vld [vmem:[#allocation8 + $0x140] sm:$0xff]  }
 0x4ab   : > { %10230 = vmatprep.mubr.bf16.mxu1 %v6146_v11  ;;  %10263 = vmatpush3.bf16.msra.mxu1 %v11447_v40  ;;  %v11450_v11 = vld [vmem:[#allocation8 + $0x138] sm:$0xff]   ;;  %v6155_v40 = vsel %vm1267_vm2, %v6145_v15, %v6154_v36 }
 0x4ac   : > { %10264 = vmatprep.subr.bf16.mxu1 %v11448_v61  ;;  %v6177_v30 = vrot.slane %v14018_v52, 3 }
 0x4ae   : > { %v6181_v0 = vor.u32 %v6180_v34, %v6177_v30  ;;  %v14604_v34 = vld [vmem:[#allocation16_spill] sm:$0xff] }
 0x4af   : > { %10265 = vmatpush3.bf16.msra.mxu1 %v11448_v61  ;;  %v6172_v61 = vor.u32 %v6171_v41, %v6168_v8 }
 0x4b0   : > { %10266 = vmatprep.subr.bf16.mxu1 %v11449_v21 }
 0x4b1   : > { %v6173_v15 = vsel %vm1267_vm2, %v6163_v14, %v6172_v61  ;;  %v6182_v36 = vsel %vm1267_vm2, %v6172_v61, %v6181_v0 }
 0x4b2   : > { %10231 = vmatmul.mubr.bf16.gmra.mrb[12].mxu1 %v6155_v40  ;;  %v6189_v40 = vrot.slane %v13699_v26, 4  ;;  %v14601_v26 = vld [vmem:[#allocation21_spill] sm:$0xff] }
 0x4b3   : > { %10234 = vmatprep.mubr.bf16.mxu1 %v6164_v43  ;;  %10267 = vmatpush3.bf16.msra.mxu1 %v11449_v21  ;;  %v6198_v43 = vrot.slane %v13705_v48, 4  ;;  %v6238_v14 = vshrl.u32 %v14601_v26, 16  ;;  %v6241_v13 = vshll.u32 %v14601_v26, 16  ;;  %v11458_v26 = vld [vmem:[#allocation8 + $0x178] sm:$0xff]  }
 0x4b4   : > { %10268 = vmatprep.subr.bf16.mxu1 %v11450_v11  ;;  %v6190_v21 = vor.u32 %v6189_v40, %v6186_v39  ;;  %v14607_v40 = vld [vmem:[#allocation19_spill] sm:$0xff] }
 0x4b5   : > { %v6199_v20 = vor.u32 %v6198_v43, %v6195_v46  ;;  %v6240_v48 = vrot.slane %v6238_v14, 3  ;;  %v6243_v41 = vrot.slane %v6241_v13, 4  ;;  %v14602_v46 = vld [vmem:[#allocation17_spill] sm:$0xff]  ;;  %v14608_v43 = vld [vmem:[#allocation20_spill] sm:$0xff]  ;;  %v14612_v14 = vld [vmem:[#allocation26_spill] sm:$0xff] }
 0x4b6   : > { %v6191_v8 = vsel %vm1267_vm2, %v6181_v0, %v6190_v21  ;;  %v14603_v0 = vld [vmem:[#allocation25_spill] sm:$0xff]  ;;  %v14613_v13 = vld [vmem:[#allocation27_spill] sm:$0xff] }
 0x4b7   : > { %10269 = vmatpush3.bf16.msra.mxu1 %v11450_v11  ;;  %v6200_v11 = vsel %vm1267_vm2, %v6190_v21, %v6199_v20  ;;  %v6209_v56 = vsel %vm1267_vm2, %v6199_v20, %v13922_v54  ;;  %v6244_v39 = vor.u32 %v6243_v41, %v6240_v48  ;;  %v6562_v30 = vrot.slane %v14603_v0, 4  ;;  %v14609_v21 = vld [vmem:[#allocation22_spill] sm:$0xff]  ;;  %v11459_v48 = vld [vmem:[#allocation8 + $0x180] sm:$0xff]   ;;  %v14614_v41 = vld [vmem:[#allocation28_spill] sm:$0xff] }
 0x4b8   : > { %10306 = vmatprep.subr.bf16.mxu1 %v11451_v2  ;;  %v14605_v20 = vrot.slane %v13560_v47, 4  ;;  %v11455_v47 = vld [vmem:[#allocation8 + $0x160] sm:$0xff]   ;;  %v14617_v0 = vld [vmem:[#allocation31_spill] sm:$0xff] }
 0x4b9   : > { %v6245_v61 = vsel %vm1267_vm2, %v14604_v34, %v6244_v39  ;;  %v14616_v39 = vld [vmem:[#allocation30_spill] sm:$0xff]  ;;  %v14619_v34 = vld [vmem:[#allocation33_spill] sm:$0xff] }
 0x4ba   : > { %10235 = vmatmul.mubr.bf16.gmra.mrb[16].mxu1 %v6173_v15  ;;  %v6564_v54 = vsel %vm4739_vm6, %v6562_v30, %v14605_v20  ;;  %v14606_v15 = vld [vmem:[#allocation18_spill] sm:$0xff]  ;;  %v14618_v30 = vld [vmem:[#allocation32_spill] sm:$0xff]  ;;  %v14621_v20 = vld [vmem:[#allocation35_spill] sm:$0xff] }
 0x4bb   : > { %10238 = vmatprep.mubr.bf16.mxu1 %v6182_v36  ;;  %v11454_v36 = vld [vmem:[#allocation8 + $0x158] sm:$0xff]  }
 0x4c2   : > { %10239 = vmatmul.mubr.bf16.gmra.mrb[20].mxu1 %v6191_v8  ;;  %v11456_v8 = vld [vmem:[#allocation8 + $0x168] sm:$0xff]  }
 0x4c3   : > { %10242 = vmatprep.mubr.bf16.mxu1 %v6200_v11  ;;  %v14610_v11 = vld [vmem:[#allocation23_spill] sm:$0xff] }
 0x4ca   : > { %10243 = vmatmul.mubr.bf16.gmra.mrb[24].mxu1 %v6209_v56  ;;  %v14611_v56 = vld [vmem:[#allocation24_spill] sm:$0xff] }
 0x4cb   : > { %10246 = vmatprep.mubr.bf16.mxu1 %v13932_v31  ;;  %v11452_v31 = vld [vmem:[#allocation8 + $0x148] sm:$0xff]  }
 0x4d2   : > { %10247 = vmatmul.mubr.bf16.gmra.mrb[28].mxu1 %v13936_v59  ;;  %v11453_v59 = vld [vmem:[#allocation8 + $0x150] sm:$0xff]  }
 0x4d3   : > { %10250 = vmatprep.mubr.bf16.mxu1 %v14602_v46  ;;  %v14615_v46 = vld [vmem:[#allocation29_spill] sm:$0xff] }
 0x4da   : > { %10251 = vmatmul.mubr.bf16.gmra.mrb[32].mxu1 %v6245_v61  ;;  %v14620_v61 = vld [vmem:[#allocation34_spill] sm:$0xff] }
 0x4db   : > { %10270 = vmatprep.mubr.bf16.mxu1 %v6564_v54  ;;  %v14622_v54 = vld [vmem:[#allocation36_spill] sm:$0xff] }
 0x4e2   : > { %10271 = vmatmul.mubr.bf16.vlgmr.msra.gmra.mrb[0].mxu1 %v14606_v15  ;;  %v6914_v15 = vrot.slane %v13948_v22, 5 }
 0x4e3   : > { %10274 = vmatprep.mubr.bf16.mxu1 %v14607_v40  ;;  %10307 = vmatpush3.bf16.msra.mxu1 %v11451_v2  ;;  %v11457_v2 = vld [vmem:[#allocation8 + $0x170] sm:$0xff]   ;;  %v14623_v40 = vld [vmem:[#allocation38_spill] sm:$0xff] }
 0x4e4   : > { %10308 = vmatprep.subr.bf16.mxu1 %v11452_v31 }
 0x4e7   : > { %10309 = vmatpush3.bf16.msra.mxu1 %v11452_v31  ;;  %v6913_v31 = vrot.slane %v13945_v6, 4 }
 0x4e8   : > { %10310 = vmatprep.subr.bf16.mxu1 %v11453_v59 }
 0x4ea   : > { %10275 = vmatmul.mubr.bf16.gmra.mrb[4].mxu1 %v14608_v43  ;;  %v14624_v43 = vld [vmem:[#allocation37_spill] sm:$0xff] }
 0x4eb   : > { %10278 = vmatprep.mubr.bf16.mxu1 %v14609_v21  ;;  %10311 = vmatpush3.bf16.msra.mxu1 %v11453_v59  ;;  %v6915_v59 = vor.u32 %v6914_v15, %v6913_v31  ;;  %v6912_v21 = vsel %vm6896_vm7, %v14624_v43, %v13746_v63  ;;  %v6933_v15 = vrot.slane %v13994_v37, 4  ;;  %v6938_v43 = vrot.slane %v14003_v62, 5 }
 0x4ec   : > { %10312 = vmatprep.subr.bf16.mxu1 %v11454_v36 }
 0x4ef   : > { %10313 = vmatpush3.bf16.msra.mxu1 %v11454_v36  ;;  %v11460_v36 = vld [vmem:[#allocation8 + $0x188] sm:$0xff]  }
 0x4f0   : > { %10314 = vmatprep.subr.bf16.mxu1 %v11455_v47 }
 0x4f2   : > { %10279 = vmatmul.mubr.bf16.gmra.mrb[8].mxu1 %v14610_v11  ;;  %v14077_v11 = vsel %vm6896_vm7, %v13746_v63, %v6915_v59  ;;  %v6925_v63 = vrot.slane %v13976_v44, 4 }
 0x4f3   : > { %10282 = vmatprep.mubr.bf16.mxu1 %v14611_v56  ;;  %10315 = vmatpush3.bf16.msra.mxu1 %v11455_v47  ;;  %v6917_v47 = vrot.slane %v13958_v51, 4  ;;  %v6921_v56 = vrot.slane %v13964_v9, 4 }
 0x4f4   : > { %10316 = vmatprep.subr.bf16.mxu1 %v11456_v8 }
 0x4f7   : > { %10317 = vmatpush3.bf16.msra.mxu1 %v11456_v8  ;;  %v6918_v8 = vrot.slane %v13961_v16, 5 }
 0x4f8   : > { %10318 = vmatprep.subr.bf16.mxu1 %v11457_v2 }
 0x4fa   : > { %10283 = vmatmul.mubr.bf16.gmra.mrb[12].mxu1 %v14612_v14  ;;  %v6919_v14 = vor.u32 %v6918_v8, %v6917_v47 }
 0x4fb   : > { %10286 = vmatprep.mubr.bf16.mxu1 %v14613_v13  ;;  %10319 = vmatpush3.bf16.msra.mxu1 %v11457_v2  ;;  %v6922_v2 = vrot.slane %v13967_v50, 5 }
 0x4fc   : > { %10320 = vmatprep.subr.bf16.mxu1 %v11458_v26 }
 0x4fd   : > { %v6923_v13 = vor.u32 %v6922_v2, %v6921_v56  ;;  %v11466_v56 = vld [vmem:[#allocation8 + $0x1b8] sm:$0xff]  }
 0x4ff   : > { %10321 = vmatpush3.bf16.msra.mxu1 %v11458_v26  ;;  %v11461_v26 = vld [vmem:[#allocation8 + $0x190] sm:$0xff]  }
 0x500   : > { %10358 = vmatprep.subr.bf16.mxu1 %v11459_v48 }
 0x502   : > { %10287 = vmatmul.mubr.bf16.gmra.mrb[16].mxu1 %v14614_v41  ;;  %v11462_v41 = vld [vmem:[#allocation8 + $0x198] sm:$0xff]  }
 0x503   : > { %10290 = vmatprep.mubr.bf16.mxu1 %v14615_v46  ;;  %v14083_v46 = vsel %vm6896_vm7, %v6915_v59, %v6919_v14 }
 0x50a   : > { %10291 = vmatmul.mubr.bf16.gmra.mrb[20].mxu1 %v14616_v39  ;;  %v6926_v39 = vrot.slane %v13979_v25, 5 }
 0x50b   : > { %10294 = vmatprep.mubr.bf16.mxu1 %v14617_v0  ;;  %v14089_v0 = vsel %vm6896_vm7, %v6919_v14, %v6923_v13  ;;  %v6942_v14 = vrot.slane %v14015_v19, 5 }
 0x512   : > { %10295 = vmatmul.mubr.bf16.gmra.mrb[24].mxu1 %v14618_v30  ;;  %v6930_v30 = vrot.slane %v13985_v17, 5 }
 0x513   : > { %10298 = vmatprep.mubr.bf16.mxu1 %v14619_v34  ;;  %v11463_v34 = vld [vmem:[#allocation8 + $0x1a0] sm:$0xff]  }
 0x51a   : > { %10299 = vmatmul.mubr.bf16.gmra.mrb[28].mxu1 %v14620_v61  ;;  %v6927_v61 = vor.u32 %v6926_v39, %v6925_v63  ;;  %v6946_v63 = vrot.slane %v14021_v5, 5  ;;  %v11467_v39 = vld [vmem:[#allocation8 + $0x1c0] sm:$0xff]  }
 0x51b   : > { %10302 = vmatprep.mubr.bf16.mxu1 %v14621_v20 }
 0x51c   : > { %v6928_v31 = vsel %vm6896_vm7, %v6923_v13, %v6927_v61 }
 0x522   : > { %10303 = vmatmul.mubr.bf16.gmra.mrb[32].mxu1 %v14622_v54  ;;  %v11464_v54 = vld [vmem:[#allocation8 + $0x1a8] sm:$0xff]  }
 0x523   : > { %10322 = vmatprep.mubr.bf16.mxu1 %v14623_v40  ;;  %v6934_v40 = vrot.slane %v13997_v42, 5 }
 0x525   : > { %v6935_v47 = vor.u32 %v6934_v40, %v6933_v15  ;;  %v6958_v15 = vrot.slane %v13357_v55, 5  ;;  %v6961_v40 = vrot.slane %v14597_v10, 4  ;;  %v11468_v55 = vld [vmem:[#allocation8 + $0x1c8] sm:$0xff]   ;;  %v11475_v10 = vld [vmem:[#allocation8 + $0x200] sm:$0xff]  }
 0x52a   : > { %10323 = vmatmul.mubr.bf16.vlgmr.msra.gmra.mrb[0].mxu1 %v6912_v21  ;;  %v11465_v21 = vld [vmem:[#allocation8 + $0x1b0] sm:$0xff]  }
 0x52b   : > { %10326 = vmatprep.mubr.bf16.mxu1 %v14077_v11  ;;  %10359 = vmatpush3.bf16.msra.mxu1 %v11459_v48  ;;  %v6929_v48 = vrot.slane %v13982_v24, 4 }
 0x52c   : > { %10360 = vmatprep.subr.bf16.mxu1 %v11460_v36 }
 0x52d   : > { %v6931_v20 = vor.u32 %v6930_v30, %v6929_v48 }
 0x52f   : > { %10361 = vmatpush3.bf16.msra.mxu1 %v11460_v36  ;;  %v14098_v59 = vsel %vm6896_vm7, %v6927_v61, %v6931_v20  ;;  %v6937_v36 = vrot.slane %v14000_v1, 4  ;;  %v6936_v2 = vsel %vm6896_vm7, %v6931_v20, %v6935_v47 }
 0x530   : > { %10362 = vmatprep.subr.bf16.mxu1 %v11461_v26 }
 0x531   : > { %v6939_v8 = vor.u32 %v6938_v43, %v6937_v36  ;;  %v6962_v36 = vrot.slane %v14598_v27, 5  ;;  %v14625_v43 = vld [vmem:[#allocation39_spill] sm:$0xff]  ;;  %v14626_v27 = vshrl.u32 %v13791_v7, 16 }
 0x532   : > { %10327 = vmatmul.mubr.bf16.gmra.mrb[4].mxu1 %v14083_v46 }
 0x533   : > { %10330 = vmatprep.mubr.bf16.mxu1 %v14089_v0  ;;  %10363 = vmatpush3.bf16.msra.mxu1 %v11461_v26  ;;  %v6941_v26 = vrot.slane %v14012_v18, 4  ;;  %v6940_v13 = vsel %vm6896_vm7, %v6935_v47, %v6939_v8  ;;  %v6963_v47 = vor.u32 %v6962_v36, %v6961_v40  ;;  %v7462_v40 = vshll.u32 %v13802_v45, 16 }
 0x534   : > { %10364 = vmatprep.subr.bf16.mxu1 %v11462_v41 }
 0x535   : > { %v6943_v48 = vor.u32 %v6942_v14, %v6941_v26 }
 0x537   : > { %10365 = vmatpush3.bf16.msra.mxu1 %v11462_v41  ;;  %v6945_v41 = vrot.slane %v14018_v52, 4 }
 0x538   : > { %10366 = vmatprep.subr.bf16.mxu1 %v11463_v34 }
 0x539   : > { %v6947_v30 = vor.u32 %v6946_v63, %v6945_v41  ;;  %v14630_v41 = vld [vmem:[#allocation40_spill] sm:$0xff] }
 0x53a   : > { %10331 = vmatmul.mubr.bf16.gmra.mrb[8].mxu1 %v6928_v31 }
 0x53b   : > { %10334 = vmatprep.mubr.bf16.mxu1 %v14098_v59  ;;  %10367 = vmatpush3.bf16.msra.mxu1 %v11463_v34  ;;  %v6944_v34 = vsel %vm6896_vm7, %v6939_v8, %v6943_v48  ;;  %v6948_v61 = vsel %vm6896_vm7, %v6943_v48, %v6947_v30  ;;  %v6952_v20 = vsel %vm6896_vm7, %v6947_v30, %v13716_v38  ;;  %v11469_v38 = vld [vmem:[#allocation8 + $0x1d0] sm:$0xff]  }
 0x53c   : > { %10368 = vmatprep.subr.bf16.mxu1 %v11464_v54 }
 0x53f   : > { %10369 = vmatpush3.bf16.msra.mxu1 %v11464_v54  ;;  %v6957_v54 = vrot.slane %v13354_v53, 4  ;;  %v6968_v53 = vsel %vm6896_vm7, %v6963_v47, %v13736_v33  ;;  %v11471_v33 = vld [vmem:[#allocation8 + $0x1e0] sm:$0xff]  }
 0x540   : > { %10370 = vmatprep.subr.bf16.mxu1 %v11465_v21 }
 0x542   : > { %10335 = vmatmul.mubr.bf16.gmra.mrb[12].mxu1 %v6936_v2 }
 0x543   : > { %10338 = vmatprep.mubr.bf16.mxu1 %v6940_v13  ;;  %10371 = vmatpush3.bf16.msra.mxu1 %v11465_v21  ;;  %v6959_v21 = vor.u32 %v6958_v15, %v6957_v54  ;;  %v7459_v15 = vshrl.u32 %v13802_v45, 16  ;;  %v11476_v45 = vld [vmem:[#allocation8 + $0x208] sm:$0xff]  }
 0x544   : > { %10372 = vmatprep.subr.bf16.mxu1 %v11466_v56 }
 0x545   : > { %v6960_v8 = vsel %vm6896_vm7, %v13721_v4, %v6959_v21  ;;  %v11470_v4 = vld [vmem:[#allocation8 + $0x1d8] sm:$0xff]  }
 0x547   : > { %10373 = vmatpush3.bf16.msra.mxu1 %v11466_v56  ;;  %v6964_v56 = vsel %vm6896_vm7, %v6959_v21, %v6963_v47  ;;  %v7464_v21 = vrot.slane %v7462_v40, 5  ;;  %v8131_v40 = vrot.slane %v13945_v6, 5 }
 0x548   : > { %10410 = vmatprep.subr.bf16.mxu1 %v11467_v39 }
 0x54a   : > { %10339 = vmatmul.mubr.bf16.gmra.mrb[16].mxu1 %v6944_v34 }
 0x54b   : > { %10342 = vmatprep.mubr.bf16.mxu1 %v6948_v61 }
 0x552   : > { %10343 = vmatmul.mubr.bf16.gmra.mrb[20].mxu1 %v6952_v20 }
 0x553   : > { %10346 = vmatprep.mubr.bf16.mxu1 %v14625_v43 }
 0x55a   : > { %10347 = vmatmul.mubr.bf16.gmra.mrb[24].mxu1 %v6960_v8 }
 0x55b   : > { %10350 = vmatprep.mubr.bf16.mxu1 %v6964_v56  ;;  %v7746_v56 = vld [vmem:[#allocation2 + $0x10] sm:$0xe0] }
 0x562   : > { %10351 = vmatmul.mubr.bf16.gmra.mrb[28].mxu1 %v6968_v53  ;;  %v7784_v53 = vrot.slane %v7746_v56, 5 }
 0x563   : > { %10354 = vmatprep.mubr.bf16.mxu1 %v13742_v12  ;;  %v11472_v12 = vld [vmem:[#allocation8 + $0x1e8] sm:$0xff]  }
 0x56a   : > { %10355 = vmatmul.mubr.bf16.gmra.mrb[32].mxu1 %v13755_v23  ;;  %v11473_v23 = vld [vmem:[#allocation8 + $0x1f0] sm:$0xff]  }
 0x56b   : > { %10374 = vmatprep.mubr.bf16.mxu1 %v13761_v57  ;;  %v11474_v57 = vld [vmem:[#allocation8 + $0x1f8] sm:$0xff]  }
 0x572   : > { %10375 = vmatmul.mubr.bf16.vlgmr.msra.gmra.mrb[0].mxu1 %v14077_v11  ;;  %v7425_v11 = vrot.slane %v14626_v27, 4  ;;  %v14639_v27 = vld [vmem:[#allocation43_spill] sm:$0xff] }
 0x573   : > { %10378 = vmatprep.mubr.bf16.mxu1 %v14083_v46  ;;  %10411 = vmatpush3.bf16.msra.mxu1 %v11467_v39  ;;  %v14627_v46 = vshll.u32 %v13791_v7, 16  ;;  %v14631_v39 = vshrl.u32 %v13798_v32, 16  ;;  %v14632_v7 = vshll.u32 %v13798_v32, 16  ;;  %v7461_v32 = vrot.slane %v7459_v15, 4 }
 0x574   : > { %10412 = vmatprep.subr.bf16.mxu1 %v11468_v55 }
 0x575   : > { %v7443_v48 = vrot.slane %v14631_v39, 4  ;;  %v7446_v30 = vrot.slane %v14632_v7, 5  ;;  %v7465_v8 = vor.u32 %v7464_v21, %v7461_v32  ;;  %v14649_v39 = vld [vmem:[#allocation53_spill] sm:$0xff]  ;;  %v8123_v7 = vshll.u32 %v7746_v56, 16 }
 0x576   : > { %v8135_v21 = vrot.slane %v13958_v51, 5 }
 0x577   : > { %10413 = vmatpush3.bf16.msra.mxu1 %v11468_v55  ;;  %v7447_v54 = vor.u32 %v7446_v30, %v7443_v48  ;;  %v14635_v55 = vld [vmem:[#allocation15_spill] sm:$0xff]  ;;  %v8120_v48 = vshrl.u32 %v7746_v56, 16  ;;  %v14650_v30 = vld [vmem:[#allocation54_spill] sm:$0xff]  ;;  %v8139_v56 = vrot.slane %v13964_v9, 5 }
 0x578   : > { %10414 = vmatprep.subr.bf16.mxu1 %v11469_v38 }
 0x57a   : > { %10379 = vmatmul.mubr.bf16.gmra.mrb[4].mxu1 %v14089_v0  ;;  %v7428_v0 = vrot.slane %v14627_v46, 5  ;;  %v11479_v46 = vld [vmem:[#allocation8 + $0x220] sm:$0xff]  }
 0x57b   : > { %10382 = vmatprep.mubr.bf16.mxu1 %v6928_v31  ;;  %10415 = vmatpush3.bf16.msra.mxu1 %v11469_v38  ;;  %v14628_v31 = vshrl.u32 %v13793_v28, 16  ;;  %v14636_v38 = vrot.slane %v14635_v55, 5 }
 0x57c   : > { %10416 = vmatprep.subr.bf16.mxu1 %v11470_v4  ;;  %v7429_v14 = vor.u32 %v7428_v0, %v7425_v11  ;;  %v14640_v11 = vld [vmem:[#allocation44_spill] sm:$0xff]  ;;  %v11480_v0 = vld [vmem:[#allocation8 + $0x228] sm:$0xff]  }
 0x57e   : > { %v7430_v63 = vsel %vm6896_vm7, %v14630_v41, %v7429_v14  ;;  %v14646_v41 = vld [vmem:[#allocation50_spill] sm:$0xff] }
 0x57f   : > { %10417 = vmatpush3.bf16.msra.mxu1 %v11470_v4  ;;  %v7786_v4 = vsel %vm7783_vm8, %v7784_v53, %v14636_v38  ;;  %v8140_v53 = vrot.slane %v13967_v50, 6  ;;  %v8147_v38 = vrot.slane %v13982_v24, 5  ;;  %v8151_v50 = vrot.slane %v13994_v37, 5 }
 0x580   : > { %10418 = vmatprep.subr.bf16.mxu1 %v11471_v33 }
 0x581   : > { %v8141_v51 = vor.u32 %v8140_v53, %v8139_v56 }
 0x582   : > { %10383 = vmatmul.mubr.bf16.gmra.mrb[8].mxu1 %v14098_v59  ;;  %v7434_v59 = vrot.slane %v14628_v31, 4  ;;  %v14641_v31 = vld [vmem:[#allocation45_spill] sm:$0xff] }
 0x583   : > { %10386 = vmatprep.mubr.bf16.mxu1 %v6936_v2  ;;  %10419 = vmatpush3.bf16.msra.mxu1 %v11471_v33  ;;  %v14629_v2 = vshll.u32 %v13793_v28, 16  ;;  %v14633_v28 = vshrl.u32 %v13800_v49, 16  ;;  %v14637_v33 = vld [vmem:[#allocation41_spill] sm:$0xff] }
 0x584   : > { %10420 = vmatprep.subr.bf16.mxu1 %v11472_v12 }
 0x585   : > { %v7437_v26 = vrot.slane %v14629_v2, 5  ;;  %v14642_v2 = vld [vmem:[#allocation46_spill] sm:$0xff] }
 0x587   : > { %10421 = vmatpush3.bf16.msra.mxu1 %v11472_v12  ;;  %v14638_v12 = vld [vmem:[#allocation42_spill] sm:$0xff] }
 0x588   : > { %10422 = vmatprep.subr.bf16.mxu1 %v11473_v23 }
 0x58a   : > { %10387 = vmatmul.mubr.bf16.gmra.mrb[12].mxu1 %v6940_v13  ;;  %v7438_v13 = vor.u32 %v7437_v26, %v7434_v59  ;;  %v11482_v59 = vld [vmem:[#allocation8 + $0x238] sm:$0xff]   ;;  %v14643_v26 = vld [vmem:[#allocation47_spill] sm:$0xff] }
 0x58b   : > { %10390 = vmatprep.mubr.bf16.mxu1 %v6944_v34  ;;  %10423 = vmatpush3.bf16.msra.mxu1 %v11473_v23  ;;  %v11477_v23 = vld [vmem:[#allocation8 + $0x210] sm:$0xff]  }
 0x58c   : > { %10424 = vmatprep.subr.bf16.mxu1 %v11474_v57  ;;  %v7439_v34 = vsel %vm6896_vm7, %v7429_v14, %v7438_v13  ;;  %v14644_v14 = vld [vmem:[#allocation48_spill] sm:$0xff] }
 0x58f   : > { %10425 = vmatpush3.bf16.msra.mxu1 %v11474_v57  ;;  %v11478_v57 = vld [vmem:[#allocation8 + $0x218] sm:$0xff]  }
 0x590   : > { %10462 = vmatprep.subr.bf16.mxu1 %v11475_v10 }
 0x592   : > { %10391 = vmatmul.mubr.bf16.gmra.mrb[16].mxu1 %v6948_v61  ;;  %v7452_v61 = vrot.slane %v14633_v28, 4  ;;  %v8128_v28 = vrot.slane %v13713_v3, 6 }
 0x593   : > { %10394 = vmatprep.mubr.bf16.mxu1 %v6952_v20 }
 0x59a   : > { %10395 = vmatmul.mubr.bf16.gmra.mrb[20].mxu1 %v14625_v43  ;;  %v7448_v43 = vsel %vm6896_vm7, %v7438_v13, %v7447_v54  ;;  %v14645_v13 = vld [vmem:[#allocation49_spill] sm:$0xff] }
 0x59b   : > { %10398 = vmatprep.mubr.bf16.mxu1 %v13766_v29  ;;  %v14634_v29 = vshll.u32 %v13800_v49, 16 }
 0x59d   : > { %v7455_v20 = vrot.slane %v14634_v29, 5  ;;  %v8122_v29 = vrot.slane %v8120_v48, 5 }
 0x59f   : > { %v7456_v36 = vor.u32 %v7455_v20, %v7452_v61  ;;  %v14651_v61 = vld [vmem:[#allocation55_spill] sm:$0xff]  ;;  %v8125_v20 = vrot.slane %v8123_v7, 6 }
 0x5a1   : > { %v7457_v47 = vsel %vm6896_vm7, %v7447_v54, %v7456_v36  ;;  %v7466_v49 = vsel %vm6896_vm7, %v7456_v36, %v7465_v8  ;;  %v8126_v15 = vor.u32 %v8125_v20, %v8122_v29  ;;  %v8132_v36 = vrot.slane %v13948_v22, 6 }
 0x5a2   : > { %10399 = vmatmul.mubr.bf16.gmra.mrb[24].mxu1 %v7430_v63  ;;  %v14648_v63 = vld [vmem:[#allocation52_spill] sm:$0xff]  ;;  %v8143_v22 = vrot.slane %v13976_v44, 5 }
 0x5a3   : > { %10402 = vmatprep.mubr.bf16.mxu1 %v7439_v34  ;;  %v8127_v34 = vrot.slane %v13710_v35, 5  ;;  %v8136_v35 = vrot.slane %v13961_v16, 6  ;;  %v8133_v3 = vor.u32 %v8132_v36, %v8131_v40  ;;  %v9095_v40 = vld [vmem:[%s11870_s12 + $0x20] sm:$0xff]  }
 0x5a5   : > { %v8129_v54 = vor.u32 %v8128_v28, %v8127_v34 }
 0x5a7   : > { %v8130_v32 = vsel %vm8118_vm9, %v8126_v15, %v8129_v54  ;;  %v8134_v8 = vsel %vm8118_vm9, %v8129_v54, %v8133_v3 }
 0x5aa   : > { %10403 = vmatmul.mubr.bf16.gmra.mrb[28].mxu1 %v7448_v43  ;;  %v14652_v43 = vld [vmem:[#allocation56_spill] sm:$0xff] }
 0x5ab   : > { %10406 = vmatprep.mubr.bf16.mxu1 %v7457_v47  ;;  %v8137_v47 = vor.u32 %v8136_v35, %v8135_v21  ;;  %v9096_v35 = vld [vmem:[%s11870_s12 + $0x28] sm:$0xff]  }
 0x5ad   : > { %v8138_v6 = vsel %vm8118_vm9, %v8133_v3, %v8137_v47  ;;  %v8142_v16 = vsel %vm8118_vm9, %v8137_v47, %v8141_v51  ;;  %v9036_v47 = vunpack.c.h.bf16 %v9095_v40 }
 0x5b2   : > { %10407 = vmatmul.mubr.bf16.gmra.mrb[32].mxu1 %v7466_v49  ;;  %v8144_v49 = vrot.slane %v13979_v25, 6 }
 0x5b3   : > { %10426 = vmatprep.mubr.bf16.mxu1 %v7786_v4  ;;  %v8148_v4 = vrot.slane %v13985_v17, 6  ;;  %v8159_v17 = vrot.slane %v14012_v18, 5 }
 0x5b4   : > { %v8145_v55 = vor.u32 %v8144_v49, %v8143_v22  ;;  %v9039_v49 = vunpack.c.l.bf16 %v9096_v35 }
 0x5b5   : > { %v8149_v44 = vor.u32 %v8148_v4, %v8147_v38 }
 0x5b6   : > { %v8146_v9 = vsel %vm8118_vm9, %v8141_v51, %v8145_v55 }
 0x5b7   : > { %v8150_v25 = vsel %vm8118_vm9, %v8145_v55, %v8149_v44 }
 0x5ba   : > { %10427 = vmatmul.mubr.bf16.vlgmr.msra.gmra.mrb[0].mxu1 %v14637_v33 }
 0x5bb   : > { %10430 = vmatprep.mubr.bf16.mxu1 %v14638_v12  ;;  %10463 = vmatpush3.bf16.msra.mxu1 %v11475_v10  ;;  %v11481_v10 = vld [vmem:[#allocation8 + $0x230] sm:$0xff]   ;;  %v8155_v12 = vrot.slane %v14000_v1, 5 }
 0x5bc   : > { %10464 = vmatprep.subr.bf16.mxu1 %v11476_v45 }
 0x5bf   : > { %10465 = vmatpush3.bf16.msra.mxu1 %v11476_v45  ;;  %v8152_v45 = vrot.slane %v13997_v42, 6 }
 0x5c0   : > { %10466 = vmatprep.subr.bf16.mxu1 %v11477_v23 }
 0x5c1   : > { %v8153_v33 = vor.u32 %v8152_v45, %v8151_v50 }
 0x5c2   : > { %10431 = vmatmul.mubr.bf16.gmra.mrb[4].mxu1 %v14639_v27 }
 0x5c3   : > { %10434 = vmatprep.mubr.bf16.mxu1 %v14640_v11  ;;  %10467 = vmatpush3.bf16.msra.mxu1 %v11477_v23  ;;  %v8156_v23 = vrot.slane %v14003_v62, 6  ;;  %v8154_v24 = vsel %vm8118_vm9, %v8149_v44, %v8153_v33  ;;  %v8163_v11 = vrot.slane %v14018_v52, 5  ;;  %v14655_v52 = vld [vmem:[#allocation59_spill] sm:$0xff]  ;;  %v9097_v44 = vld [vmem:[%s11870_s12 + $0x30] sm:$0xff]  }
 0x5c4   : > { %10468 = vmatprep.subr.bf16.mxu1 %v11478_v57 }
 0x5c5   : > { %v8157_v37 = vor.u32 %v8156_v23, %v8155_v12 }
 0x5c7   : > { %10469 = vmatpush3.bf16.msra.mxu1 %v11478_v57  ;;  %v8160_v57 = vrot.slane %v14015_v19, 6  ;;  %v8158_v42 = vsel %vm8118_vm9, %v8153_v33, %v8157_v37  ;;  %v14653_v19 = vld [vmem:[#allocation57_spill] sm:$0xff] }
 0x5c8   : > { %10470 = vmatprep.subr.bf16.mxu1 %v11479_v46 }
 0x5c9   : > { %v8161_v27 = vor.u32 %v8160_v57, %v8159_v17  ;;  %v9044_v57 = vunpack.c.h.bf16 %v9097_v44 }
 0x5ca   : > { %10435 = vmatmul.mubr.bf16.gmra.mrb[8].mxu1 %v14641_v31  ;;  %v14654_v31 = vld [vmem:[#allocation58_spill] sm:$0xff] }
 0x5cb   : > { %10438 = vmatprep.mubr.bf16.mxu1 %v13808_v60  ;;  %10471 = vmatpush3.bf16.msra.mxu1 %v11479_v46  ;;  %v14647_v60 = vld [vmem:[#allocation51_spill] sm:$0xff]  ;;  %v8164_v46 = vrot.slane %v14021_v5, 6  ;;  %v8162_v1 = vsel %vm8118_vm9, %v8157_v37, %v8161_v27  ;;  %v14656_v5 = vld [vmem:[#allocation60_spill] sm:$0xff] }
 0x5cc   : > { %10472 = vmatprep.subr.bf16.mxu1 %v11480_v0 }
 0x5cd   : > { %v8165_v62 = vor.u32 %v8164_v46, %v8163_v11 }
 0x5cf   : > { %10473 = vmatpush3.bf16.msra.mxu1 %v11480_v0  ;;  %v8166_v18 = vsel %vm8118_vm9, %v8161_v27, %v8165_v62  ;;  %v8170_v0 = vsel %vm8118_vm9, %v8165_v62, %v14653_v19  ;;  %v9043_v19 = vunpack.c.l.bf16 %v9097_v44 }
 0x5d0   : > { %10474 = vmatprep.subr.bf16.mxu1 %v11481_v10 }
 0x5d2   : > { %10439 = vmatmul.mubr.bf16.gmra.mrb[12].mxu1 %v14642_v2  ;;  %v14659_v2 = vld [vmem:[#allocation63_spill] sm:$0xff] }
 0x5d3   : > { %10442 = vmatprep.mubr.bf16.mxu1 %v14643_v26  ;;  %10475 = vmatpush3.bf16.msra.mxu1 %v11481_v10  ;;  %v14657_v10 = vld [vmem:[#allocation61_spill] sm:$0xff] }
 0x5d4   : > { %10476 = vmatprep.subr.bf16.mxu1 %v11482_v59  ;;  %v9093_v26 = vld [vmem:[%s11870_s12 + $0x10] sm:$0xff]  }
 0x5d5   : > { %v9027_v28 = vunpack.c.l.bf16 %v9093_v26 }
 0x5d7   : > { %10477 = vmatpush3.bf16.msra.mxu1 %v11482_v59  ;;  %v14658_v59 = vld [vmem:[#allocation62_spill] sm:$0xff] }
 0x5da   : > { %10443 = vmatmul.mubr.bf16.gmra.mrb[16].mxu1 %v14644_v14  ;;  %v14217_v14 = vld [vmem:[%s11870_s12 + $0xc] ss:$140 sps:$4 sm:$0xff]  }
 0x5db   : > { %10446 = vmatprep.mubr.bf16.mxu1 %v14645_v13  ;;  %v14222_v13 = vld [vmem:[%s14372_s4] ss:$0 sm:$0xff] }
 0x5e2   : > { %10447 = vmatmul.mubr.bf16.gmra.mrb[20].mxu1 %v14646_v41  ;;  %v9094_v41 = vld [vmem:[%s11870_s12 + $0x18] sm:$0xff]  }
 0x5e3   : > { %10450 = vmatprep.mubr.bf16.mxu1 %v14647_v60  ;;  %v9031_v7 = vunpack.c.l.bf16 %v9094_v41  ;;  %v9032_v53 = vunpack.c.h.bf16 %v9094_v41 }
 0x5ea   : > { %10451 = vmatmul.mubr.bf16.gmra.mrb[24].mxu1 %v14648_v63  ;;  %v8519_v63 = vunpack.c.l.bf16 %v14217_v14 }
 0x5eb   : > { %10454 = vmatprep.mubr.bf16.mxu1 %v14649_v39 }
 0x5f2   : > { %10455 = vmatmul.mubr.bf16.gmra.mrb[28].mxu1 %v14650_v30 }
 0x5f3   : > { %10458 = vmatprep.mubr.bf16.mxu1 %v14651_v61 }
 0x5fa   : > { %10459 = vmatmul.mubr.bf16.gmra.mrb[32].mxu1 %v14652_v43 }
 0x5fb   : > { %10478 = vmatprep.mubr.bf16.mxu1 %v8130_v32 }
 0x602   : > { %10479 = vmatmul.mubr.bf16.vlgmr.msra.gmra.mrb[0].mxu1 %v8134_v8 }
 0x603   : > { %10482 = vmatprep.mubr.bf16.mxu1 %v8138_v6 }
 0x60a   : > { %10483 = vmatmul.mubr.bf16.gmra.mrb[4].mxu1 %v8142_v16  ;;  %v9035_v16 = vunpack.c.l.bf16 %v9095_v40 }
 0x60b   : > { %10486 = vmatprep.mubr.bf16.mxu1 %v8146_v9 }
 0x612   : > { %10487 = vmatmul.mubr.bf16.gmra.mrb[8].mxu1 %v8150_v25 }
 0x613   : > { %10490 = vmatprep.mubr.bf16.mxu1 %v8154_v24  ;;  %v9098_v24 = vld [vmem:[%s11870_s12 + $0x38] sm:$0xff]  }
 0x61a   : > { %10491 = vmatmul.mubr.bf16.gmra.mrb[12].mxu1 %v8158_v42  ;;  %v9040_v42 = vunpack.c.h.bf16 %v9096_v35 }
 0x61b   : > { %10494 = vmatprep.mubr.bf16.mxu1 %v8162_v1  ;;  %v9047_v1 = vunpack.c.l.bf16 %v9098_v24 }
 0x622   : > { %10495 = vmatmul.mubr.bf16.gmra.mrb[16].mxu1 %v8166_v18 }
 0x623   : > { %10498 = vmatprep.mubr.bf16.mxu1 %v8170_v0 }
 0x62a   : > { %10499 = vmatmul.mubr.bf16.gmra.mrb[20].mxu1 %v14654_v31 }
 0x62b   : > { %10502 = vmatprep.mubr.bf16.mxu1 %v13897_v58  ;;  %v9028_v58 = vunpack.c.h.bf16 %v9093_v26 }
 0x632   : > { %10503 = vmatmul.mubr.bf16.gmra.mrb[24].mxu1 %v14655_v52 }
 0x633   : > { %10506 = vmatprep.mubr.bf16.mxu1 %v14656_v5 }
 0x63a   : > { %10507 = vmatmul.mubr.bf16.gmra.mrb[28].mxu1 %v14657_v10 }
 0x63b   : > { %10510 = vmatprep.mubr.bf16.mxu1 %v14658_v59  ;;  %v9099_v59 = vld [vmem:[%s11870_s12 + $0x40] sm:$0xff]  }
 0x642   : > { %10511 = vmatmul.mubr.bf16.gmra.mrb[32].mxu1 %v14659_v2 }
 0x6d5   : > { %v10480_v60 = vpop.f32.mrb[0].mxu1 }
 0x6d6   : > { %v10550_v39 = vadd.f32 %v10480_v60, %v14222_v13  ;;  %v8304_v48 = vpop.f32.mrb[1].mxu1  ;;  %v9100_v60 = vld [vmem:[%s11870_s12 + $0x48] sm:$0xff]  }
 0x6d7   : > { %v10551_v30 = vadd.f32 %v14222_v13, %v8304_v48  ;;  %v10481_v34 = vpop.f32.mrb[2].mxu1 }
 0x6d8   : > { %v8557_v61 = vadd.f32 %v10550_v39, %v9028_v58  ;;  %v10552_v29 = vadd.f32 %v10481_v34, %v14222_v13  ;;  %v8307_v20 = vpop.f32.mrb[3].mxu1  ;;  %v9052_v39 = vunpack.c.h.bf16 %v9099_v59 }
 0x6d9   : > { %v8555_v54 = vadd.f32 %v10551_v30, %v8519_v63  ;;  %v10553_v15 = vadd.f32 %v14222_v13, %v8307_v20  ;;  %v9048_v30 = vunpack.c.h.bf16 %v9098_v24 }
 0x6da   : > { %v8593_v36 = vmax.f32 %v8557_v61, 0.0  ;;  %v8558_v43 = vadd.f32 %v10552_v29, %v9031_v7  ;;  %v9055_v61 = vunpack.c.l.bf16 %v9100_v60 }
 0x6db   : > { %v8591_v32 = vmax.f32 %v8555_v54, 0.0  ;;  %v8556_v21 = vadd.f32 %v10553_v15, %v9027_v28  ;;  %v9051_v54 = vunpack.c.l.bf16 %v9099_v59 }
 0x6dc   : > { %8629 = vst [vmem:[%s14233_s16 + $0x10] sm:$0xff] %v8593_v36  ;;  %v8594_v3 = vmax.f32 %v8558_v43, 0.0 }
 0x6dd   : > { %8627 = vst [vmem:[%s14233_s16] sm:$0xff] %v8591_v32  ;;  %v8592_v8 = vmax.f32 %v8556_v21, 0.0  ;;  %v10484_v56 = vpop.f32.mrb[4].mxu1  ;;  %v9101_v21 = vld [vmem:[%s11870_s12 + $0x50] sm:$0xff]  }
 0x6de   : > { %8630 = vst [vmem:[%s14233_s16 + $0x18] sm:$0xff] %v8594_v3  ;;  %v10554_v6 = vadd.f32 %v10484_v56, %v14222_v13  ;;  %v8320_v22 = vpop.f32.mrb[5].mxu1  ;;  %v9102_v56 = vld [vmem:[%s11870_s12 + $0x58] sm:$0xff]  }
 0x6df   : > { %8628 = vst [vmem:[%s14233_s16 + $0x8] sm:$0xff] %v8592_v8  ;;  %v10555_v51 = vadd.f32 %v14222_v13, %v8320_v22  ;;  %v10485_v55 = vpop.f32.mrb[6].mxu1 }
 0x6e0   : > { %v8561_v38 = vadd.f32 %v10554_v6, %v9036_v47  ;;  %v10556_v4 = vadd.f32 %v10485_v55, %v14222_v13  ;;  %v8323_v9 = vpop.f32.mrb[7].mxu1  ;;  %v9060_v6 = vunpack.c.h.bf16 %v9101_v21 }
 0x6e1   : > { %v8559_v50 = vadd.f32 %v10555_v51, %v9032_v53  ;;  %v10557_v45 = vadd.f32 %v14222_v13, %v8323_v9  ;;  %v9056_v51 = vunpack.c.h.bf16 %v9100_v60 }
 0x6e2   : > { %v8597_v33 = vmax.f32 %v8561_v38, 0.0  ;;  %v8562_v25 = vadd.f32 %v10556_v4, %v9039_v49  ;;  %v9063_v38 = vunpack.c.l.bf16 %v9102_v56 }
 0x6e3   : > { %v8595_v12 = vmax.f32 %v8559_v50, 0.0  ;;  %v8560_v23 = vadd.f32 %v10557_v45, %v9035_v16  ;;  %v9059_v50 = vunpack.c.l.bf16 %v9101_v21 }
 0x6e4   : > { %8633 = vst [vmem:[%s14233_s16 + $0x30] sm:$0xff] %v8597_v33  ;;  %v8598_v17 = vmax.f32 %v8562_v25, 0.0 }
 0x6e5   : > { %8631 = vst [vmem:[%s14233_s16 + $0x20] sm:$0xff] %v8595_v12  ;;  %v8596_v37 = vmax.f32 %v8560_v23, 0.0  ;;  %v10488_v27 = vpop.f32.mrb[8].mxu1  ;;  %v9103_v23 = vld [vmem:[%s11870_s12 + $0x60] sm:$0xff]  }
 0x6e6   : > { %8634 = vst [vmem:[%s14233_s16 + $0x38] sm:$0xff] %v8598_v17  ;;  %v10558_v11 = vadd.f32 %v10488_v27, %v14222_v13  ;;  %v8336_v46 = vpop.f32.mrb[9].mxu1  ;;  %v9104_v27 = vld [vmem:[%s11870_s12 + $0x68] sm:$0xff]  }
 0x6e7   : > { %8632 = vst [vmem:[%s14233_s16 + $0x28] sm:$0xff] %v8596_v37  ;;  %v10559_v62 = vadd.f32 %v14222_v13, %v8336_v46  ;;  %v10489_v18 = vpop.f32.mrb[10].mxu1 }
 0x6e8   : > { %v8565_v0 = vadd.f32 %v10558_v11, %v9044_v57  ;;  %v10560_v31 = vadd.f32 %v10489_v18, %v14222_v13  ;;  %v8339_v52 = vpop.f32.mrb[11].mxu1  ;;  %v9068_v11 = vunpack.c.h.bf16 %v9103_v23 }
 0x6e9   : > { %v8563_v5 = vadd.f32 %v10559_v62, %v9040_v42  ;;  %v10561_v10 = vadd.f32 %v14222_v13, %v8339_v52  ;;  %v9064_v62 = vunpack.c.h.bf16 %v9102_v56 }
 0x6ea   : > { %v8601_v2 = vmax.f32 %v8565_v0, 0.0  ;;  %v8566_v26 = vadd.f32 %v10560_v31, %v9047_v1  ;;  %v9071_v0 = vunpack.c.l.bf16 %v9104_v27 }
 0x6eb   : > { %v8599_v41 = vmax.f32 %v8563_v5, 0.0  ;;  %v8564_v58 = vadd.f32 %v10561_v10, %v9043_v19  ;;  %v9067_v5 = vunpack.c.l.bf16 %v9103_v23 }
 0x6ec   : > { %8637 = vst [vmem:[%s14233_s16 + $0x50] sm:$0xff] %v8601_v2  ;;  %v8602_v63 = vmax.f32 %v8566_v26, 0.0 }
 0x6ed   : > { %8635 = vst [vmem:[%s14233_s16 + $0x40] sm:$0xff] %v8599_v41  ;;  %v8600_v48 = vmax.f32 %v8564_v58, 0.0  ;;  %v10492_v7 = vpop.f32.mrb[12].mxu1  ;;  %v9105_v58 = vld [vmem:[%s11870_s12 + $0x70] sm:$0xff]  }
 0x6ee   : > { %8638 = vst [vmem:[%s14233_s16 + $0x58] sm:$0xff] %v8602_v63  ;;  %v10562_v34 = vadd.f32 %v10492_v7, %v14222_v13  ;;  %v8352_v28 = vpop.f32.mrb[13].mxu1  ;;  %v9106_v7 = vld [vmem:[%s11870_s12 + $0x78] sm:$0xff]  }
 0x6ef   : > { %8636 = vst [vmem:[%s14233_s16 + $0x48] sm:$0xff] %v8600_v48  ;;  %v10563_v29 = vadd.f32 %v14222_v13, %v8352_v28  ;;  %v10493_v20 = vpop.f32.mrb[14].mxu1 }
 0x6f0   : > { %v8569_v15 = vadd.f32 %v10562_v34, %v9052_v39  ;;  %v10564_v40 = vadd.f32 %v10493_v20, %v14222_v13  ;;  %v8355_v36 = vpop.f32.mrb[15].mxu1  ;;  %v9076_v34 = vunpack.c.h.bf16 %v9105_v58 }
 0x6f1   : > { %v8567_v43 = vadd.f32 %v10563_v29, %v9048_v30  ;;  %v10565_v32 = vadd.f32 %v14222_v13, %v8355_v36  ;;  %v9072_v29 = vunpack.c.h.bf16 %v9104_v27 }
 0x6f2   : > { %v8605_v35 = vmax.f32 %v8569_v15, 0.0  ;;  %v8570_v3 = vadd.f32 %v10564_v40, %v9055_v61  ;;  %v9079_v15 = vunpack.c.l.bf16 %v9106_v7 }
 0x6f3   : > { %v8603_v47 = vmax.f32 %v8567_v43, 0.0  ;;  %v8568_v8 = vadd.f32 %v10565_v32, %v9051_v54  ;;  %v9075_v43 = vunpack.c.l.bf16 %v9105_v58 }
 0x6f4   : > { %8641 = vst [vmem:[%s14233_s16 + $0x70] sm:$0xff] %v8605_v35  ;;  %v8606_v53 = vmax.f32 %v8570_v3, 0.0 }
 0x6f5   : > { %8639 = vst [vmem:[%s14233_s16 + $0x60] sm:$0xff] %v8603_v47  ;;  %v8604_v22 = vmax.f32 %v8568_v8, 0.0  ;;  %v10496_v49 = vpop.f32.mrb[16].mxu1  ;;  %v9107_v8 = vld [vmem:[%s11870_s12 + $0x80] sm:$0xff]  }
 0x6f6   : > { %8642 = vst [vmem:[%s14233_s16 + $0x78] sm:$0xff] %v8606_v53  ;;  %v10566_v55 = vadd.f32 %v10496_v49, %v14222_v13  ;;  %v8368_v16 = vpop.f32.mrb[17].mxu1  ;;  %v9108_v49 = vld [vmem:[%s11870_s12 + $0x88] sm:$0xff]  }
 0x6f7   : > { %8640 = vst [vmem:[%s14233_s16 + $0x68] sm:$0xff] %v8604_v22  ;;  %v10567_v4 = vadd.f32 %v14222_v13, %v8368_v16  ;;  %v10497_v9 = vpop.f32.mrb[18].mxu1 }
 0x6f8   : > { %v8573_v45 = vadd.f32 %v10566_v55, %v9060_v6  ;;  %v10568_v44 = vadd.f32 %v10497_v9, %v14222_v13  ;;  %v8371_v33 = vpop.f32.mrb[19].mxu1  ;;  %v9084_v55 = vunpack.c.h.bf16 %v9107_v8 }
 0x6f9   : > { %v8571_v25 = vadd.f32 %v10567_v4, %v9056_v51  ;;  %v10569_v12 = vadd.f32 %v14222_v13, %v8371_v33  ;;  %v9080_v4 = vunpack.c.h.bf16 %v9106_v7 }
 0x6fa   : > { %v8609_v24 = vmax.f32 %v8573_v45, 0.0  ;;  %v8574_v17 = vadd.f32 %v10568_v44, %v9063_v38  ;;  %v9087_v45 = vunpack.c.l.bf16 %v9108_v49 }
 0x6fb   : > { %v8607_v57 = vmax.f32 %v8571_v25, 0.0  ;;  %v8572_v37 = vadd.f32 %v10569_v12, %v9059_v50  ;;  %v9083_v25 = vunpack.c.l.bf16 %v9107_v8 }
 0x6fc   : > { %8645 = vst [vmem:[%s14233_s16 + $0x90] sm:$0xff] %v8609_v24  ;;  %v8610_v42 = vmax.f32 %v8574_v17, 0.0 }
 0x6fd   : > { %8643 = vst [vmem:[%s14233_s16 + $0x80] sm:$0xff] %v8607_v57  ;;  %v8608_v46 = vmax.f32 %v8572_v37, 0.0  ;;  %v10500_v1 = vpop.f32.mrb[20].mxu1  ;;  %v9109_v37 = vld [vmem:[%s11870_s12 + $0x90] sm:$0xff]   ;;  %s11166_s12 = smul.u32 4608, %s11706_s25  ;;  %s8664_s25 = scalar_lea.sflag [#allocation5], %s11866_s10 }
 0x6fe   : > { %8646 = vst [vmem:[%s14233_s16 + $0x98] sm:$0xff] %v8610_v42  ;;  %v10570_v18 = vadd.f32 %v10500_v1, %v14222_v13  ;;  %v8384_v19 = vpop.f32.mrb[21].mxu1 }
 0x6ff   : > { %8644 = vst [vmem:[%s14233_s16 + $0x88] sm:$0xff] %v8608_v46  ;;  %v10571_v31 = vadd.f32 %v14222_v13, %v8384_v19  ;;  %v10501_v52 = vpop.f32.mrb[22].mxu1  ;;  %s14319_s7 = scalar_lea.hbm %s14374_s6, %s11166_s12 }
 0x700   : > { %v8577_v10 = vadd.f32 %v10570_v18, %v9068_v11  ;;  %v10572_v59 = vadd.f32 %v10501_v52, %v14222_v13  ;;  %v8387_v2 = vpop.f32.mrb[23].mxu1 }
 0x701   : > { %v8575_v26 = vadd.f32 %v10571_v31, %v9064_v62  ;;  %v10573_v41 = vadd.f32 %v14222_v13, %v8387_v2  ;;  %v9092_v62 = vunpack.c.h.bf16 %v9109_v37  ;;  %v9091_v2 = vunpack.c.l.bf16 %v9109_v37 }
 0x702   : > { %v8613_v60 = vmax.f32 %v8577_v10, 0.0  ;;  %v8578_v63 = vadd.f32 %v10572_v59, %v9071_v0  ;;  %v9088_v0 = vunpack.c.h.bf16 %v9108_v49 }
 0x703   : > { %v8611_v39 = vmax.f32 %v8575_v26, 0.0  ;;  %v8576_v48 = vadd.f32 %v10573_v41, %v9067_v5  ;;  %v8554_v5 = vunpack.c.h.bf16 %v14217_v14 }
 0x704   : > { %8649 = vst [vmem:[%s14233_s16 + $0xb0] sm:$0xff] %v8613_v60  ;;  %v8614_v30 = vmax.f32 %v8578_v63, 0.0 }
 0x705   : > { %8647 = vst [vmem:[%s14233_s16 + $0xa0] sm:$0xff] %v8611_v39  ;;  %v8612_v28 = vmax.f32 %v8576_v48, 0.0  ;;  %v10504_v61 = vpop.f32.mrb[24].mxu1 }
 0x706   : > { %8650 = vst [vmem:[%s14233_s16 + $0xb8] sm:$0xff] %v8614_v30  ;;  %v10574_v20 = vadd.f32 %v10504_v61, %v14222_v13  ;;  %v8400_v54 = vpop.f32.mrb[25].mxu1 }
 0x707   : > { %8648 = vst [vmem:[%s14233_s16 + $0xa8] sm:$0xff] %v8612_v28  ;;  %v10575_v40 = vadd.f32 %v14222_v13, %v8400_v54  ;;  %v10505_v36 = vpop.f32.mrb[26].mxu1 }
 0x708   : > { %v8581_v32 = vadd.f32 %v10574_v20, %v9076_v34  ;;  %v10576_v21 = vadd.f32 %v10505_v36, %v14222_v13  ;;  %v8403_v35 = vpop.f32.mrb[27].mxu1 }
 0x709   : > { %v8579_v3 = vadd.f32 %v10575_v40, %v9072_v29  ;;  %v10577_v47 = vadd.f32 %v14222_v13, %v8403_v35 }
 0x70a   : > { %v8617_v56 = vmax.f32 %v8581_v32, 0.0  ;;  %v8582_v53 = vadd.f32 %v10576_v21, %v9079_v15 }
 0x70b   : > { %v8615_v6 = vmax.f32 %v8579_v3, 0.0  ;;  %v8580_v22 = vadd.f32 %v10577_v47, %v9075_v43 }
 0x70c   : > { %8653 = vst [vmem:[%s14233_s16 + $0xd0] sm:$0xff] %v8617_v56  ;;  %v8618_v51 = vmax.f32 %v8582_v53, 0.0 }
 0x70d   : > { %8651 = vst [vmem:[%s14233_s16 + $0xc0] sm:$0xff] %v8615_v6  ;;  %v8616_v16 = vmax.f32 %v8580_v22, 0.0  ;;  %v10508_v38 = vpop.f32.mrb[28].mxu1 }
 0x70e   : > { %8654 = vst [vmem:[%s14233_s16 + $0xd8] sm:$0xff] %v8618_v51  ;;  %v10578_v9 = vadd.f32 %v10508_v38, %v14222_v13  ;;  %v8416_v50 = vpop.f32.mrb[29].mxu1 }
 0x70f   : > { %8652 = vst [vmem:[%s14233_s16 + $0xc8] sm:$0xff] %v8616_v16  ;;  %v10579_v44 = vadd.f32 %v14222_v13, %v8416_v50  ;;  %v10509_v33 = vpop.f32.mrb[30].mxu1 }
 0x710   : > { %v8585_v12 = vadd.f32 %v10578_v9, %v9084_v55  ;;  %v10580_v23 = vadd.f32 %v10509_v33, %v14222_v13  ;;  %v8419_v24 = vpop.f32.mrb[31].mxu1 }
 0x711   : > { %v8583_v17 = vadd.f32 %v10579_v44, %v9080_v4  ;;  %v10581_v57 = vadd.f32 %v14222_v13, %v8419_v24 }
 0x712   : > { %v8621_v27 = vmax.f32 %v8585_v12, 0.0  ;;  %v8586_v42 = vadd.f32 %v10580_v23, %v9087_v45 }
 0x713   : > { %v8619_v11 = vmax.f32 %v8583_v17, 0.0  ;;  %v8584_v46 = vadd.f32 %v10581_v57, %v9083_v25 }
 0x714   : > { %8657 = vst [vmem:[%s14233_s16 + $0xf0] sm:$0xff] %v8621_v27  ;;  %v8622_v1 = vmax.f32 %v8586_v42, 0.0 }
 0x715   : > { %8655 = vst [vmem:[%s14233_s16 + $0xe0] sm:$0xff] %v8619_v11  ;;  %v8620_v18 = vmax.f32 %v8584_v46, 0.0  ;;  %v10512_v19 = vpop.f32.mrb[32].mxu1 }
 0x716   : > { %8658 = vst [vmem:[%s14233_s16 + $0xf8] sm:$0xff] %v8622_v1  ;;  %v10582_v31 = vadd.f32 %v10512_v19, %v14222_v13  ;;  %v8432_v52 = vpop.f32.mrb[33].mxu1 }
 0x717   : > { %8656 = vst [vmem:[%s14233_s16 + $0xe8] sm:$0xff] %v8620_v18  ;;  %v10583_v10 = vadd.f32 %v14222_v13, %v8432_v52  ;;  %v10513_v59 = vpop.f32.mrb[34].mxu1 }
 0x718   : > { %v8589_v26 = vadd.f32 %v10582_v31, %v9092_v62  ;;  %v10584_v41 = vadd.f32 %v10513_v59, %v14222_v13  ;;  %v8435_v58 = vpop.f32.mrb[35].mxu1 }
 0x719   : > { %v8587_v60 = vadd.f32 %v10583_v10, %v9088_v0  ;;  %v10585_v63 = vadd.f32 %v14222_v13, %v8435_v58 }
 0x71a   : > { %v8625_v39 = vmax.f32 %v8589_v26, 0.0  ;;  %v8590_v14 = vadd.f32 %v10584_v41, %v8554_v5 }
 0x71b   : > { %v8623_v48 = vmax.f32 %v8587_v60, 0.0  ;;  %v8588_v7 = vadd.f32 %v10585_v63, %v9091_v2 }
 0x71c   : > { %8661 = vst [vmem:[%s14233_s16 + $0x110] sm:$0xff] %v8625_v39  ;;  %v8626_v30 = vmax.f32 %v8590_v14, 0.0 }
 0x71d   : > { %8659 = vst [vmem:[%s14233_s16 + $0x100] sm:$0xff] %v8623_v48  ;;  %v8624_v34 = vmax.f32 %v8588_v7, 0.0 }
 0x71e   : > { %8662 = vst [vmem:[%s14233_s16 + $0x118] sm:$0xff] %v8626_v30 }
 0x71f   : > { %8660 = vst [vmem:[%s14233_s16 + $0x108] sm:$0xff] %v8624_v34 }
 0x720   : > { %11582 = shalt.err (!%p11579_p1)
}
 0x721   : > { %s11583_s19 = scalar_lea.hbm %s14319_s7, 4608  ;;  %s11587_s15 = scalar_lea.hbm %s14374_s6, 9216 }
 0x722   : > { %p11584_p13 = scmp.ne.s32.totalorder %s14319_s7, %s11583_s19  ;;  %p11588_p4 = scmp.lt.u32.totalorder %s14319_s7, %s14374_s6 }
 0x723   : > { %p11589_p5 = scmp.lt.u32.totalorder %s11587_s15, %s11583_s19  ;;  %p11591_p11 = scmp.lt.u32.totalorder %s11583_s19, %s14319_s7 }
 0x724   : > { %p11585_p6 = pnand %p11584_p13, %p14660_p0 }
 0x725   : > { %p11590_p8 = por %p11589_p5, %p11588_p4 }
 0x726   : > { %p11586_p10 = pneg %p11585_p6 }
 0x727   : > { %p11592_p2 = por %p11591_p11, %p11590_p8 }
 0x729   : > { %p11593_p3 = pnand %p11592_p2, %p11586_p10 }
 0x72b   : > { %11596 = shalt.err (!%p11593_p3)
}
 0x72c   : > { %s11648_s29 = smov 128   ;;  %s11649_s14 = smov 8  }
 0x72d   : > { %11177 = dma.vmem_to_hbm [thread:$0]  (%p14660_p0), %s14322_s27, 4608, %s14319_s7, %s8664_s25, %s11648_s29, %s11648_s29, %s11649_s14  }
 0x72e PF: > { %s8692_s18 = sand.u32 1, %s11627_s21   ;;  %p14661_p7 = scmp.ne.s32.totalorder %s14451_s28, 0 }
 0x72f   : > { %p14662_p9 = scmp.ge.s32.totalorder %s11639_s24, 2  ;;  %s8693_s26 = scalar_lea.sflag [#allocation5], %s8692_s18 }
 0x731   : > { %p11191_p12 = pnand %p14662_p9, %p14661_p7 }
 0x733   : > { %11622 = dma.done.wait (!%p11191_p12), %s8693_s26, 4608  }
 0x734   : > { %11624 = vsyncadd (!%p11191_p12), %s8693_s26, 4294962688  ;;  %p20_p1 = scmp.ge.s32.totalorder %s11801_s8, 4   ;;  %s14663_s21 = smov %s11631_s22 }
 0x735   : > { %s14664_s22 = smov %s11635_s23  ;;  %s14665_s23 = smov %s11817_s11 }
 0x736   : > { %s14666_s24 = smov %s11801_s8  ;;  %22 = sbr.rel (!%p20_p1) target bundleno = 6 (0x6), region = 113 }
 0x73d   :  { %8698 = vsyncpa [#allocation4], 1 }
 0x73e   :  { %8700 = vsyncpa [#allocation4 + $0x1], 1 }
 0x73f   :  { %8701 = vsyncpa [#allocation7], 1 }
 0x740   :  { %8702 = vsyncpa [#allocation5], 1 }
 0x741   :  { %8704 = vsyncpa [#allocation5 + $0x1], 1 }

</bundles_post_ra>
